<compile_context>
chip_gen: v5e
topology: v5e:2x2
jax: 0.10.0
libtpu: 0.0.40
codegen_flags: <defaults>
</compile_context>

<pallas_src>
import functools
import math

import jax
import jax.numpy as jnp
from jax.experimental import pallas as pl
from jax.experimental.pallas import tpu as pltpu


_Q_TILE = 256   # max query rows per score block inside the kernel


# --------------------------------------------------------------------------
# Kernel
# --------------------------------------------------------------------------
def _cross_attn_block(x, kv, w_ref, b_ref, num_heads):
    """LayerNorm(MHA(x, kv, kv) + x) for one batch element.

    x      : (Lq, E) f32 query-side activations
    kv     : (Lk, E) f32 key/value-side activations
    w_ref  : (4, E, E) compute-dtype weights:
               [0] W_q^T * (1/sqrt(Dh))   [1] W_k^T   [2] W_v^T   [3] W_o^T
    b_ref  : (6, 1, E) f32 vectors: [b_q*scale, b_k, b_v, b_o, ln_gamma, ln_beta]
    """
    f32 = jnp.float32
    cdt = w_ref.dtype                      # MXU operand dtype (bf16 or f32)
    Lq, E = x.shape
    Lk = kv.shape[0]
    H = num_heads
    Dh = E // H

    xc = x.astype(cdt)
    kvc = kv.astype(cdt)

    # Full-width, lane-dense in-projections (N = E), f32 accumulation.
    q = jnp.dot(xc, w_ref[0], preferred_element_type=f32) + b_ref[0]    # (Lq, E)
    k = jnp.dot(kvc, w_ref[1], preferred_element_type=f32) + b_ref[1]   # (Lk, E)
    v = jnp.dot(kvc, w_ref[2], preferred_element_type=f32) + b_ref[2]   # (Lk, E)

    # Head split: one reshape+transpose relayout per tensor (XLU slot).
    qh = jnp.transpose(q.reshape(Lq, H, Dh), (1, 0, 2)).astype(cdt)     # (H, Lq, Dh)
    kh = jnp.transpose(k.reshape(Lk, H, Dh), (1, 0, 2)).astype(cdt)     # (H, Lk, Dh)
    vh = jnp.transpose(v.reshape(Lk, H, Dh), (1, 0, 2))                 # (H, Lk, Dh) f32

    # Attention core, evaluated per query tile so the (H, tq, Lk) score
    # block stays bounded at production sizes (single iteration in the demo).
    ctx_tiles = []
    for t0 in range(0, Lq, _Q_TILE):
        tq = min(_Q_TILE, Lq - t0)
        qt = qh[:, t0:t0 + tq]                                           # (H, tq, Dh)
        s = jnp.einsum("hqd,hkd->hqk", qt, kh,
                       preferred_element_type=f32)                       # (H, tq, Lk)
        s = s - jnp.max(s, axis=-1, keepdims=True)
        p = jnp.exp(s)
        p = p / jnp.sum(p, axis=-1, keepdims=True)   # exact softmax (f32)
        # P.V kept fully in f32: probabilities are never rounded to bf16.
        ctx_tiles.append(jnp.einsum("hqk,hkd->hqd", p, vh,
                                    preferred_element_type=f32))         # (H, tq, Dh)
    ctx = ctx_tiles[0] if len(ctx_tiles) == 1 else jnp.concatenate(ctx_tiles, axis=1)

    # Merge heads (one relayout) + single full-width output projection.
    ctx_f = jnp.transpose(ctx, (1, 0, 2)).reshape(Lq, E)                 # (Lq, E)
    attn = jnp.dot(ctx_f.astype(cdt), w_ref[3],
                   preferred_element_type=f32) + b_ref[3]                # (Lq, E)

    # Residual + LayerNorm (eps=1e-5, biased variance), in f32.
    res = attn + x
    mean = jnp.mean(res, axis=-1, keepdims=True)
    cen = res - mean
    var = jnp.mean(cen * cen, axis=-1, keepdims=True)
    y = cen * jax.lax.rsqrt(var + 1e-5)
    return y * b_ref[4] + b_ref[5]


def _bidir_cross_attn_kernel(num_heads,
                             img_ref, aud_ref,
                             w_ia_ref, b_ia_ref,
                             w_ai_ref, b_ai_ref,
                             img_out_ref, aud_out_ref):
    """Both cross-attention directions for one batch element.

    Activation refs arrive channels-first (1, E, L) — the free reshape of the
    NCHW input — and are transposed per tile in VMEM (no HBM transpose).
    """
    img = img_ref[0].T.astype(jnp.float32)    # (Li, E)
    aud = aud_ref[0].T.astype(jnp.float32)    # (La, E)

    y_img = _cross_attn_block(img, aud, w_ia_ref, b_ia_ref, num_heads)
    y_aud = _cross_attn_block(aud, img, w_ai_ref, b_ai_ref, num_heads)

    img_out_ref[0] = y_img.T.astype(img_out_ref.dtype)    # back to (E, Li)
    aud_out_ref[0] = y_aud.T.astype(aud_out_ref.dtype)    # back to (E, La)


# --------------------------------------------------------------------------
# Host-side parameter packing (pre-transpose + scale folding)
# --------------------------------------------------------------------------
def pack_params(params, num_heads, compute_dtype):
    """PyTorch-layout MHA + LN params -> packed kernel params."""
    E = params["wq"].shape[0]
    assert E % num_heads == 0, "embed_dim must be divisible by num_heads"
    Dh = E // num_heads
    scale = 1.0 / math.sqrt(Dh)

    # Pre-transposed so every in-kernel matmul is activations @ weights
    # (no in-kernel weight transpose); 1/sqrt(Dh) folded into W_q / b_q.
    w_pack = jnp.stack([
        params["wq"].T * scale,
        params["wk"].T,
        params["wv"].T,
        params["wo"].T,
    ]).astype(compute_dtype)                                   # (4, E, E)

    b_pack = jnp.stack([
        params["bq"] * scale,
        params["bk"],
        params["bv"],
        params["bo"],
        params["gamma"],
        params["beta"],
    ])[:, None, :].astype(jnp.float32)                         # (6, 1, E)

    return w_pack, b_pack


# --------------------------------------------------------------------------
# Wrapper
# --------------------------------------------------------------------------
@functools.partial(jax.jit, static_argnames=("num_heads", "compute_dtype"))
def bidirectional_cross_attention(img_feat, audio_feat, params_i2a, params_a2i,
                                  num_heads, compute_dtype=jnp.bfloat16):
    """img_feat: (B, C, H_img, W_img), audio_feat: (B, C, H_aud, W_aud)."""
    B, C, Hi, Wi = img_feat.shape
    _, _, Ha, Wa = audio_feat.shape
    E = C
    Li, La = Hi * Wi, Ha * Wa

    # NCHW -> (B, C, L): a free reshape, NOT an HBM transpose.
    img_cl = img_feat.reshape(B, E, Li)
    aud_cl = audio_feat.reshape(B, E, La)

    w_ia, b_ia = pack_params(params_i2a, num_heads, compute_dtype)
    w_ai, b_ai = pack_params(params_a2i, num_heads, compute_dtype)

    def const_spec(shape):
        # Constant index_map -> never re-DMA'd across the batch grid.
        return pl.BlockSpec(shape, lambda b: (0,) * len(shape))

    kernel = functools.partial(_bidir_cross_attn_kernel, num_heads)

    img_upd, aud_upd = pl.pallas_call(
        kernel,
        out_shape=(jax.ShapeDtypeStruct((B, E, Li), jnp.float32),
                   jax.ShapeDtypeStruct((B, E, La), jnp.float32)),
        grid_spec=pltpu.PrefetchScalarGridSpec(
            num_scalar_prefetch=0,
            grid=(B,),
            in_specs=[
                pl.BlockSpec((1, E, Li), lambda b: (b, 0, 0)),
                pl.BlockSpec((1, E, La), lambda b: (b, 0, 0)),
                const_spec((4, E, E)),
                const_spec((6, 1, E)),
                const_spec((4, E, E)),
                const_spec((6, 1, E)),
            ],
            out_specs=[
                pl.BlockSpec((1, E, Li), lambda b: (b, 0, 0)),
                pl.BlockSpec((1, E, La), lambda b: (b, 0, 0)),
            ],
        ),
        compiler_params=pltpu.CompilerParams(
            dimension_semantics=("parallel",),
            # Above the 16/32 MiB scoped defaults, below v7x's 64 MiB physical.
            vmem_limit_bytes=48 * 1024 * 1024,
        ),
    )(img_cl, aud_cl, w_ia, b_ia, w_ai, b_ai)

    return (img_upd.reshape(B, E, Hi, Wi),
            aud_upd.reshape(B, E, Ha, Wa))


# --------------------------------------------------------------------------
# Synthetic parameters + pure-JAX reference for validation
# --------------------------------------------------------------------------
def make_params(key, embed_dim):
    ks = jax.random.split(key, 8)
    s = 0.02
    E = embed_dim
    return {
        "wq": s * jax.random.normal(ks[0], (E, E), jnp.float32),
        "wk": s * jax.random.normal(ks[1], (E, E), jnp.float32),
        "wv": s * jax.random.normal(ks[2], (E, E), jnp.float32),
        "bq": s * jax.random.normal(ks[3], (E,), jnp.float32),
        "bk": s * jax.random.normal(ks[4], (E,), jnp.float32),
        "bv": s * jax.random.normal(ks[5], (E,), jnp.float32),
        "wo": s * jax.random.normal(ks[6], (E, E), jnp.float32),
        "bo": s * jax.random.normal(ks[7], (E,), jnp.float32),
        "gamma": jnp.ones((E,), jnp.float32),
        "beta": jnp.zeros((E,), jnp.float32),
    }


def _nchw_to_bld(x):
    B, C, H, W = x.shape
    return x.reshape(B, C, H * W).transpose(0, 2, 1)     # (B, L, C)


def _bld_to_nchw(x, H, W):
    B, L, C = x.shape
    return x.transpose(0, 2, 1).reshape(B, C, H, W)


def _ref_cross_attention(q_bld, kv_bld, p, num_heads):
    E = q_bld.shape[-1]
    Dh = E // num_heads
    q = q_bld @ p["wq"].T + p["bq"]
    k = kv_bld @ p["wk"].T + p["bk"]
    v = kv_bld @ p["wv"].T + p["bv"]
    B, Lq, _ = q.shape
    Lk = k.shape[1]
    qh = q.reshape(B, Lq, num_heads, Dh).transpose(0, 2, 1, 3)
    kh = k.reshape(B, Lk, num_heads, Dh).transpose(0, 2, 1, 3)
    vh = v.reshape(B, Lk, num_heads, Dh).transpose(0, 2, 1, 3)
    s = jnp.einsum("bhqd,bhkd->bhqk", qh, kh) / math.sqrt(Dh)
    w = jax.nn.softmax(s, axis=-1)
    o = jnp.einsum("bhqk,bhkd->bhqd", w, vh)
    o = o.transpose(0, 2, 1, 3).reshape(B, Lq, E)
    o = o @ p["wo"].T + p["bo"]
    res = o + q_bld
    mean = res.mean(-1, keepdims=True)
    var = ((res - mean) ** 2).mean(-1, keepdims=True)
    y = (res - mean) / jnp.sqrt(var + 1e-5)
    return y * p["gamma"] + p["beta"]


if __name__ == "__main__":
    embed_dim = 128          # multiple of 128 -> lane-dense matmuls
    num_heads = 8            # head_dim = 16
    B = 2
    H_img, W_img = 4, 4      # Li = 16
    H_aud, W_aud = 2, 4      # La = 8

    key = jax.random.PRNGKey(0)
    k_img, k_aud, k_p1, k_p2 = jax.random.split(key, 4)

    img_feat = jax.random.normal(k_img, (B, embed_dim, H_img, W_img), jnp.float32)
    audio_feat = jax.random.normal(k_aud, (B, embed_dim, H_aud, W_aud), jnp.float32)

    params_i2a = make_params(k_p1, embed_dim)
    params_a2i = make_params(k_p2, embed_dim)

    # Pure-JAX reference.
    img_ref = _bld_to_nchw(
        _ref_cross_attention(_nchw_to_bld(img_feat), _nchw_to_bld(audio_feat),
                             params_i2a, num_heads), H_img, W_img)
    aud_ref = _bld_to_nchw(
        _ref_cross_attention(_nchw_to_bld(audio_feat), _nchw_to_bld(img_feat),
                             params_a2i, num_heads), H_aud, W_aud)

    # f32 MXU-operand path (exact softmax -> tight tolerance).
    img_f32, aud_f32 = bidirectional_cross_attention(
        img_feat, audio_feat, params_i2a, params_a2i,
        num_heads=num_heads, compute_dtype=jnp.float32)
    jax.block_until_ready((img_f32, aud_f32))
    assert img_f32.shape == img_feat.shape and aud_f32.shape == audio_feat.shape
    assert jnp.allclose(img_f32, img_ref, atol=1e-3, rtol=1e-3)
    assert jnp.allclose(aud_f32, aud_ref, atol=1e-3, rtol=1e-3)

    # Default path: bf16 MXU operands (projections / scores), f32 softmax,
    # f32 P.V, f32 LayerNorm & residual.
    img_upd, aud_upd = bidirectional_cross_attention(
        img_feat, audio_feat, params_i2a, params_a2i, num_heads=num_heads)
    jax.block_until_ready((img_upd, aud_upd))
    assert jnp.allclose(img_upd, img_ref, atol=5e-2, rtol=5e-2)
    assert jnp.allclose(aud_upd, aud_ref, atol=5e-2, rtol=5e-2)

    print("KERNEL_OK")
</pallas_src>

<mosaic_0001>
module attributes {stable_mosaic.version = 11 : i64} {
  func.func @_bidir_cross_attn_kernel(%arg0: i32, %arg1: memref<1x128x16xf32, #tpu.memory_space<vmem>>, %arg2: memref<1x128x8xf32, #tpu.memory_space<vmem>>, %arg3: memref<4x128x128xf32, #tpu.memory_space<vmem>>, %arg4: memref<6x1x128xf32, #tpu.memory_space<vmem>>, %arg5: memref<4x128x128xf32, #tpu.memory_space<vmem>>, %arg6: memref<6x1x128xf32, #tpu.memory_space<vmem>>, %arg7: memref<1x128x16xf32, #tpu.memory_space<vmem>>, %arg8: memref<1x128x8xf32, #tpu.memory_space<vmem>>) attributes {dimension_semantics = [#tpu.dimension_semantics<parallel>], iteration_bounds = array<i64: 2>, scalar_prefetch = 0 : i64, scratch_operands = 0 : i64, tpu.core_type = #tpu.core_type<tc>, window_params = [{transform_indices = @transform_0, window_bounds = array<i64: 1, 128, 16>}, {transform_indices = @transform_1, window_bounds = array<i64: 1, 128, 8>}, {pipeline_mode = #tpu.pipeline_mode<synchronous>, transform_indices = @transform_2, window_bounds = array<i64: 4, 128, 128>}, {pipeline_mode = #tpu.pipeline_mode<synchronous>, transform_indices = @transform_3, window_bounds = array<i64: 6, 1, 128>}, {pipeline_mode = #tpu.pipeline_mode<synchronous>, transform_indices = @transform_4, window_bounds = array<i64: 4, 128, 128>}, {pipeline_mode = #tpu.pipeline_mode<synchronous>, transform_indices = @transform_5, window_bounds = array<i64: 6, 1, 128>}, {transform_indices = @transform_6, window_bounds = array<i64: 1, 128, 16>}, {transform_indices = @transform_7, window_bounds = array<i64: 1, 128, 8>}]} {
    %c0 = arith.constant 0 : index
    %c0_0 = arith.constant 0 : index
    %c0_1 = arith.constant 0 : index
    %0 = vector.load %arg1[%c0, %c0_0, %c0_1] : memref<1x128x16xf32, #tpu.memory_space<vmem>>, vector<1x128x16xf32>
    %1 = vector.shape_cast %0 : vector<1x128x16xf32> to vector<128x16xf32>
    %2 = tpu.transpose %1, [1, 0] : vector<128x16xf32> -> vector<16x128xf32>
    %c0_2 = arith.constant 0 : index
    %c0_3 = arith.constant 0 : index
    %c0_4 = arith.constant 0 : index
    %3 = vector.load %arg2[%c0_2, %c0_3, %c0_4] : memref<1x128x8xf32, #tpu.memory_space<vmem>>, vector<1x128x8xf32>
    %4 = vector.shape_cast %3 : vector<1x128x8xf32> to vector<128x8xf32>
    %5 = tpu.transpose %4, [1, 0] : vector<128x8xf32> -> vector<8x128xf32>
    %c0_5 = arith.constant 0 : index
    %c0_6 = arith.constant 0 : index
    %c0_7 = arith.constant 0 : index
    %6 = vector.load %arg3[%c0_5, %c0_6, %c0_7] : memref<4x128x128xf32, #tpu.memory_space<vmem>>, vector<1x128x128xf32>
    %7 = vector.shape_cast %6 : vector<1x128x128xf32> to vector<128x128xf32>
    %cst = arith.constant dense<0.000000e+00> : vector<16x128xf32>
    %8 = tpu.matmul %2, %7, %cst {dimension_numbers = #tpu.dot_dimension_numbers<[1], [0], [0], [1], [0, 0, 1, 1], [], []>} : vector<16x128xf32>, vector<128x128xf32>, vector<16x128xf32> -> vector<16x128xf32>
    %c0_8 = arith.constant 0 : index
    %c0_9 = arith.constant 0 : index
    %c0_10 = arith.constant 0 : index
    %9 = vector.load %arg4[%c0_8, %c0_9, %c0_10] : memref<6x1x128xf32, #tpu.memory_space<vmem>>, vector<1x1x128xf32>
    %10 = vector.shape_cast %9 : vector<1x1x128xf32> to vector<1x128xf32>
    %11 = vector.broadcast %10 : vector<1x128xf32> to vector<16x128xf32>
    %12 = arith.addf %8, %11 : vector<16x128xf32>
    %c1 = arith.constant 1 : index
    %c0_11 = arith.constant 0 : index
    %c0_12 = arith.constant 0 : index
    %13 = vector.load %arg3[%c1, %c0_11, %c0_12] : memref<4x128x128xf32, #tpu.memory_space<vmem>>, vector<1x128x128xf32>
    %14 = vector.shape_cast %13 : vector<1x128x128xf32> to vector<128x128xf32>
    %cst_13 = arith.constant dense<0.000000e+00> : vector<8x128xf32>
    %15 = tpu.matmul %5, %14, %cst_13 {dimension_numbers = #tpu.dot_dimension_numbers<[1], [0], [0], [1], [0, 0, 1, 1], [], []>} : vector<8x128xf32>, vector<128x128xf32>, vector<8x128xf32> -> vector<8x128xf32>
    %c1_14 = arith.constant 1 : index
    %c0_15 = arith.constant 0 : index
    %c0_16 = arith.constant 0 : index
    %16 = vector.load %arg4[%c1_14, %c0_15, %c0_16] : memref<6x1x128xf32, #tpu.memory_space<vmem>>, vector<1x1x128xf32>
    %17 = vector.shape_cast %16 : vector<1x1x128xf32> to vector<1x128xf32>
    %18 = vector.broadcast %17 : vector<1x128xf32> to vector<8x128xf32>
    %19 = arith.addf %15, %18 : vector<8x128xf32>
    %c2 = arith.constant 2 : index
    %c0_17 = arith.constant 0 : index
    %c0_18 = arith.constant 0 : index
    %20 = vector.load %arg3[%c2, %c0_17, %c0_18] : memref<4x128x128xf32, #tpu.memory_space<vmem>>, vector<1x128x128xf32>
    %21 = vector.shape_cast %20 : vector<1x128x128xf32> to vector<128x128xf32>
    %cst_19 = arith.constant dense<0.000000e+00> : vector<8x128xf32>
    %22 = tpu.matmul %5, %21, %cst_19 {dimension_numbers = #tpu.dot_dimension_numbers<[1], [0], [0], [1], [0, 0, 1, 1], [], []>} : vector<8x128xf32>, vector<128x128xf32>, vector<8x128xf32> -> vector<8x128xf32>
    %c2_20 = arith.constant 2 : index
    %c0_21 = arith.constant 0 : index
    %c0_22 = arith.constant 0 : index
    %23 = vector.load %arg4[%c2_20, %c0_21, %c0_22] : memref<6x1x128xf32, #tpu.memory_space<vmem>>, vector<1x1x128xf32>
    %24 = vector.shape_cast %23 : vector<1x1x128xf32> to vector<1x128xf32>
    %25 = vector.broadcast %24 : vector<1x128xf32> to vector<8x128xf32>
    %26 = arith.addf %22, %25 : vector<8x128xf32>
    %27 = vector.shape_cast %12 : vector<16x128xf32> to vector<16x8x16xf32>
    %28 = tpu.transpose %27, [1, 0, 2] : vector<16x8x16xf32> -> vector<8x16x16xf32>
    %29 = vector.shape_cast %19 : vector<8x128xf32> to vector<8x8x16xf32>
    %30 = tpu.transpose %29, [1, 0, 2] : vector<8x8x16xf32> -> vector<8x8x16xf32>
    %31 = vector.shape_cast %26 : vector<8x128xf32> to vector<8x8x16xf32>
    %32 = tpu.transpose %31, [1, 0, 2] : vector<8x8x16xf32> -> vector<8x8x16xf32>
    "tpu.trace_start"() <{level = 10 : i32, message = "hqd,hkd->hqk"}> : () -> ()
    %cst_23 = arith.constant dense<0.000000e+00> : vector<8x16x8xf32>
    %33 = tpu.matmul %28, %30, %cst_23 {dimension_numbers = #tpu.dot_dimension_numbers<[2], [2], [1], [1], [0, 0, 0, 1, 1, 1], [0], [0]>} : vector<8x16x16xf32>, vector<8x8x16xf32>, vector<8x16x8xf32> -> vector<8x16x8xf32>
    "tpu.trace_stop"() : () -> ()
    %cst_24 = arith.constant dense<0xFF800000> : vector<8x16xf32>
    %34 = vector.multi_reduction <maximumf>, %33, %cst_24 [2] : vector<8x16x8xf32> to vector<8x16xf32>
    %35 = vector.shape_cast %34 : vector<8x16xf32> to vector<8x16x1xf32>
    %36 = vector.broadcast %35 : vector<8x16x1xf32> to vector<8x16x8xf32>
    %37 = arith.subf %33, %36 : vector<8x16x8xf32>
    %38 = math.exp %37 : vector<8x16x8xf32>
    %cst_25 = arith.constant dense<0.000000e+00> : vector<8x16xf32>
    %39 = vector.multi_reduction <add>, %38, %cst_25 [2] : vector<8x16x8xf32> to vector<8x16xf32>
    %40 = vector.shape_cast %39 : vector<8x16xf32> to vector<8x16x1xf32>
    %41 = vector.broadcast %40 : vector<8x16x1xf32> to vector<8x16x8xf32>
    %42 = arith.divf %38, %41 : vector<8x16x8xf32>
    "tpu.trace_start"() <{level = 10 : i32, message = "hqk,hkd->hqd"}> : () -> ()
    %cst_26 = arith.constant dense<0.000000e+00> : vector<8x16x16xf32>
    %43 = tpu.matmul %42, %32, %cst_26 {dimension_numbers = #tpu.dot_dimension_numbers<[2], [1], [1], [2], [0, 0, 0, 1, 1, 2], [0], [0]>} : vector<8x16x8xf32>, vector<8x8x16xf32>, vector<8x16x16xf32> -> vector<8x16x16xf32>
    "tpu.trace_stop"() : () -> ()
    %44 = tpu.transpose %43, [1, 0, 2] : vector<8x16x16xf32> -> vector<16x8x16xf32>
    %45 = vector.shape_cast %44 : vector<16x8x16xf32> to vector<16x128xf32>
    %c3 = arith.constant 3 : index
    %c0_27 = arith.constant 0 : index
    %c0_28 = arith.constant 0 : index
    %46 = vector.load %arg3[%c3, %c0_27, %c0_28] : memref<4x128x128xf32, #tpu.memory_space<vmem>>, vector<1x128x128xf32>
    %47 = vector.shape_cast %46 : vector<1x128x128xf32> to vector<128x128xf32>
    %cst_29 = arith.constant dense<0.000000e+00> : vector<16x128xf32>
    %48 = tpu.matmul %45, %47, %cst_29 {dimension_numbers = #tpu.dot_dimension_numbers<[1], [0], [0], [1], [0, 0, 1, 1], [], []>} : vector<16x128xf32>, vector<128x128xf32>, vector<16x128xf32> -> vector<16x128xf32>
    %c3_30 = arith.constant 3 : index
    %c0_31 = arith.constant 0 : index
    %c0_32 = arith.constant 0 : index
    %49 = vector.load %arg4[%c3_30, %c0_31, %c0_32] : memref<6x1x128xf32, #tpu.memory_space<vmem>>, vector<1x1x128xf32>
    %50 = vector.shape_cast %49 : vector<1x1x128xf32> to vector<1x128xf32>
    %51 = vector.broadcast %50 : vector<1x128xf32> to vector<16x128xf32>
    %52 = arith.addf %48, %51 : vector<16x128xf32>
    %53 = arith.addf %52, %2 : vector<16x128xf32>
    %cst_33 = arith.constant dense<0.000000e+00> : vector<16xf32>
    %54 = vector.multi_reduction <add>, %53, %cst_33 [1] : vector<16x128xf32> to vector<16xf32>
    %55 = vector.shape_cast %54 : vector<16xf32> to vector<16x1xf32>
    %cst_34 = arith.constant 1.280000e+02 : f32
    %56 = vector.broadcast %cst_34 : f32 to vector<16x1xf32>
    %57 = arith.divf %55, %56 : vector<16x1xf32>
    %58 = vector.broadcast %57 : vector<16x1xf32> to vector<16x128xf32>
    %59 = arith.subf %53, %58 : vector<16x128xf32>
    %60 = arith.mulf %59, %59 : vector<16x128xf32>
    %cst_35 = arith.constant dense<0.000000e+00> : vector<16xf32>
    %61 = vector.multi_reduction <add>, %60, %cst_35 [1] : vector<16x128xf32> to vector<16xf32>
    %62 = vector.shape_cast %61 : vector<16xf32> to vector<16x1xf32>
    %cst_36 = arith.constant 1.280000e+02 : f32
    %63 = vector.broadcast %cst_36 : f32 to vector<16x1xf32>
    %64 = arith.divf %62, %63 : vector<16x1xf32>
    %cst_37 = arith.constant 9.99999974E-6 : f32
    %65 = vector.broadcast %cst_37 : f32 to vector<16x1xf32>
    %66 = arith.addf %64, %65 : vector<16x1xf32>
    %67 = math.rsqrt %66 : vector<16x1xf32>
    %68 = vector.broadcast %67 : vector<16x1xf32> to vector<16x128xf32>
    %69 = arith.mulf %59, %68 : vector<16x128xf32>
    %c4 = arith.constant 4 : index
    %c0_38 = arith.constant 0 : index
    %c0_39 = arith.constant 0 : index
    %70 = vector.load %arg4[%c4, %c0_38, %c0_39] : memref<6x1x128xf32, #tpu.memory_space<vmem>>, vector<1x1x128xf32>
    %71 = vector.shape_cast %70 : vector<1x1x128xf32> to vector<1x128xf32>
    %72 = vector.broadcast %71 : vector<1x128xf32> to vector<16x128xf32>
    %73 = arith.mulf %69, %72 : vector<16x128xf32>
    %c5 = arith.constant 5 : index
    %c0_40 = arith.constant 0 : index
    %c0_41 = arith.constant 0 : index
    %74 = vector.load %arg4[%c5, %c0_40, %c0_41] : memref<6x1x128xf32, #tpu.memory_space<vmem>>, vector<1x1x128xf32>
    %75 = vector.shape_cast %74 : vector<1x1x128xf32> to vector<1x128xf32>
    %76 = vector.broadcast %75 : vector<1x128xf32> to vector<16x128xf32>
    %77 = arith.addf %73, %76 : vector<16x128xf32>
    %c0_42 = arith.constant 0 : index
    %c0_43 = arith.constant 0 : index
    %c0_44 = arith.constant 0 : index
    %78 = vector.load %arg5[%c0_42, %c0_43, %c0_44] : memref<4x128x128xf32, #tpu.memory_space<vmem>>, vector<1x128x128xf32>
    %79 = vector.shape_cast %78 : vector<1x128x128xf32> to vector<128x128xf32>
    %cst_45 = arith.constant dense<0.000000e+00> : vector<8x128xf32>
    %80 = tpu.matmul %5, %79, %cst_45 {dimension_numbers = #tpu.dot_dimension_numbers<[1], [0], [0], [1], [0, 0, 1, 1], [], []>} : vector<8x128xf32>, vector<128x128xf32>, vector<8x128xf32> -> vector<8x128xf32>
    %c0_46 = arith.constant 0 : index
    %c0_47 = arith.constant 0 : index
    %c0_48 = arith.constant 0 : index
    %81 = vector.load %arg6[%c0_46, %c0_47, %c0_48] : memref<6x1x128xf32, #tpu.memory_space<vmem>>, vector<1x1x128xf32>
    %82 = vector.shape_cast %81 : vector<1x1x128xf32> to vector<1x128xf32>
    %83 = vector.broadcast %82 : vector<1x128xf32> to vector<8x128xf32>
    %84 = arith.addf %80, %83 : vector<8x128xf32>
    %c1_49 = arith.constant 1 : index
    %c0_50 = arith.constant 0 : index
    %c0_51 = arith.constant 0 : index
    %85 = vector.load %arg5[%c1_49, %c0_50, %c0_51] : memref<4x128x128xf32, #tpu.memory_space<vmem>>, vector<1x128x128xf32>
    %86 = vector.shape_cast %85 : vector<1x128x128xf32> to vector<128x128xf32>
    %cst_52 = arith.constant dense<0.000000e+00> : vector<16x128xf32>
    %87 = tpu.matmul %2, %86, %cst_52 {dimension_numbers = #tpu.dot_dimension_numbers<[1], [0], [0], [1], [0, 0, 1, 1], [], []>} : vector<16x128xf32>, vector<128x128xf32>, vector<16x128xf32> -> vector<16x128xf32>
    %c1_53 = arith.constant 1 : index
    %c0_54 = arith.constant 0 : index
    %c0_55 = arith.constant 0 : index
    %88 = vector.load %arg6[%c1_53, %c0_54, %c0_55] : memref<6x1x128xf32, #tpu.memory_space<vmem>>, vector<1x1x128xf32>
    %89 = vector.shape_cast %88 : vector<1x1x128xf32> to vector<1x128xf32>
    %90 = vector.broadcast %89 : vector<1x128xf32> to vector<16x128xf32>
    %91 = arith.addf %87, %90 : vector<16x128xf32>
    %c2_56 = arith.constant 2 : index
    %c0_57 = arith.constant 0 : index
    %c0_58 = arith.constant 0 : index
    %92 = vector.load %arg5[%c2_56, %c0_57, %c0_58] : memref<4x128x128xf32, #tpu.memory_space<vmem>>, vector<1x128x128xf32>
    %93 = vector.shape_cast %92 : vector<1x128x128xf32> to vector<128x128xf32>
    %cst_59 = arith.constant dense<0.000000e+00> : vector<16x128xf32>
    %94 = tpu.matmul %2, %93, %cst_59 {dimension_numbers = #tpu.dot_dimension_numbers<[1], [0], [0], [1], [0, 0, 1, 1], [], []>} : vector<16x128xf32>, vector<128x128xf32>, vector<16x128xf32> -> vector<16x128xf32>
    %c2_60 = arith.constant 2 : index
    %c0_61 = arith.constant 0 : index
    %c0_62 = arith.constant 0 : index
    %95 = vector.load %arg6[%c2_60, %c0_61, %c0_62] : memref<6x1x128xf32, #tpu.memory_space<vmem>>, vector<1x1x128xf32>
    %96 = vector.shape_cast %95 : vector<1x1x128xf32> to vector<1x128xf32>
    %97 = vector.broadcast %96 : vector<1x128xf32> to vector<16x128xf32>
    %98 = arith.addf %94, %97 : vector<16x128xf32>
    %99 = vector.shape_cast %84 : vector<8x128xf32> to vector<8x8x16xf32>
    %100 = tpu.transpose %99, [1, 0, 2] : vector<8x8x16xf32> -> vector<8x8x16xf32>
    %101 = vector.shape_cast %91 : vector<16x128xf32> to vector<16x8x16xf32>
    %102 = tpu.transpose %101, [1, 0, 2] : vector<16x8x16xf32> -> vector<8x16x16xf32>
    %103 = vector.shape_cast %98 : vector<16x128xf32> to vector<16x8x16xf32>
    %104 = tpu.transpose %103, [1, 0, 2] : vector<16x8x16xf32> -> vector<8x16x16xf32>
    "tpu.trace_start"() <{level = 10 : i32, message = "hqd,hkd->hqk"}> : () -> ()
    %cst_63 = arith.constant dense<0.000000e+00> : vector<8x8x16xf32>
    %105 = tpu.matmul %100, %102, %cst_63 {dimension_numbers = #tpu.dot_dimension_numbers<[2], [2], [1], [1], [0, 0, 0, 1, 1, 1], [0], [0]>} : vector<8x8x16xf32>, vector<8x16x16xf32>, vector<8x8x16xf32> -> vector<8x8x16xf32>
    "tpu.trace_stop"() : () -> ()
    %cst_64 = arith.constant dense<0xFF800000> : vector<8x8xf32>
    %106 = vector.multi_reduction <maximumf>, %105, %cst_64 [2] : vector<8x8x16xf32> to vector<8x8xf32>
    %107 = vector.shape_cast %106 : vector<8x8xf32> to vector<8x8x1xf32>
    %108 = vector.broadcast %107 : vector<8x8x1xf32> to vector<8x8x16xf32>
    %109 = arith.subf %105, %108 : vector<8x8x16xf32>
    %110 = math.exp %109 : vector<8x8x16xf32>
    %cst_65 = arith.constant dense<0.000000e+00> : vector<8x8xf32>
    %111 = vector.multi_reduction <add>, %110, %cst_65 [2] : vector<8x8x16xf32> to vector<8x8xf32>
    %112 = vector.shape_cast %111 : vector<8x8xf32> to vector<8x8x1xf32>
    %113 = vector.broadcast %112 : vector<8x8x1xf32> to vector<8x8x16xf32>
    %114 = arith.divf %110, %113 : vector<8x8x16xf32>
    "tpu.trace_start"() <{level = 10 : i32, message = "hqk,hkd->hqd"}> : () -> ()
    %cst_66 = arith.constant dense<0.000000e+00> : vector<8x8x16xf32>
    %115 = tpu.matmul %114, %104, %cst_66 {dimension_numbers = #tpu.dot_dimension_numbers<[2], [1], [1], [2], [0, 0, 0, 1, 1, 2], [0], [0]>} : vector<8x8x16xf32>, vector<8x16x16xf32>, vector<8x8x16xf32> -> vector<8x8x16xf32>
    "tpu.trace_stop"() : () -> ()
    %116 = tpu.transpose %115, [1, 0, 2] : vector<8x8x16xf32> -> vector<8x8x16xf32>
    %117 = vector.shape_cast %116 : vector<8x8x16xf32> to vector<8x128xf32>
    %c3_67 = arith.constant 3 : index
    %c0_68 = arith.constant 0 : index
    %c0_69 = arith.constant 0 : index
    %118 = vector.load %arg5[%c3_67, %c0_68, %c0_69] : memref<4x128x128xf32, #tpu.memory_space<vmem>>, vector<1x128x128xf32>
    %119 = vector.shape_cast %118 : vector<1x128x128xf32> to vector<128x128xf32>
    %cst_70 = arith.constant dense<0.000000e+00> : vector<8x128xf32>
    %120 = tpu.matmul %117, %119, %cst_70 {dimension_numbers = #tpu.dot_dimension_numbers<[1], [0], [0], [1], [0, 0, 1, 1], [], []>} : vector<8x128xf32>, vector<128x128xf32>, vector<8x128xf32> -> vector<8x128xf32>
    %c3_71 = arith.constant 3 : index
    %c0_72 = arith.constant 0 : index
    %c0_73 = arith.constant 0 : index
    %121 = vector.load %arg6[%c3_71, %c0_72, %c0_73] : memref<6x1x128xf32, #tpu.memory_space<vmem>>, vector<1x1x128xf32>
    %122 = vector.shape_cast %121 : vector<1x1x128xf32> to vector<1x128xf32>
    %123 = vector.broadcast %122 : vector<1x128xf32> to vector<8x128xf32>
    %124 = arith.addf %120, %123 : vector<8x128xf32>
    %125 = arith.addf %124, %5 : vector<8x128xf32>
    %cst_74 = arith.constant dense<0.000000e+00> : vector<8xf32>
    %126 = vector.multi_reduction <add>, %125, %cst_74 [1] : vector<8x128xf32> to vector<8xf32>
    %127 = vector.shape_cast %126 : vector<8xf32> to vector<8x1xf32>
    %cst_75 = arith.constant 1.280000e+02 : f32
    %128 = vector.broadcast %cst_75 : f32 to vector<8x1xf32>
    %129 = arith.divf %127, %128 : vector<8x1xf32>
    %130 = vector.broadcast %129 : vector<8x1xf32> to vector<8x128xf32>
    %131 = arith.subf %125, %130 : vector<8x128xf32>
    %132 = arith.mulf %131, %131 : vector<8x128xf32>
    %cst_76 = arith.constant dense<0.000000e+00> : vector<8xf32>
    %133 = vector.multi_reduction <add>, %132, %cst_76 [1] : vector<8x128xf32> to vector<8xf32>
    %134 = vector.shape_cast %133 : vector<8xf32> to vector<8x1xf32>
    %cst_77 = arith.constant 1.280000e+02 : f32
    %135 = vector.broadcast %cst_77 : f32 to vector<8x1xf32>
    %136 = arith.divf %134, %135 : vector<8x1xf32>
    %cst_78 = arith.constant 9.99999974E-6 : f32
    %137 = vector.broadcast %cst_78 : f32 to vector<8x1xf32>
    %138 = arith.addf %136, %137 : vector<8x1xf32>
    %139 = math.rsqrt %138 : vector<8x1xf32>
    %140 = vector.broadcast %139 : vector<8x1xf32> to vector<8x128xf32>
    %141 = arith.mulf %131, %140 : vector<8x128xf32>
    %c4_79 = arith.constant 4 : index
    %c0_80 = arith.constant 0 : index
    %c0_81 = arith.constant 0 : index
    %142 = vector.load %arg6[%c4_79, %c0_80, %c0_81] : memref<6x1x128xf32, #tpu.memory_space<vmem>>, vector<1x1x128xf32>
    %143 = vector.shape_cast %142 : vector<1x1x128xf32> to vector<1x128xf32>
    %144 = vector.broadcast %143 : vector<1x128xf32> to vector<8x128xf32>
    %145 = arith.mulf %141, %144 : vector<8x128xf32>
    %c5_82 = arith.constant 5 : index
    %c0_83 = arith.constant 0 : index
    %c0_84 = arith.constant 0 : index
    %146 = vector.load %arg6[%c5_82, %c0_83, %c0_84] : memref<6x1x128xf32, #tpu.memory_space<vmem>>, vector<1x1x128xf32>
    %147 = vector.shape_cast %146 : vector<1x1x128xf32> to vector<1x128xf32>
    %148 = vector.broadcast %147 : vector<1x128xf32> to vector<8x128xf32>
    %149 = arith.addf %145, %148 : vector<8x128xf32>
    %150 = tpu.transpose %77, [1, 0] : vector<16x128xf32> -> vector<128x16xf32>
    %c0_85 = arith.constant 0 : index
    %c0_86 = arith.constant 0 : index
    %c0_87 = arith.constant 0 : index
    %151 = vector.load %arg7[%c0_85, %c0_86, %c0_87] : memref<1x128x16xf32, #tpu.memory_space<vmem>>, vector<1x128x16xf32>
    %152 = vector.shape_cast %151 : vector<1x128x16xf32> to vector<128x16xf32>
    %153 = vector.shape_cast %150 : vector<128x16xf32> to vector<1x128x16xf32>
    tpu.vector_store %arg7[%c0_85, %c0_86, %c0_87], %153 {strides = array<i32>} : memref<1x128x16xf32, #tpu.memory_space<vmem>>, vector<1x128x16xf32>,
    %154 = tpu.transpose %149, [1, 0] : vector<8x128xf32> -> vector<128x8xf32>
    %c0_88 = arith.constant 0 : index
    %c0_89 = arith.constant 0 : index
    %c0_90 = arith.constant 0 : index
    %155 = vector.load %arg8[%c0_88, %c0_89, %c0_90] : memref<1x128x8xf32, #tpu.memory_space<vmem>>, vector<1x128x8xf32>
    %156 = vector.shape_cast %155 : vector<1x128x8xf32> to vector<128x8xf32>
    %157 = vector.shape_cast %154 : vector<128x8xf32> to vector<1x128x8xf32>
    tpu.vector_store %arg8[%c0_88, %c0_89, %c0_90], %157 {strides = array<i32>} : memref<1x128x8xf32, #tpu.memory_space<vmem>>, vector<1x128x8xf32>,
    return
  }
  func.func @transform_0(%arg0: i32) -> (i32, i32, i32) {
    %c0_i32 = arith.constant 0 : i32
    %c0_i32_0 = arith.constant 0 : i32
    %c0_i32_1 = arith.constant 0 : i32
    return %arg0, %c0_i32, %c0_i32_0 : i32, i32, i32
  }
  func.func @transform_1(%arg0: i32) -> (i32, i32, i32) {
    %c0_i32 = arith.constant 0 : i32
    %c0_i32_0 = arith.constant 0 : i32
    %c0_i32_1 = arith.constant 0 : i32
    return %arg0, %c0_i32, %c0_i32_0 : i32, i32, i32
  }
  func.func @transform_2(%arg0: i32) -> (i32, i32, i32) {
    %c0_i32 = arith.constant 0 : i32
    %c0_i32_0 = arith.constant 0 : i32
    %c0_i32_1 = arith.constant 0 : i32
    %c0_i32_2 = arith.constant 0 : i32
    return %c0_i32, %c0_i32_0, %c0_i32_1 : i32, i32, i32
  }
  func.func @transform_3(%arg0: i32) -> (i32, i32, i32) {
    %c0_i32 = arith.constant 0 : i32
    %c0_i32_0 = arith.constant 0 : i32
    %c0_i32_1 = arith.constant 0 : i32
    %c0_i32_2 = arith.constant 0 : i32
    return %c0_i32, %c0_i32_0, %c0_i32_1 : i32, i32, i32
  }
  func.func @transform_4(%arg0: i32) -> (i32, i32, i32) {
    %c0_i32 = arith.constant 0 : i32
    %c0_i32_0 = arith.constant 0 : i32
    %c0_i32_1 = arith.constant 0 : i32
    %c0_i32_2 = arith.constant 0 : i32
    return %c0_i32, %c0_i32_0, %c0_i32_1 : i32, i32, i32
  }
  func.func @transform_5(%arg0: i32) -> (i32, i32, i32) {
    %c0_i32 = arith.constant 0 : i32
    %c0_i32_0 = arith.constant 0 : i32
    %c0_i32_1 = arith.constant 0 : i32
    %c0_i32_2 = arith.constant 0 : i32
    return %c0_i32, %c0_i32_0, %c0_i32_1 : i32, i32, i32
  }
  func.func @transform_6(%arg0: i32) -> (i32, i32, i32) {
    %c0_i32 = arith.constant 0 : i32
    %c0_i32_0 = arith.constant 0 : i32
    %c0_i32_1 = arith.constant 0 : i32
    return %arg0, %c0_i32, %c0_i32_0 : i32, i32, i32
  }
  func.func @transform_7(%arg0: i32) -> (i32, i32, i32) {
    %c0_i32 = arith.constant 0 : i32
    %c0_i32_0 = arith.constant 0 : i32
    %c0_i32_1 = arith.constant 0 : i32
    return %arg0, %c0_i32, %c0_i32_0 : i32, i32, i32
  }
}

</mosaic_0001>

<bundles_post_ra>
// kernel: bidirectional_cross_attention.1
= control target key start
LH: loop header
LB: loop body
LE: loop exit
PB: predicated region body
PF: predicated region fallthrough
CT: control target
= control target key end

     0   :  { %s5971_s24 = smov 0   ;;  %s8767_s0 = inlined_call_operand.vmem [shape: f32[2,128,16], index: 0, kind: input, shape index: {}]   ;;  %s8768_s1 = inlined_call_operand.vmem [shape: f32[2,128,8], index: 1, kind: input, shape index: {}]   ;;  %s8769_s2 = inlined_call_operand.vmem [shape: f32[4,128,128], index: 2, kind: input, shape index: {}]   ;;  %s8770_s3 = inlined_call_operand.vmem [shape: f32[6,1,128], index: 3, kind: input, shape index: {}]   ;;  %s8771_s4 = inlined_call_operand.vmem [shape: f32[4,128,128], index: 4, kind: input, shape index: {}]   ;;  %s8772_s5 = inlined_call_operand.vmem [shape: f32[6,1,128], index: 5, kind: input, shape index: {}]   ;;  %s8773_s6 = inlined_call_operand.vmem [shape: f32[2,128,16], index: 6, kind: output, shape index: {0}]   ;;  %s8774_s7 = inlined_call_operand.vmem [shape: f32[2,128,8], index: 7, kind: output, shape index: {1}]  }
   0x1 LB: > { %s5524_s25 = sadd.s32 4294967295, %s5919_s24   ;;  %p5528_p0 = scmp.ge.s32.totalorder %s5919_s24, 1  ;;  %s5919_s24 = sphi %s5971_s24, %s18_s24  }
   0x2   : > { %p250_p1 = scmp.lt.s32.totalorder %s5919_s24, 3 }
   0x4   : > { %p251_p2 = pnand %p5528_p0, %p250_p1 }
   0x5   : > { %p292_p3 = scmp.lt.s32.totalorder (!%p251_p2), %s5524_s25, 1  ;;  %s5921_s13 = smov (!%p251_p2), 96  }
   0x6   : > { %254 = sbr.rel (%p251_p2) target bundleno = 2814 (0xafe), region = 44  ;;  %s5922_s14 = smov (!%p251_p2), 112  }
   0x7   : > { %s5923_s15 = smov (!%p251_p2), 32   ;;  %s5924_s18 = smov (!%p251_p2), 80  }
   0x8   : > { %s5925_s19 = smov (!%p251_p2), 64   ;;  %s5926_s20 = smov (!%p251_p2), 48  }
   0x9   : > { %s5927_s21 = smov (!%p251_p2), 16  }
   0xb   : > { %s8816_s25 = smov (!%p292_p3, %s5524_s25), 1  ;;  %v423_v24 = vld [vmem:[%s8769_s2 + $0x78] sm:$0xff]  ;;  %v422_v27 = vld [vmem:[%s8769_s2 + $0x70] sm:$0xff]  ;;  %v421_v30 = vld [vmem:[%s8769_s2 + $0x68] sm:$0xff]  ;;  %vm580_vm0 = vcmask 1047556   ;;  %vm1520_vm1 = vcmask 130048  }
   0xc   : > { %s5979_s26 = sshll.u32 %s8816_s25, 7  ;;  %v5552_v25 = vld [vmem:[%s8769_s2 + $0xf8] sm:$0xff]  ;;  %428 = vmatpush.msra.mxu0 %v423_v24  ;;  %v5551_v28 = vld [vmem:[%s8769_s2 + $0xf0] sm:$0xff]  ;;  %v5550_v31 = vld [vmem:[%s8769_s2 + $0xe8] sm:$0xff]  ;;  %vm8775_vm2 = vcmask 64512  }
   0xd   : > { %s5985_s29 = scalar_lea.vmem %s8768_s1, %s5979_s26  ;;  %s5991_s9 = scalar_lea.vmem %s8767_s0, %s5979_s26  ;;  %v5569_v26 = vld [vmem:[%s8769_s2 + $0x178] sm:$0xff]  ;;  %473 = vmatpush.msra.mxu1 %v5552_v25  ;;  %v5568_v29 = vld [vmem:[%s8769_s2 + $0x170] sm:$0xff]  ;;  %v5567_v32 = vld [vmem:[%s8769_s2 + $0x168] sm:$0xff] }
   0xe   : > { %v360_v0 = vld [vmem:[%s5985_s29] sm:$0xff]  ;;  %v361_v2 = vld [vmem:[%s5985_s29 + $0x8] sm:$0xff]  ;;  %v362_v4 = vld [vmem:[%s5985_s29 + $0x10] sm:$0xff]  ;;  %515 = vmatpush.msra.mxu2 %v5569_v26  ;;  %429 = vmatpush.msra.mxu0 %v422_v27  ;;  %s8708_s8 = scalar_lea.vmem %s8774_s7, %s5979_s26 }
   0xf   : > { %v312_v1 = vld [vmem:[%s5991_s9] sm:$0xff]  ;;  %376 = vxpose.xlu1.b32.start [1/16] (narrow) %v360_v0, 8  ;;  %v313_v3 = vld [vmem:[%s5991_s9 + $0x8] sm:$0xff]  ;;  %v314_v5 = vld [vmem:[%s5991_s9 + $0x10] sm:$0xff]  ;;  %474 = vmatpush.msra.mxu1 %v5551_v28 }
  0x10   : > { %328 = vxpose.xlu0.b32.start [1/16] (narrow) %v312_v1, 16  ;;  %v363_v6 = vld [vmem:[%s5985_s29 + $0x18] sm:$0xff]  ;;  %v364_v8 = vld [vmem:[%s5985_s29 + $0x20] sm:$0xff]  ;;  %v365_v10 = vld [vmem:[%s5985_s29 + $0x28] sm:$0xff]  ;;  %516 = vmatpush.msra.mxu2 %v5568_v29 }
  0x11   : > { %v315_v7 = vld [vmem:[%s5991_s9 + $0x18] sm:$0xff]  ;;  %v316_v9 = vld [vmem:[%s5991_s9 + $0x20] sm:$0xff]  ;;  %v317_v11 = vld [vmem:[%s5991_s9 + $0x28] sm:$0xff]  ;;  %430 = vmatpush.msra.mxu0 %v421_v30  ;;  %475 = vmatpush.msra.mxu1 %v5550_v31 }
  0x12   : > { %v366_v12 = vld [vmem:[%s5985_s29 + $0x30] sm:$0xff]  ;;  %v367_v14 = vld [vmem:[%s5985_s29 + $0x38] sm:$0xff]  ;;  %v368_v16 = vld [vmem:[%s5985_s29 + $0x40] sm:$0xff]  ;;  %517 = vmatpush.msra.mxu2 %v5567_v32 }
  0x13   : > { %v318_v13 = vld [vmem:[%s5991_s9 + $0x30] sm:$0xff]  ;;  %v319_v15 = vld [vmem:[%s5991_s9 + $0x38] sm:$0xff]  ;;  %v320_v17 = vld [vmem:[%s5991_s9 + $0x40] sm:$0xff] }
  0x14   : > { %v369_v18 = vld [vmem:[%s5985_s29 + $0x48] sm:$0xff]  ;;  %v370_v20 = vld [vmem:[%s5985_s29 + $0x50] sm:$0xff]  ;;  %v371_v22 = vld [vmem:[%s5985_s29 + $0x58] sm:$0xff] }
  0x15   : > { %v321_v19 = vld [vmem:[%s5991_s9 + $0x48] sm:$0xff]  ;;  %v322_v21 = vld [vmem:[%s5991_s9 + $0x50] sm:$0xff]  ;;  %v323_v23 = vld [vmem:[%s5991_s9 + $0x58] sm:$0xff] }
  0x16   : > { %v420_v33 = vld [vmem:[%s8769_s2 + $0x60] sm:$0xff]  ;;  %v419_v38 = vld [vmem:[%s8769_s2 + $0x58] sm:$0xff]  ;;  %v418_v41 = vld [vmem:[%s8769_s2 + $0x50] sm:$0xff] }
  0x17   : > { %377 = vxpose.xlu1.b32.cont [2/16] (narrow) %v361_v2, 8  ;;  %v5549_v34 = vld [vmem:[%s8769_s2 + $0xe0] sm:$0xff]  ;;  %431 = vmatpush.msra.mxu0 %v420_v33  ;;  %v5548_v39 = vld [vmem:[%s8769_s2 + $0xd8] sm:$0xff]  ;;  %v5547_v42 = vld [vmem:[%s8769_s2 + $0xd0] sm:$0xff] }
  0x18   : > { %329 = vxpose.xlu0.b32.cont [2/16] (narrow) %v313_v3, 16  ;;  %v372_v35 = vld [vmem:[%s5985_s29 + $0x60] sm:$0xff]  ;;  %476 = vmatpush.msra.mxu1 %v5549_v34  ;;  %v5565_v40 = vld [vmem:[%s8769_s2 + $0x158] sm:$0xff]  ;;  %v5564_v43 = vld [vmem:[%s8769_s2 + $0x150] sm:$0xff] }
  0x19   : > { %v324_v36 = vld [vmem:[%s5991_s9 + $0x60] sm:$0xff]  ;;  %432 = vmatpush.msra.mxu0 %v419_v38  ;;  %v417_v44 = vld [vmem:[%s8769_s2 + $0x48] sm:$0xff]  ;;  %v415_v52 = vld [vmem:[%s8769_s2 + $0x38] sm:$0xff] }
  0x1a   : > { %v5566_v37 = vld [vmem:[%s8769_s2 + $0x160] sm:$0xff]  ;;  %477 = vmatpush.msra.mxu1 %v5548_v39  ;;  %v5546_v45 = vld [vmem:[%s8769_s2 + $0xc8] sm:$0xff]  ;;  %v5544_v53 = vld [vmem:[%s8769_s2 + $0xb8] sm:$0xff] }
  0x1b   : > { %518 = vmatpush.msra.mxu2 %v5566_v37  ;;  %433 = vmatpush.msra.mxu0 %v418_v41  ;;  %v5563_v46 = vld [vmem:[%s8769_s2 + $0x148] sm:$0xff]  ;;  %v416_v47 = vld [vmem:[%s8769_s2 + $0x40] sm:$0xff]  ;;  %v5561_v54 = vld [vmem:[%s8769_s2 + $0x138] sm:$0xff] }
  0x1c   : > { %478 = vmatpush.msra.mxu1 %v5547_v42  ;;  %v373_v48 = vld [vmem:[%s5985_s29 + $0x68] sm:$0xff]  ;;  %v5545_v50 = vld [vmem:[%s8769_s2 + $0xc0] sm:$0xff]  ;;  %v414_v55 = vld [vmem:[%s8769_s2 + $0x30] sm:$0xff] }
  0x1d   : > { %519 = vmatpush.msra.mxu2 %v5565_v40  ;;  %v325_v49 = vld [vmem:[%s5991_s9 + $0x68] sm:$0xff]  ;;  %434 = vmatpush.msra.mxu0 %v417_v44  ;;  %v5562_v51 = vld [vmem:[%s8769_s2 + $0x140] sm:$0xff]  ;;  %v5543_v56 = vld [vmem:[%s8769_s2 + $0xb0] sm:$0xff] }
  0x1e   : > { %479 = vmatpush.msra.mxu1 %v5546_v45  ;;  %v5560_v57 = vld [vmem:[%s8769_s2 + $0x130] sm:$0xff]  ;;  %v413_v58 = vld [vmem:[%s8769_s2 + $0x28] sm:$0xff]  ;;  %v412_v63 = vld [vmem:[%s8769_s2 + $0x20] sm:$0xff] }
  0x1f   : > { %378 = vxpose.xlu1.b32.cont [3/16] (narrow) %v362_v4, 8  ;;  %520 = vmatpush.msra.mxu2 %v5564_v43  ;;  %v5542_v59 = vld [vmem:[%s8769_s2 + $0xa8] sm:$0xff]  ;;  %v374_v61 = vld [vmem:[%s5985_s29 + $0x70] sm:$0xff]  ;;  %v5541_v0 = vld [vmem:[%s8769_s2 + $0xa0] sm:$0xff] }
  0x20   : > { %330 = vxpose.xlu0.b32.cont [3/16] (narrow) %v314_v5, 16  ;;  %435 = vmatpush.msra.mxu0 %v416_v47  ;;  %v5559_v60 = vld [vmem:[%s8769_s2 + $0x128] sm:$0xff]  ;;  %v326_v62 = vld [vmem:[%s5991_s9 + $0x70] sm:$0xff]  ;;  %v5558_v1 = vld [vmem:[%s8769_s2 + $0x120] sm:$0xff] }
  0x21   : > { %521 = vmatpush.msra.mxu2 %v5563_v46  ;;  %480 = vmatpush.msra.mxu1 %v5545_v50  ;;  %v411_v2 = vld [vmem:[%s8769_s2 + $0x18] sm:$0xff]  ;;  %v410_v5 = vld [vmem:[%s8769_s2 + $0x10] sm:$0xff]  ;;  %v5799_v25 = vld [vmem:[%s8770_s3 + $0x2] ss:$0 sm:$0xff]  ;;  %v5929_v50 = vmov 1934713408  }
  0x22   : > { %436 = vmatpush.msra.mxu0 %v415_v52  ;;  %v5540_v3 = vld [vmem:[%s8769_s2 + $0x98] sm:$0xff] }
  0x23   : > { %522 = vmatpush.msra.mxu2 %v5562_v51  ;;  %481 = vmatpush.msra.mxu1 %v5544_v53  ;;  %v5557_v4 = vld [vmem:[%s8769_s2 + $0x118] sm:$0xff]  ;;  %v633_v51 = vunpack.c.l.s4 %v5929_v50 }
  0x24   : > { %437 = vmatpush.msra.mxu0 %v414_v55 }
  0x25   : > { %523 = vmatpush.msra.mxu2 %v5561_v54  ;;  %482 = vmatpush.msra.mxu1 %v5543_v56 }
  0x26   : > { %438 = vmatpush.msra.mxu0 %v413_v58  ;;  %v6242_v58 = vunpack.c.0.s8 %v633_v51 }
  0x27   : > { %379 = vxpose.xlu1.b32.cont [4/16] (narrow) %v363_v6, 8  ;;  %524 = vmatpush.msra.mxu2 %v5560_v57  ;;  %v5539_v6 = vld [vmem:[%s8769_s2 + $0x90] sm:$0xff] }
  0x28   : > { %331 = vxpose.xlu0.b32.cont [4/16] (narrow) %v315_v7, 16  ;;  %483 = vmatpush.msra.mxu1 %v5542_v59  ;;  %v5556_v7 = vld [vmem:[%s8769_s2 + $0x110] sm:$0xff] }
  0x29   : > { %525 = vmatpush.msra.mxu2 %v5559_v60  ;;  %439 = vmatpush.msra.mxu0 %v412_v63 }
  0x2a   : > { %484 = vmatpush.msra.mxu1 %v5541_v0 }
  0x2b   : > { %526 = vmatpush.msra.mxu2 %v5558_v1  ;;  %440 = vmatpush.msra.mxu0 %v411_v2 }
  0x2c   : > { %485 = vmatpush.msra.mxu1 %v5540_v3 }
  0x2d   : > { %527 = vmatpush.msra.mxu2 %v5557_v4  ;;  %441 = vmatpush.msra.mxu0 %v410_v5 }
  0x2e   : > { %486 = vmatpush.msra.mxu1 %v5539_v6 }
  0x2f   : > { %380 = vxpose.xlu1.b32.cont [5/16] (narrow) %v364_v8, 8  ;;  %v409_v8 = vld [vmem:[%s8769_s2 + $0x8] sm:$0xff]  ;;  %528 = vmatpush.msra.mxu2 %v5556_v7 }
  0x30   : > { %332 = vxpose.xlu0.b32.cont [5/16] (narrow) %v316_v9, 16  ;;  %v5538_v9 = vld [vmem:[%s8769_s2 + $0x88] sm:$0xff]  ;;  %442 = vmatpush.msra.mxu0 %v409_v8 }
  0x31   : > { %487 = vmatpush.msra.mxu1 %v5538_v9 }
  0x37   : > { %381 = vxpose.xlu1.b32.cont [6/16] (narrow) %v365_v10, 8  ;;  %v375_v10 = vld [vmem:[%s5985_s29 + $0x78] sm:$0xff] }
  0x38   : > { %333 = vxpose.xlu0.b32.cont [6/16] (narrow) %v317_v11, 16  ;;  %v327_v11 = vld [vmem:[%s5991_s9 + $0x78] sm:$0xff] }
  0x3f   : > { %382 = vxpose.xlu1.b32.cont [7/16] (narrow) %v366_v12, 8  ;;  %v5555_v12 = vld [vmem:[%s8769_s2 + $0x108] sm:$0xff] }
  0x40   : > { %334 = vxpose.xlu0.b32.cont [7/16] (narrow) %v318_v13, 16  ;;  %v408_v13 = vld [vmem:[%s8769_s2] sm:$0xff]  ;;  %529 = vmatpush.msra.mxu2 %v5555_v12 }
  0x41   : > { %443 = vmatpush.msra.mxu0 %v408_v13 }
  0x47   : > { %383 = vxpose.xlu1.b32.cont [8/16] (narrow) %v367_v14, 8  ;;  %v5537_v14 = vld [vmem:[%s8769_s2 + $0x80] sm:$0xff] }
  0x48   : > { %335 = vxpose.xlu0.b32.cont [8/16] (narrow) %v319_v15, 16  ;;  %v5554_v15 = vld [vmem:[%s8769_s2 + $0x100] sm:$0xff]  ;;  %488 = vmatpush.msra.mxu1 %v5537_v14 }
  0x49   : > { %530 = vmatpush.msra.mxu2 %v5554_v15 }
  0x4f   : > { %384 = vxpose.xlu1.b32.cont [9/16] (narrow) %v368_v16, 8 }
  0x50   : > { %336 = vxpose.xlu0.b32.cont [9/16] (narrow) %v320_v17, 16 }
  0x57   : > { %385 = vxpose.xlu1.b32.cont [10/16] (narrow) %v369_v18, 8 }
  0x58   : > { %337 = vxpose.xlu0.b32.cont [10/16] (narrow) %v321_v19, 16  ;;  %v5797_v19 = vld [vmem:[%s8770_s3] ss:$0 sm:$0xff] }
  0x5f   : > { %386 = vxpose.xlu1.b32.cont [11/16] (narrow) %v370_v20, 8  ;;  %v5798_v20 = vld [vmem:[%s8770_s3 + $0x1] ss:$0 sm:$0xff] }
  0x60   : > { %338 = vxpose.xlu0.b32.cont [11/16] (narrow) %v322_v21, 16 }
  0x67   : > { %387 = vxpose.xlu1.b32.cont [12/16] (narrow) %v371_v22, 8 }
  0x68   : > { %339 = vxpose.xlu0.b32.cont [12/16] (narrow) %v323_v23, 16 }
  0x6f   : > { %388 = vxpose.xlu1.b32.cont [13/16] (narrow) %v372_v35, 8 }
  0x70   : > { %340 = vxpose.xlu0.b32.cont [13/16] (narrow) %v324_v36, 16  ;;  %v5928_v36 = vmov 1983009808  }
  0x71   : > { %v585_v37 = vunpack.c.l.s4 %v5928_v36 }
  0x73   : > { %v6231_v42 = vunpack.c.0.s8 %v585_v37 }
  0x77   : > { %389 = vxpose.xlu1.b32.cont [14/16] (narrow) %v373_v48, 8 }
  0x78   : > { %341 = vxpose.xlu0.b32.cont [14/16] (narrow) %v325_v49, 16 }
  0x7f   : > { %390 = vxpose.xlu1.b32.cont [15/16] (narrow) %v374_v61, 8 }
  0x80   : > { %342 = vxpose.xlu0.b32.cont [15/16] (narrow) %v326_v62, 16 }
  0x87   : > { %391 = vxpose.xlu1.b32.end [16/16] (narrow) %v375_v10, 8 }
  0x88   : > { %343 = vxpose.xlu0.b32.end [16/16] (narrow) %v327_v11, 16 }
  0xb3   : > { %v6169_v16 = vpop.trf.xlu1 }
  0xb4   : > { %v6171_v17 = vpop.trf.xlu0  ;;  %489 = vmatmul.f32.vlgmr.msra.gmra.mxu1 %v6169_v16  ;;  %531 = vmatmul.f32.vlgmr.msra.gmra.mxu2 %v6169_v16 }
  0xb5   : > { %444 = vmatmul.f32.vlgmr.msra.gmra.mxu0 %v6171_v17 }
  0xbc   : > { %v6176_v18 = vpop.trf.xlu0 }
  0xbd   : > { %447 = vmatmul.f32.gmra.mxu0 %v6176_v18 }
 0x131   : > { %v490_v22 = vpop.f32.mrf.mxu1 }
 0x132   : > { %v445_v21 = vpop.f32.mrf.mxu0  ;;  %v491_v24 = vadd.f32 %v5798_v20, %v490_v22 }
 0x133   : > { %v6185_v23 = vadd.f32 %v5797_v19, %v445_v21 }
 0x134   : > { %1032 = vrot.lane.b32.xlu2 %v491_v24, %s5921_s13  ;;  %v1052_v43 = vrot.slane %v491_v24, 4 }
 0x135   : > { %537 = vrot.lane.b32.xlu1 %v6185_v23, %s5922_s14  ;;  %567 = vrot.lane.b32.xlu0 %v6185_v23, %s5923_s15 }
 0x137   : > { %v532_v26 = vpop.f32.mrf.mxu2 }
 0x138   : > { %v6195_v27 = vadd.f32 %v5799_v25, %v532_v26 }
 0x13a   : > { %v448_v28 = vpop.f32.mrf.mxu0 }
 0x13b   : > { %v6217_v29 = vadd.f32 %v5797_v19, %v448_v28 }
 0x13c   : > { %1035 = vrot.lane.b32.xlu2 %v491_v24, %s5924_s18 }
 0x13d   : > { %1284 = vrot.lane.b32.xlu1 %v6195_v27, %s5925_s19  ;;  %1287 = vrot.lane.b32.xlu0 %v6195_v27, %s5926_s20 }
 0x144   : > { %1044 = vrot.lane.b32.xlu2 %v491_v24, %s5923_s15 }
 0x145   : > { %1275 = vrot.lane.b32.xlu0 %v6195_v27, %s5922_s14 }
 0x14c   : > { %1029 = vrot.lane.b32.xlu2 %v491_v24, %s5922_s14 }
 0x154   : > { %1038 = vrot.lane.b32.xlu2 %v491_v24, %s5925_s19 }
 0x15c   : > { %1047 = vrot.lane.b32.xlu2 %v491_v24, %s5927_s21 }
 0x164   : > { %1041 = vrot.lane.b32.xlu2 %v491_v24, %s5926_s20 }
 0x16c   : > { %555 = vrot.lane.b32.xlu2 %v6185_v23, %s5925_s19 }
 0x174   : > { %561 = vrot.lane.b32.xlu2 %v6185_v23, %s5926_s20 }
 0x17c   : > { %543 = vrot.lane.b32.xlu2 %v6185_v23, %s5921_s13 }
 0x184   : > { %573 = vrot.lane.b32.xlu2 %v6185_v23, %s5927_s21 }
 0x18c   : > { %545 = vrot.lane.b32.xlu2 %v6217_v29, %s5921_s13 }
 0x18e   : > { %v1033_v30 = vpop.permute.xlu2 %1032 }
 0x18f   : > { %v1050_v35 = vrot.slane %v1033_v30, 4  ;;  %v1053_v48 = vsel %vm580_vm0, %v1033_v30, %v1052_v43 }
 0x190   : > { %v1061_v55 = vperm.slane %v1053_v48, %v6231_v42 }
 0x191   : > { %v1051_v40 = vsel %vm580_vm0, %v1050_v35, %v491_v24 }
 0x192   : > { %v1057_v44 = vperm.slane %v1051_v40, %v6231_v42  ;;  %v1112_v0 = vrot.slane %v1061_v55, 4 }
 0x194   : > { %551 = vrot.lane.b32.xlu2 %v6217_v29, %s5924_s18  ;;  %v1100_v56 = vrot.slane %v1057_v44, 4 }
 0x196   : > { %v1036_v31 = vpop.permute.xlu2 %1035 }
 0x197   : > { %v1062_v38 = vrot.slane %v1036_v31, 4 }
 0x19c   : > { %569 = vrot.lane.b32.xlu2 %v6217_v29, %s5923_s15 }
 0x19e   : > { %v1045_v32 = vpop.permute.xlu2 %1044 }
 0x19f   : > { %v1074_v49 = vrot.slane %v1045_v32, 4 }
 0x1a4   : > { %539 = vrot.lane.b32.xlu2 %v6217_v29, %s5922_s14 }
 0x1a6   : > { %v1030_v33 = vpop.permute.xlu2 %1029 }
 0x1a7   : > { %v1064_v39 = vrot.slane %v1030_v33, 4  ;;  %v1063_v41 = vsel %vm580_vm0, %v1062_v38, %v1030_v33 }
 0x1a8   : > { %v1069_v46 = vperm.slane %v1063_v41, %v6231_v42 }
 0x1a9   : > { %v1065_v45 = vsel %vm580_vm0, %v1036_v31, %v1064_v39 }
 0x1aa   : > { %v1073_v53 = vperm.slane %v1065_v45, %v6231_v42  ;;  %v1098_v57 = vrot.slane %v1069_v46, 4  ;;  %v1101_v60 = vsel %vm580_vm0, %v1069_v46, %v1100_v56 }
 0x1ab   : > { %v1109_v4 = vperm.slane %v1101_v60, %v6242_v58 }
 0x1ac   : > { %557 = vrot.lane.b32.xlu2 %v6217_v29, %s5925_s19  ;;  %v1110_v62 = vrot.slane %v1073_v53, 4  ;;  %v1099_v1 = vsel %vm580_vm0, %v1098_v57, %v1057_v44  ;;  %v1113_v7 = vsel %vm580_vm0, %v1073_v53, %v1112_v0 }
 0x1ad   : > { %v1105_v10 = vperm.slane %v1099_v1, %v6242_v58  ;;  %v1121_v20 = vperm.slane %v1113_v7, %v6242_v58  ;;  %v1152_v21 = vrot.slane %v1109_v4, 4 }
 0x1ae   : > { %v1039_v34 = vpop.permute.xlu2 %1038  ;;  %v1111_v11 = vsel %vm580_vm0, %v1110_v62, %v1061_v55 }
 0x1af   : > { %v1076_v52 = vrot.slane %v1039_v34, 4  ;;  %v1075_v54 = vsel %vm580_vm0, %v1074_v49, %v1039_v34  ;;  %v1117_v24 = vperm.slane %v1111_v11, %v6242_v58  ;;  %v1148_v30 = vrot.slane %v1105_v10, 4 }
 0x1b0   : > { %v1081_v61 = vperm.slane %v1075_v54, %v6231_v42  ;;  %v1160_v41 = vrot.slane %v1121_v20, 4 }
 0x1b1   : > { %v1077_v59 = vsel %vm580_vm0, %v1045_v32, %v1076_v52  ;;  %v1156_v46 = vrot.slane %v1117_v24, 4 }
 0x1b2   : > { %v1085_v2 = vperm.slane %v1077_v59, %v6231_v42  ;;  %v1124_v8 = vrot.slane %v1081_v61, 4 }
 0x1b4   : > { %575 = vrot.lane.b32.xlu2 %v6217_v29, %s5927_s21  ;;  %v1136_v13 = vrot.slane %v1085_v2, 4 }
 0x1b6   : > { %v1048_v47 = vpop.permute.xlu2 %1047 }
 0x1b7   : > { %v1086_v63 = vrot.slane %v1048_v47, 4 }
 0x1bc   : > { %563 = vrot.lane.b32.xlu2 %v6217_v29, %s5926_s20 }
 0x1be   : > { %v1042_v3 = vpop.permute.xlu2 %1041 }
 0x1bf   : > { %v1087_v5 = vsel %vm580_vm0, %v1086_v63, %v1042_v3  ;;  %v1088_v6 = vrot.slane %v1042_v3, 4 }
 0x1c0   : > { %v1093_v9 = vperm.slane %v1087_v5, %v6231_v42 }
 0x1c1   : > { %v1089_v12 = vsel %vm580_vm0, %v1048_v47, %v1088_v6 }
 0x1c2   : > { %v1097_v14 = vperm.slane %v1089_v12, %v6231_v42  ;;  %v1122_v15 = vrot.slane %v1093_v9, 4  ;;  %v1125_v19 = vsel %vm580_vm0, %v1093_v9, %v1124_v8 }
 0x1c3   : > { %v1133_v22 = vperm.slane %v1125_v19, %v6242_v58 }
 0x1c4   : > { %v1123_v25 = vsel %vm580_vm0, %v1122_v15, %v1081_v61  ;;  %v1134_v26 = vrot.slane %v1097_v14, 4  ;;  %v1137_v28 = vsel %vm580_vm0, %v1097_v14, %v1136_v13  ;;  %549 = vrot.lane.b32.xlu2 %v6185_v23, %s5924_s18 }
 0x1c5   : > { %v1129_v31 = vperm.slane %v1123_v25, %v6242_v58  ;;  %v1145_v32 = vperm.slane %v1137_v28, %v6242_v58  ;;  %v1150_v33 = vrot.slane %v1133_v22, 4  ;;  %v1153_v35 = vsel %vm580_vm0, %v1133_v22, %v1152_v21 }
 0x1c6   : > { %v1135_v34 = vsel %vm580_vm0, %v1134_v26, %v1085_v2  ;;  %v6271_v36 = vpop.permute.xlu2 %555  ;;  %v1174_v48 = vrot.slane %v1153_v35, 4 }
 0x1c7   : > { %v1141_v37 = vperm.slane %v1135_v34, %v6242_v58  ;;  %v1146_v38 = vrot.slane %v1129_v31, 4  ;;  %v1149_v39 = vsel %vm580_vm0, %v1129_v31, %v1148_v30  ;;  %v1151_v40 = vsel %vm580_vm0, %v1150_v33, %v1109_v4 }
 0x1c8   : > { %v1158_v43 = vrot.slane %v1145_v32, 4  ;;  %v1162_v44 = vrot.slane %v1151_v40, 4  ;;  %v1176_v45 = vrot.slane %v1149_v39, 4  ;;  %v1161_v50 = vsel %vm580_vm0, %v1145_v32, %v1160_v41 }
 0x1c9   : > { %v1154_v47 = vrot.slane %v1141_v37, 4  ;;  %v1147_v49 = vsel %vm580_vm0, %v1146_v38, %v1105_v10  ;;  %v1157_v53 = vsel %vm580_vm0, %v1141_v37, %v1156_v46  ;;  %v1175_v59 = vsel %vm580_vm0, %v1174_v48, %v1149_v39 }
 0x1ca   : > { %v1159_v51 = vsel %vm580_vm0, %v1158_v43, %v1121_v20  ;;  %v1163_v54 = vsel %vm580_vm0, %v1162_v44, %v1147_v49  ;;  %v1177_v55 = vsel %vm580_vm0, %v1153_v35, %v1176_v45  ;;  %v1164_v56 = vrot.slane %v1147_v49, 4 }
 0x1cb   : > { %v1155_v52 = vsel %vm580_vm0, %v1154_v47, %v1117_v24  ;;  %v1169_v57 = vperm.slane %v1163_v54, %v6231_v42  ;;  %v1186_v60 = vrot.slane %v1159_v51, 4  ;;  %v1198_v62 = vrot.slane %v1161_v50, 4 }
 0x1cc   : > { %1290 = vrot.lane.b32.xlu2 %v6195_v27, %s5923_s15  ;;  %v1188_v61 = vrot.slane %v1155_v52, 4  ;;  %v1181_v0 = vperm.slane %v1175_v59, %v6231_v42  ;;  %v1200_v1 = vrot.slane %v1157_v53, 4  ;;  %v1185_v3 = vperm.slane %v1177_v55, %v6231_v42 }
 0x1cd   : > { %v1212_v2 = vrot.slane %v1169_v57, 4  ;;  %v1187_v4 = vsel %vm580_vm0, %v1186_v60, %v1155_v52  ;;  %v1199_v5 = vsel %vm580_vm0, %v1198_v62, %v1157_v53  ;;  %v1165_v6 = vsel %vm580_vm0, %v1151_v40, %v1164_v56 }
 0x1ce   : > { %v6287_v63 = vpop.permute.xlu2 %561  ;;  %v1193_v7 = vperm.slane %v1187_v4, %v6231_v42  ;;  %v1205_v8 = vperm.slane %v1199_v5, %v6231_v42  ;;  %v1210_v9 = vrot.slane %v1181_v0, 4  ;;  %v1173_v12 = vperm.slane %v1165_v6, %v6231_v42  ;;  %v568_v5 = vpop.permute.xlu0 %567 }
 0x1cf   : > { %v1213_v10 = vsel %vm580_vm0, %v1181_v0, %v1212_v2  ;;  %v1189_v13 = vsel %vm580_vm0, %v1159_v51, %v1188_v61  ;;  %v1201_v14 = vsel %vm580_vm0, %v1161_v50, %v1200_v1  ;;  %v1222_v26 = vrot.slane %v1185_v3, 4 }
 0x1d0   : > { %v1221_v11 = vperm.slane %v1213_v10, %v6242_v58  ;;  %v1211_v15 = vsel %vm580_vm0, %v1210_v9, %v1169_v57  ;;  %v1234_v19 = vrot.slane %v1205_v8, 4  ;;  %v1236_v20 = vrot.slane %v1193_v7, 4 }
 0x1d1   : > { %v1197_v21 = vperm.slane %v1189_v13, %v6231_v42  ;;  %v1217_v22 = vperm.slane %v1211_v15, %v6242_v58  ;;  %v1209_v25 = vperm.slane %v1201_v14, %v6231_v42  ;;  %v1224_v31 = vrot.slane %v1173_v12, 4 }
 0x1d2   : > { %v1264_v24 = vrot.slane %v1221_v11, 4  ;;  %v1235_v28 = vsel %vm580_vm0, %v1234_v19, %v1193_v7  ;;  %v1237_v30 = vsel %vm580_vm0, %v1205_v8, %v1236_v20  ;;  %v1223_v37 = vsel %vm580_vm0, %v1222_v26, %v1173_v12 }
 0x1d3   : > { %v1248_v32 = vrot.slane %v1197_v21, 4  ;;  %v1241_v33 = vperm.slane %v1235_v28, %v6242_v58  ;;  %v1260_v34 = vrot.slane %v1217_v22, 4  ;;  %v1245_v35 = vperm.slane %v1237_v30, %v6242_v58 }
 0x1d4   : > { %v1229_v38 = vperm.slane %v1223_v37, %v6242_v58  ;;  %v1246_v39 = vrot.slane %v1209_v25, 4  ;;  %v1225_v41 = vsel %vm580_vm0, %v1185_v3, %v1224_v31  ;;  %v604_v7 = vrot.slane %v568_v5, 4  ;;  %v6359_v37 = vpop.permute.xlu1 %537 }
 0x1d5   : > { %v1249_v43 = vsel %vm580_vm0, %v1209_v25, %v1248_v32  ;;  %v1261_v44 = vsel %vm580_vm0, %v1241_v33, %v1260_v34  ;;  %v1258_v45 = vrot.slane %v1241_v33, 4  ;;  %v1265_v46 = vsel %vm580_vm0, %v1245_v35, %v1264_v24 }
 0x1d6   : > { %v6311_v40 = vpop.permute.xlu2 %543  ;;  %5574 = vmatpush.xpose.msk.msrb.mxu2 %vm1520_vm1, %v1261_v44  ;;  %5722 = vmatpush.xpose.msk.msra.mxu3 %vm1520_vm1, %v1261_v44  ;;  %v1247_v47 = vsel %vm580_vm0, %v1246_v39, %v1197_v21  ;;  %v1268_v48 = vrot.slane %v1229_v38, 4  ;;  %v1262_v49 = vrot.slane %v1245_v35, 4  ;;  %v1233_v53 = vperm.slane %v1225_v41, %v6242_v58 }
 0x1d7   : > { %v1259_v50 = vsel %vm580_vm0, %v1258_v45, %v1217_v22  ;;  %v1253_v51 = vperm.slane %v1247_v47, %v6242_v58  ;;  %v1257_v56 = vperm.slane %v1249_v43, %v6242_v58  ;;  %v606_v8 = vrot.slane %v6271_v36, 4 }
 0x1d8   : > { %5571 = vmatpush.xpose.msk.msrb.mxu0 %vm1520_vm1, %v1259_v50  ;;  %5721 = vmatpush.xpose.msk.msrb.mxu1 %vm1520_vm1, %v1259_v50  ;;  %v1263_v52 = vsel %vm580_vm0, %v1262_v49, %v1221_v11  ;;  %v1272_v57 = vrot.slane %v1233_v53, 4  ;;  %v605_v11 = vsel %vm580_vm0, %v604_v7, %v6271_v36  ;;  %v618_v13 = vrot.slane %v6287_v63, 4 }
 0x1d9   : > { %v1269_v54 = vsel %vm580_vm0, %v1253_v51, %v1268_v48  ;;  %v1266_v55 = vrot.slane %v1253_v51, 4  ;;  %v1270_v60 = vrot.slane %v1257_v56, 4  ;;  %v607_v12 = vsel %vm580_vm0, %v568_v5, %v606_v8 }
 0x1da   : > { %5577 = vmatpush.xpose.msk.msrb.mxu3 %vm1520_vm1, %v1263_v52  ;;  %v6334_v62 = vsel %vm580_vm0, %v1257_v56, %v1272_v57  ;;  %v582_v14 = vrot.slane %v6185_v23, 4  ;;  %v694_v21 = vrot.slane %v6217_v29, 4  ;;  %v611_v24 = vperm.slane %v605_v11, %v6231_v42 }
 0x1db   : > { %v1267_v59 = vsel %vm580_vm0, %v1266_v55, %v1229_v38  ;;  %v6337_v0 = vsel %vm580_vm0, %v1270_v60, %v1233_v53  ;;  %v615_v25 = vperm.slane %v607_v12, %v6231_v42  ;;  %v579_v36 = vrot.slane %v6311_v40, 4 }
 0x1dc   : > { %5580 = vmatpush.xpose.msk.msra.mxu1 %vm1520_vm1, %v1265_v46  ;;  %5586 = vmatpush.xpose.msk.msra.mxu0 %vm1520_vm1, %v1269_v54  ;;  %v583_v38 = vsel %vm580_vm0, %v6311_v40, %v582_v14  ;;  %v594_v41 = vrot.slane %v6359_v37, 4  ;;  %v654_v46 = vrot.slane %v611_v24, 4 }
 0x1dd   : > { %5583 = vmatpush.xpose.msk.msra.mxu2 %vm1520_vm1, %v1267_v59  ;;  %v581_v43 = vsel %vm580_vm0, %v579_v36, %v6185_v23  ;;  %v666_v47 = vrot.slane %v615_v25, 4  ;;  %v6373_v40 = vperm.slane %v583_v38, %v6231_v42 }
 0x1de   : > { %v574_v61 = vpop.permute.xlu2 %573  ;;  %v6377_v53 = vperm.slane %v581_v43, %v6231_v42 }
 0x1df   : > { %v616_v10 = vrot.slane %v574_v61, 4  ;;  %v619_v19 = vsel %vm580_vm0, %v574_v61, %v618_v13  ;;  %v642_v43 = vrot.slane %v6373_v40, 4 }
 0x1e0   : > { %v627_v34 = vperm.slane %v619_v19, %v6231_v42 }
 0x1e1   : > { %v617_v26 = vsel %vm580_vm0, %v616_v10, %v6287_v63 }
 0x1e2   : > { %v623_v63 = vperm.slane %v617_v26, %v6231_v42  ;;  %v664_v50 = vrot.slane %v627_v34, 4  ;;  %v667_v54 = vsel %vm580_vm0, %v627_v34, %v666_v47 }
 0x1e4   : > { %v652_v23 = vrot.slane %v623_v63, 4  ;;  %v655_v56 = vsel %vm580_vm0, %v623_v63, %v654_v46  ;;  %v665_v5 = vsel %vm580_vm0, %v664_v50, %v615_v25 }
 0x1e6   : > { %v546_v1 = vpop.permute.xlu2 %545 }
 0x1e7   : > { %v692_v9 = vrot.slane %v546_v1, 4  ;;  %v695_v30 = vsel %vm580_vm0, %v546_v1, %v694_v21 }
 0x1e8   : > { %v703_v44 = vperm.slane %v695_v30, %v6231_v42 }
 0x1e9   : > { %v693_v20 = vsel %vm580_vm0, %v692_v9, %v6217_v29  ;;  %v6390_v9 = vperm.slane %v655_v56, %v6242_v58 }
 0x1ea   : > { %v699_v29 = vperm.slane %v693_v20, %v6231_v42  ;;  %v754_v57 = vrot.slane %v703_v44, 4  ;;  %v653_v20 = vsel %vm580_vm0, %v652_v23, %v611_v24 }
 0x1eb   : > { %v680_v46 = vrot.slane %v6390_v9, 4 }
 0x1ec   : > { %v742_v51 = vrot.slane %v699_v29, 4 }
 0x1ee   : > { %v552_v2 = vpop.permute.xlu2 %551 }
 0x1ef   : > { %v704_v22 = vrot.slane %v552_v2, 4 }
 0x1f6   : > { %v570_v3 = vpop.permute.xlu2 %569 }
 0x1f7   : > { %v716_v31 = vrot.slane %v570_v3, 4 }
 0x1fe   : > { %v540_v4 = vpop.permute.xlu2 %539 }
 0x1ff   : > { %v706_v15 = vrot.slane %v540_v4, 4  ;;  %v705_v32 = vsel %vm580_vm0, %v704_v22, %v540_v4 }
 0x200   : > { %v711_v45 = vperm.slane %v705_v32, %v6231_v42 }
 0x201   : > { %v707_v35 = vsel %vm580_vm0, %v552_v2, %v706_v15 }
 0x202   : > { %v715_v48 = vperm.slane %v707_v35, %v6231_v42  ;;  %v743_v59 = vsel %vm580_vm0, %v711_v45, %v742_v51  ;;  %v740_v1 = vrot.slane %v711_v45, 4 }
 0x203   : > { %v751_v10 = vperm.slane %v743_v59, %v6242_v58 }
 0x204   : > { %v752_v2 = vrot.slane %v715_v48, 4  ;;  %v755_v11 = vsel %vm580_vm0, %v715_v48, %v754_v57  ;;  %v741_v21 = vsel %vm580_vm0, %v740_v1, %v699_v29 }
 0x205   : > { %v763_v36 = vperm.slane %v755_v11, %v6242_v58  ;;  %v747_v34 = vperm.slane %v741_v21, %v6242_v58  ;;  %v794_v35 = vrot.slane %v751_v10, 4 }
 0x206   : > { %v558_v6 = vpop.permute.xlu2 %557  ;;  %v753_v22 = vsel %vm580_vm0, %v752_v2, %v703_v44  ;;  %v6415_v44 = vperm.slane %v653_v20, %v6242_v58 }
 0x207   : > { %v718_v33 = vrot.slane %v558_v6, 4  ;;  %v717_v39 = vsel %vm580_vm0, %v716_v31, %v558_v6  ;;  %v6386_v6 = vperm.slane %v667_v54, %v6242_v58  ;;  %v6405_v31 = vperm.slane %v665_v5, %v6242_v58 }
 0x208   : > { %v723_v52 = vperm.slane %v717_v39, %v6231_v42  ;;  %v759_v29 = vperm.slane %v753_v22, %v6242_v58  ;;  %v630_v39 = vrot.slane %v6377_v53, 4  ;;  %v802_v47 = vrot.slane %v763_v36, 4 }
 0x209   : > { %v719_v49 = vsel %vm580_vm0, %v570_v3, %v718_v33  ;;  %v688_v45 = vrot.slane %v6386_v6, 4  ;;  %v684_v54 = vrot.slane %v6405_v31, 4 }
 0x20a   : > { %v727_v60 = vperm.slane %v719_v49, %v6231_v42  ;;  %v766_v7 = vrot.slane %v723_v52, 4  ;;  %v798_v56 = vrot.slane %v759_v29, 4 }
 0x20c   : > { %v778_v13 = vrot.slane %v727_v60, 4 }
 0x20e   : > { %v576_v28 = vpop.permute.xlu2 %575 }
 0x20f   : > { %v728_v55 = vrot.slane %v576_v28, 4 }
 0x216   : > { %v564_v61 = vpop.permute.xlu2 %563 }
 0x217   : > { %v729_v3 = vsel %vm580_vm0, %v728_v55, %v564_v61  ;;  %v730_v4 = vrot.slane %v564_v61, 4  ;;  %v790_v55 = vrot.slane %v747_v34, 4 }
 0x218   : > { %v735_v8 = vperm.slane %v729_v3, %v6231_v42 }
 0x219   : > { %v731_v12 = vsel %vm580_vm0, %v576_v28, %v730_v4 }
 0x21a   : > { %v739_v14 = vperm.slane %v731_v12, %v6231_v42  ;;  %v764_v15 = vrot.slane %v735_v8, 4  ;;  %v767_v19 = vsel %vm580_vm0, %v735_v8, %v766_v7 }
 0x21b   : > { %v775_v25 = vperm.slane %v767_v19, %v6242_v58 }
 0x21c   : > { %v765_v26 = vsel %vm580_vm0, %v764_v15, %v723_v52  ;;  %v776_v30 = vrot.slane %v739_v14, 4  ;;  %v779_v28 = vsel %vm580_vm0, %v739_v14, %v778_v13 }
 0x21d   : > { %v771_v32 = vperm.slane %v765_v26, %v6242_v58  ;;  %v787_v24 = vperm.slane %v779_v28, %v6242_v58  ;;  %v792_v33 = vrot.slane %v775_v25, 4  ;;  %v6420_v48 = vsel %vm580_vm0, %v775_v25, %v794_v35 }
 0x21e   : > { %v777_v38 = vsel %vm580_vm0, %v776_v30, %v727_v60  ;;  %v550_v63 = vpop.permute.xlu2 %549  ;;  %v928_v60 = vrot.slane %v6420_v48, 4 }
 0x21f   : > { %v800_v49 = vrot.slane %v787_v24, 4  ;;  %v783_v50 = vperm.slane %v777_v38, %v6242_v58  ;;  %v788_v51 = vrot.slane %v771_v32, 4  ;;  %v6424_v52 = vsel %vm580_vm0, %v792_v33, %v751_v10 }
 0x220   : > { %v592_v23 = vrot.slane %v550_v63, 4  ;;  %v595_v57 = vsel %vm580_vm0, %v550_v63, %v594_v41  ;;  %v6431_v59 = vsel %vm580_vm0, %v787_v24, %v802_v47  ;;  %v6438_v2 = vsel %vm580_vm0, %v771_v32, %v790_v55 }
 0x221   : > { %v603_v1 = vperm.slane %v595_v57, %v6231_v42  ;;  %v916_v3 = vrot.slane %v6424_v52, 4  ;;  %v6443_v5 = vsel %vm580_vm0, %v800_v49, %v763_v36  ;;  %v6446_v41 = vsel %vm580_vm0, %v788_v51, %v747_v34 }
 0x222   : > { %v593_v61 = vsel %vm580_vm0, %v592_v23, %v6359_v37  ;;  %v796_v7 = vrot.slane %v783_v50, 4  ;;  %v952_v37 = vrot.slane %v6431_v59, 4  ;;  %v929_v19 = vsel %vm580_vm0, %v928_v60, %v6438_v2 }
 0x223   : > { %v599_v4 = vperm.slane %v593_v61, %v6231_v42  ;;  %v640_v8 = vrot.slane %v603_v1, 4  ;;  %v643_v10 = vsel %vm580_vm0, %v603_v1, %v642_v43  ;;  %v940_v20 = vrot.slane %v6443_v5, 4 }
 0x224   : > { %v651_v13 = vperm.slane %v643_v10, %v6242_v58  ;;  %v917_v33 = vsel %vm580_vm0, %v916_v3, %v6446_v41  ;;  %v676_v34 = vrot.slane %v6415_v44, 4  ;;  %v6477_v35 = vsel %vm580_vm0, %v783_v50, %v798_v56 }
 0x225   : > { %v628_v11 = vrot.slane %v599_v4, 4  ;;  %v631_v12 = vsel %vm580_vm0, %v599_v4, %v630_v39  ;;  %v641_v15 = vsel %vm580_vm0, %v640_v8, %v6373_v40  ;;  %v6467_v40 = vsel %vm580_vm0, %v796_v7, %v759_v29 }
 0x226   : > { %v639_v14 = vperm.slane %v631_v12, %v6242_v58  ;;  %v647_v22 = vperm.slane %v641_v15, %v6242_v58  ;;  %v6462_v25 = vsel %vm580_vm0, %v688_v45, %v651_v13  ;;  %v690_v36 = vrot.slane %v651_v13, 4 }
 0x227   : > { %v629_v21 = vsel %vm580_vm0, %v628_v11, %v6377_v53  ;;  %v828_v28 = vrot.slane %v6462_v25, 4  ;;  %v6480_v38 = vperm.slane %v929_v19, %v6231_v42  ;;  %v930_v29 = vrot.slane %v6438_v2, 4 }
 0x228   : > { %v635_v26 = vperm.slane %v629_v21, %v6242_v58  ;;  %v682_v30 = vrot.slane %v639_v14, 4  ;;  %v6470_v32 = vsel %vm580_vm0, %v680_v46, %v639_v14  ;;  %v685_v24 = vsel %vm580_vm0, %v684_v54, %v647_v22 }
 0x229   : > { %v686_v53 = vrot.slane %v647_v22, 4  ;;  %v691_v39 = vsel %vm580_vm0, %v6386_v6, %v690_v36  ;;  %v941_v43 = vsel %vm580_vm0, %v940_v20, %v6467_v40  ;;  %v804_v46 = vrot.slane %v6470_v32, 4 }
 0x22a   : > { %v678_v63 = vrot.slane %v635_v26, 4  ;;  %v6489_v45 = vsel %vm580_vm0, %v6390_v9, %v682_v30  ;;  %v829_v47 = vsel %vm580_vm0, %v828_v28, %v685_v24  ;;  %v923_v49 = vperm.slane %v917_v33, %v6231_v42 }
 0x22b   : > { %v918_v50 = vrot.slane %v6446_v41, 4  ;;  %v687_v51 = vsel %vm580_vm0, %v6405_v31, %v686_v53  ;;  %v830_v23 = vrot.slane %v685_v24, 4  ;;  %v953_v6 = vsel %vm580_vm0, %v952_v37, %v6477_v35 }
 0x22c   : > { %v840_v54 = vrot.slane %v691_v39, 4  ;;  %v947_v55 = vperm.slane %v941_v43, %v6231_v42  ;;  %v959_v9 = vperm.slane %v953_v6, %v6231_v42  ;;  %v964_v56 = vrot.slane %v6480_v38, 4 }
 0x22d   : > { %v677_v57 = vsel %vm580_vm0, %v676_v34, %v635_v26  ;;  %v679_v60 = vsel %vm580_vm0, %v6415_v44, %v678_v63  ;;  %v816_v61 = vrot.slane %v6489_v45, 4  ;;  %v835_v31 = vperm.slane %v829_v47, %v6231_v42 }
 0x22e   : > { %v842_v1 = vrot.slane %v687_v51, 4  ;;  %v965_v2 = vsel %vm580_vm0, %v964_v56, %v923_v49  ;;  %v988_v3 = vrot.slane %v959_v9, 4  ;;  %v805_v4 = vsel %vm580_vm0, %v804_v46, %v677_v57 }
 0x22f   : > { %v971_v7 = vperm.slane %v965_v2, %v6242_v58  ;;  %v806_v8 = vrot.slane %v677_v57, 4  ;;  %v811_v10 = vperm.slane %v805_v4, %v6231_v42  ;;  %v817_v37 = vsel %vm580_vm0, %v816_v61, %v679_v60 }
 0x230   : > { %v989_v11 = vsel %vm580_vm0, %v988_v3, %v947_v55  ;;  %v823_v44 = vperm.slane %v817_v37, %v6231_v42  ;;  %v841_v12 = vsel %vm580_vm0, %v840_v54, %v687_v51  ;;  %v878_v13 = vrot.slane %v835_v31, 4 }
 0x231   : > { %v995_v14 = vperm.slane %v989_v11, %v6242_v58  ;;  %v1014_v15 = vrot.slane %v971_v7, 4  ;;  %v847_v19 = vperm.slane %v841_v12, %v6231_v42  ;;  %v854_v20 = vrot.slane %v811_v10, 4 }
 0x232   : > { %v818_v21 = vrot.slane %v679_v60, 4  ;;  %v852_v22 = vrot.slane %v823_v44, 4  ;;  %v966_v36 = vrot.slane %v923_v49, 4  ;;  %v990_v26 = vrot.slane %v947_v55, 4 }
 0x233   : > { %v1015_v30 = vsel %vm580_vm0, %v995_v14, %v1014_v15  ;;  %v1012_v28 = vrot.slane %v995_v14, 4  ;;  %v855_v24 = vsel %vm580_vm0, %v823_v44, %v854_v20  ;;  %v879_v53 = vsel %vm580_vm0, %v847_v19, %v878_v13 }
 0x234   : > { %5576 = vmatmul.msk.f32.vlgmr.msra.gmra.mxu3 %vm1520_vm1, %v1015_v30  ;;  %v863_v33 = vperm.slane %v855_v24, %v6242_v58  ;;  %v887_v34 = vperm.slane %v879_v53, %v6242_v58  ;;  %v853_v63 = vsel %vm580_vm0, %v852_v22, %v811_v10  ;;  %v876_v43 = vrot.slane %v847_v19, 4 }
 0x235   : > { %v931_v46 = vsel %vm580_vm0, %v6420_v48, %v930_v29  ;;  %v831_v47 = vsel %vm580_vm0, %v6462_v25, %v830_v23  ;;  %5589 = vmatpush.xpose.msk.msra.mxu3 %vm1520_vm1, %v6337_v0  ;;  %v1013_v49 = vsel %vm580_vm0, %v1012_v28, %v971_v7  ;;  %v859_v51 = vperm.slane %v853_v63, %v6242_v58 }
 0x236   : > { %v843_v6 = vsel %vm580_vm0, %v691_v39, %v842_v1  ;;  %5573 = vmatmul.msk.f32.vlgmr.msrb.gmra.mxu1 %vm1520_vm1, %v1013_v49  ;;  %v904_v54 = vrot.slane %v887_v34, 4  ;;  %v877_v55 = vsel %vm580_vm0, %v876_v43, %v835_v31  ;;  %v807_v48 = vsel %vm580_vm0, %v6470_v32, %v806_v8 }
 0x237   : > { %5592 = vmatpush.xpose.msk.msrb.mxu1 %vm1520_vm1, %v6334_v62  ;;  %v906_v25 = vrot.slane %v863_v33, 4  ;;  %v883_v0 = vperm.slane %v877_v55, %v6242_v58  ;;  %v902_v29 = vrot.slane %v859_v51, 4  ;;  %v991_v23 = vsel %vm580_vm0, %v959_v9, %v990_v26 }
 0x238   : > { %v942_v56 = vrot.slane %v6467_v40, 4  ;;  %v954_v39 = vrot.slane %v6477_v35, 4  ;;  %v967_v57 = vsel %vm580_vm0, %v6480_v38, %v966_v36  ;;  %v819_v60 = vsel %vm580_vm0, %v6489_v45, %v818_v21 }
 0x239   : > { %v905_v32 = vsel %vm580_vm0, %v904_v54, %v863_v33  ;;  %v900_v61 = vrot.slane %v883_v0, 4  ;;  %v903_v62 = vsel %vm580_vm0, %v883_v0, %v902_v29  ;;  %v827_v31 = vperm.slane %v819_v60, %v6231_v42 }
 0x23a   : > { %5575 = vmatmul.msk.f32.vlgmr.msrb.gmra.mxu2 %vm1520_vm1, %v903_v62  ;;  %v999_v9 = vperm.slane %v991_v23, %v6242_v58  ;;  %v815_v40 = vperm.slane %v807_v48, %v6231_v42  ;;  %v839_v35 = vperm.slane %v831_v47, %v6231_v42  ;;  %v851_v38 = vperm.slane %v843_v6, %v6231_v42 }
 0x23b   : > { %v901_v1 = vsel %vm580_vm0, %v900_v61, %v859_v51  ;;  %v907_v45 = vsel %vm580_vm0, %v887_v34, %v906_v25  ;;  %v864_v2 = vrot.slane %v827_v31, 4  ;;  %v919_v3 = vsel %vm580_vm0, %v6424_v52, %v918_v50 }
 0x23c   : > { %5578 = vmatmul.msk.f32.vlgmr.msrb.gmra.mxu3 %vm1520_vm1, %v905_v32  ;;  %5572 = vmatmul.msk.f32.vlgmr.msrb.gmra.mxu0 %vm1520_vm1, %v901_v1  ;;  %v975_v4 = vperm.slane %v967_v57, %v6242_v58  ;;  %v888_v7 = vrot.slane %v851_v38, 4  ;;  %v890_v8 = vrot.slane %v839_v35, 4  ;;  %v927_v37 = vperm.slane %v919_v3, %v6231_v42 }
 0x23d   : > { %v865_v10 = vsel %vm580_vm0, %v864_v2, %v815_v40  ;;  %v939_v11 = vperm.slane %v931_v46, %v6231_v42  ;;  %v943_v41 = vsel %vm580_vm0, %v6443_v5, %v942_v56  ;;  %v866_v44 = vrot.slane %v815_v40, 4 }
 0x23e   : > { %5581 = vmatmul.msk.f32.vlgmr.msra.gmra.mxu1 %vm1520_vm1, %v907_v45  ;;  %v871_v52 = vperm.slane %v865_v10, %v6242_v58  ;;  %v889_v50 = vsel %vm580_vm0, %v888_v7, %v839_v35  ;;  %v1016_v12 = vrot.slane %v999_v9, 4  ;;  %v955_v14 = vsel %vm580_vm0, %v6431_v59, %v954_v39 }
 0x23f   : > { %v895_v13 = vperm.slane %v889_v50, %v6242_v58  ;;  %v976_v15 = vrot.slane %v939_v11, 4  ;;  %v891_v20 = vsel %vm580_vm0, %v851_v38, %v890_v8  ;;  %v951_v21 = vperm.slane %v943_v41, %v6231_v42 }
 0x240   : > { %v910_v19 = vrot.slane %v871_v52, 4  ;;  %v963_v5 = vperm.slane %v955_v14, %v6231_v42  ;;  %v1018_v22 = vrot.slane %v975_v4, 4  ;;  %v867_v30 = vsel %vm580_vm0, %v827_v31, %v866_v44 }
 0x241   : > { %v908_v36 = vrot.slane %v895_v13, 4  ;;  %v977_v26 = vsel %vm580_vm0, %v976_v15, %v927_v37  ;;  %v1017_v24 = vsel %vm580_vm0, %v1016_v12, %v975_v4  ;;  %v899_v59 = vperm.slane %v891_v20, %v6242_v58 }
 0x242   : > { %v1000_v28 = vrot.slane %v963_v5, 4  ;;  %v911_v53 = vsel %vm580_vm0, %v895_v13, %v910_v19  ;;  %v983_v33 = vperm.slane %v977_v26, %v6242_v58  ;;  %v1002_v43 = vrot.slane %v951_v21, 4 }
 0x243   : > { %v909_v34 = vsel %vm580_vm0, %v908_v36, %v871_v52  ;;  %v1019_v46 = vsel %vm580_vm0, %v999_v9, %v1018_v22  ;;  %v875_v47 = vperm.slane %v867_v30, %v6242_v58  ;;  %v978_v51 = vrot.slane %v927_v37, 4 }
 0x244   : > { %5579 = vmatmul.msk.f32.gmra.mxu3 %vm1520_vm1, %v1017_v24  ;;  %5587 = vmatmul.msk.f32.vlgmr.msra.gmra.mxu0 %vm1520_vm1, %v911_v53  ;;  %v1001_v63 = vsel %vm580_vm0, %v1000_v28, %v951_v21  ;;  %v912_v6 = vrot.slane %v899_v59, 4  ;;  %v1022_v54 = vrot.slane %v983_v33, 4  ;;  %v1003_v48 = vsel %vm580_vm0, %v963_v5, %v1002_v43  ;;  %v6665_v53 = vpop.permute.xlu0 %1287 }
 0x245   : > { %5584 = vmatmul.msk.f32.vlgmr.msra.gmra.mxu2 %vm1520_vm1, %v909_v34  ;;  %v1007_v49 = vperm.slane %v1001_v63, %v6242_v58  ;;  %v914_v25 = vrot.slane %v875_v47, 4  ;;  %v979_v0 = vsel %vm580_vm0, %v939_v11, %v978_v51  ;;  %v1011_v56 = vperm.slane %v1003_v48, %v6242_v58 }
 0x246   : > { %5582 = vmatmul.msk.f32.gmra.mxu1 %vm1520_vm1, %v1019_v46  ;;  %v913_v29 = vsel %vm580_vm0, %v912_v6, %v875_v47  ;;  %v987_v60 = vperm.slane %v979_v0, %v6242_v58 }
 0x247   : > { %v1020_v55 = vrot.slane %v1007_v49, 4  ;;  %v1023_v23 = vsel %vm580_vm0, %v1007_v49, %v1022_v54  ;;  %v915_v57 = vsel %vm580_vm0, %v899_v59, %v914_v25  ;;  %v1024_v32 = vrot.slane %v1011_v56, 4  ;;  %v6667_v59 = vpop.permute.xlu2 %1290 }
 0x248   : > { %v1026_v61 = vrot.slane %v987_v60, 4 }
 0x249   : > { %v1021_v39 = vsel %vm580_vm0, %v1020_v55, %v983_v33  ;;  %v1025_v62 = vsel %vm580_vm0, %v1024_v32, %v987_v60  ;;  %v6669_v33 = vpop.permute.xlu1 %1284 }
 0x24a   : > { %v1027_v31 = vsel %vm580_vm0, %v1011_v56, %v1026_v61 }
 0x24c   : > { %5590 = vmatmul.msk.f32.vlgmr.msra.gmra.mxu3 %vm1520_vm1, %v913_v29  ;;  %5588 = vmatmul.msk.f32.gmra.mxu0 %vm1520_vm1, %v1023_v23  ;;  %v6673_v34 = vpop.permute.xlu0 %1275 }
 0x24d   : > { %5585 = vmatmul.msk.f32.gmra.mxu2 %vm1520_vm1, %v1021_v39 }
 0x24e   : > { %5593 = vmatmul.msk.f32.vlgmr.msrb.gmra.mxu1 %vm1520_vm1, %v915_v57 }
 0x254   : > { %5591 = vmatmul.msk.f32.gmra.mxu3 %vm1520_vm1, %v1025_v62 }
 0x256   : > { %5594 = vmatmul.msk.f32.gmra.mxu1 %vm1520_vm1, %v1027_v31 }
 0x2b3   : > { %v6614_v1 = vpop.f32.mrf.mxu1 }
 0x2b4   : > { %v1781_v4 = vsel %vm8775_vm2, %v6614_v1, -inf }
 0x2b7   : > { %v6609_v9 = vpop.f32.mrf.mxu3 }
 0x2b8   : > { %v1787_v40 = vsel %vm8775_vm2, %v6609_v9, -inf }
 0x2b9   : > { %1788 = vmax.xlane.f32.xlu0 %v1787_v40  ;;  %v1547_v35 = vpop.f32.mrf.mxu0 }
 0x2ba   : > { %v1778_v38 = vsel %vm8775_vm2, %v1547_v35, -inf }
 0x2bb   : > { %1779 = vmax.xlane.f32.xlu2 %v1778_v38  ;;  %v6623_v8 = vpop.f32.mrf.mxu1 }
 0x2bc   : > { %v1796_v10 = vsel %vm8775_vm2, %v6623_v8, -inf }
 0x2bd   : > { %v1579_v45 = vpop.f32.mrf.mxu2 }
 0x2be   : > { %v1784_v2 = vsel %vm8775_vm2, %v1579_v45, -inf }
 0x2bf   : > { %1785 = vmax.xlane.f32.xlu1 %v1784_v2  ;;  %v1611_v50 = vpop.f32.mrf.mxu3 }
 0x2c0   : > { %v1790_v44 = vsel %vm8775_vm2, %v1611_v50, -inf }
 0x2c1   : > { %v6617_v3 = vpop.f32.mrf.mxu0 }
 0x2c2   : > { %v1808_v7 = vsel %vm8775_vm2, %v6617_v3, -inf }
 0x2c3   : > { %1782 = vmax.xlane.f32.xlu2 %v1781_v4  ;;  %v6638_v12 = vpop.f32.mrf.mxu1 }
 0x2c4   : > { %v1799_v13 = vsel %vm8775_vm2, %v6638_v12, -inf }
 0x2c7   : > { %1809 = vmax.xlane.f32.xlu1 %v1808_v7  ;;  %v6645_v19 = vpop.f32.mrf.mxu3 }
 0x2c8   : > { %v6633_v41 = vpop.f32.mrf.mxu2  ;;  %v1793_v20 = vsel %vm8775_vm2, %v6645_v19, -inf }
 0x2c9   : > { %v6627_v37 = vpop.f32.mrf.mxu0  ;;  %v1802_v52 = vsel %vm8775_vm2, %v6633_v41, -inf }
 0x2ca   : > { %v1811_v11 = vsel %vm8775_vm2, %v6627_v37, -inf }
 0x2cb   : > { %1797 = vmax.xlane.f32.xlu2 %v1796_v10  ;;  %v6649_v21 = vpop.f32.mrf.mxu1 }
 0x2cc   : > { %v1820_v5 = vsel %vm8775_vm2, %v6649_v21, -inf }
 0x2cd   : > { %1281 = vrot.lane.b32.xlu0 %v6195_v27, %s5924_s18 }
 0x2cf   : > { %1812 = vmax.xlane.f32.xlu1 %v1811_v11  ;;  %v6653_v22 = vpop.f32.mrf.mxu3 }
 0x2d0   : > { %v1678_v14 = vpop.f32.mrf.mxu2  ;;  %v1814_v36 = vsel %vm8775_vm2, %v6653_v22, -inf }
 0x2d1   : > { %v1805_v15 = vsel %vm8775_vm2, %v1678_v14, -inf }
 0x2d3   : > { %1803 = vmax.xlane.f32.xlu2 %v1802_v52  ;;  %v6657_v26 = vpop.f32.mrf.mxu1 }
 0x2d4   : > { %v1823_v30 = vsel %vm8775_vm2, %v6657_v26, -inf }
 0x2d7   : > { %v6661_v28 = vpop.f32.mrf.mxu3 }
 0x2d8   : > { %v1817_v24 = vsel %vm8775_vm2, %v6661_v28, -inf }
 0x2db   : > { %1791 = vmax.xlane.f32.xlu2 %v1790_v44 }
 0x2e3   : > { %1800 = vmax.xlane.f32.xlu2 %v1799_v13 }
 0x2e8   : > { %1278 = vrot.lane.b32.xlu1 %v6195_v27, %s5921_s13 }
 0x2eb   : > { %1806 = vmax.xlane.f32.xlu2 %v1805_v15 }
 0x2f3   : > { %1794 = vmax.xlane.f32.xlu2 %v1793_v20 }
 0x2fb   : > { %1821 = vmax.xlane.f32.xlu2 %v1820_v5 }
 0x303   : > { %1815 = vmax.xlane.f32.xlu2 %v1814_v36 }
 0x30b   : > { %1824 = vmax.xlane.f32.xlu2 %v1823_v30 }
 0x313   : > { %1818 = vmax.xlane.f32.xlu2 %v1817_v24 }
 0x32b   : > { %1293 = vrot.lane.b32.xlu2 %v6195_v27, %s5927_s21 }
 0x32c   : > { %v1789_v6 = vpop.xlane.xlu0 %1788 }
 0x32d   : > { %v1829_v48 = vsub.f32 %v6609_v9, %v1789_v6 }
 0x32e   : > { %v1780_v63 = vpop.xlane.xlu2 %1779 }
 0x32f   : > { %v1826_v43 = vsub.f32 %v1547_v35, %v1780_v63  ;;  %v1848_v29 = vmul.f32 1.442695, %v1829_v48 }
 0x331   : > { %v1842_v46 = vmul.f32 1.442695, %v1826_v43 }
 0x332   : > { %v1786_v47 = vpop.xlane.xlu1 %1785 }
 0x333   : > { %5809 = vpow2.f32 %v1842_v46  ;;  %v1828_v49 = vsub.f32 %v1579_v45, %v1786_v47 }
 0x335   : > { %v1846_v51 = vmul.f32 1.442695, %v1828_v49 }
 0x336   : > { %v1783_v54 = vpop.xlane.xlu2 %1782 }
 0x337   : > { %5811 = vpow2.f32 %v1846_v51  ;;  %v1827_v44 = vsub.f32 %v6614_v1, %v1783_v54 }
 0x338   : > { %5813 = vpow2.f32 %v1848_v29  ;;  %v1310_v29 = vrot.slane %v6673_v34, 4 }
 0x339   : > { %v6675_v55 = vpop.eup %5809 }
 0x33a   : > { %v1874_v25 = vsel %vm8775_vm2, %v6675_v55, 0.0  ;;  %v1810_v31 = vpop.xlane.xlu1 %1809 }
 0x33b   : > { %1875 = vadd.xlane.f32.xlu0 %v1874_v25  ;;  %v1836_v48 = vsub.f32 %v6617_v3, %v1810_v31  ;;  %v1298_v25 = vrot.slane %v6195_v27, 4 }
 0x33d   : > { %v6680_v0 = vpop.eup %5811 }
 0x33e   : > { %v1798_v23 = vpop.xlane.xlu2 %1797  ;;  %v1880_v56 = vsel %vm8775_vm2, %v6680_v0, 0.0  ;;  %v6686_v57 = vpop.eup %5813 }
 0x33f   : > { %v1883_v60 = vsel %vm8775_vm2, %v6686_v57, 0.0  ;;  %v1832_v63 = vsub.f32 %v6623_v8, %v1798_v23  ;;  %v1282_v51 = vpop.permute.xlu0 %1281 }
 0x340   : > { %v1308_v23 = vrot.slane %v1282_v51, 4 }
 0x341   : > { %v1854_v49 = vmul.f32 1.442695, %v1832_v63 }
 0x342   : > { %v1813_v38 = vpop.xlane.xlu1 %1812 }
 0x343   : > { %1881 = vadd.xlane.f32.xlu0 %v1880_v56  ;;  %v1837_v4 = vsub.f32 %v6627_v37, %v1813_v38  ;;  %v1309_v38 = vsel %vm580_vm0, %v1308_v23, %v6673_v34 }
 0x345   : > { %v1864_v10 = vmul.f32 1.442695, %v1837_v4 }
 0x346   : > { %v6684_v39 = vpop.xlane.xlu2 %1803 }
 0x347   : > { %v1834_v8 = vsub.f32 %v6633_v41, %v6684_v39  ;;  %v1322_v41 = vrot.slane %v6669_v33, 4  ;;  %v1320_v39 = vrot.slane %v6667_v59, 4 }
 0x349   : > { %v1858_v31 = vmul.f32 1.442695, %v1834_v8  ;;  %v1321_v34 = vsel %vm580_vm0, %v1320_v39, %v6669_v33 }
 0x34b   : > { %1884 = vadd.xlane.f32.xlu0 %v1883_v60  ;;  %v1311_v60 = vsel %vm580_vm0, %v1282_v51, %v1310_v29 }
 0x34e   : > { %v1792_v32 = vpop.xlane.xlu2 %1791 }
 0x34f   : > { %v1830_v61 = vsub.f32 %v1611_v50, %v1792_v32 }
 0x351   : > { %v1850_v62 = vmul.f32 1.442695, %v1830_v61 }
 0x353   : > { %5815 = vpow2.f32 %v1850_v62  ;;  %v1862_v62 = vmul.f32 1.442695, %v1836_v48 }
 0x356   : > { %v6690_v9 = vpop.xlane.xlu2 %1800 }
 0x357   : > { %v1833_v32 = vsub.f32 %v6638_v12, %v6690_v9  ;;  %v1319_v12 = vperm.slane %v1311_v60, %v6231_v42 }
 0x359   : > { %v6692_v40 = vpop.eup %5815 }
 0x35a   : > { %v1886_v35 = vsel %vm8775_vm2, %v6692_v40, 0.0  ;;  %v1279_v47 = vpop.permute.xlu1 %1278 }
 0x35b   : > { %1887 = vadd.xlane.f32.xlu1 %v1886_v35  ;;  %v1296_v6 = vrot.slane %v1279_v47, 4  ;;  %v1299_v56 = vsel %vm580_vm0, %v1279_v47, %v1298_v25 }
 0x35c   : > { %v1307_v35 = vperm.slane %v1299_v56, %v6231_v42 }
 0x35d   : > { %v1297_v3 = vsel %vm580_vm0, %v1296_v6, %v6195_v27 }
 0x35e   : > { %v1807_v45 = vpop.xlane.xlu2 %1806  ;;  %v1303_v9 = vperm.slane %v1297_v3, %v6231_v42 }
 0x35f   : > { %v1835_v2 = vsub.f32 %v1678_v14, %v1807_v45  ;;  %v1844_v14 = vmul.f32 1.442695, %v1827_v44  ;;  %v1856_v45 = vmul.f32 1.442695, %v1833_v32  ;;  %v1358_v44 = vrot.slane %v1307_v35, 4 }
 0x361   : > { %v1860_v7 = vmul.f32 1.442695, %v1835_v2 }
 0x363   : > { %5817 = vpow2.f32 %v1860_v7  ;;  %v1323_v7 = vsel %vm580_vm0, %v6667_v59, %v1322_v41 }
 0x364   : > { %5819 = vpow2.f32 %v1864_v10  ;;  %v1331_v33 = vperm.slane %v1323_v7, %v6231_v42 }
 0x366   : > { %v1795_v11 = vpop.xlane.xlu2 %1794  ;;  %v1382_v29 = vrot.slane %v1331_v33, 4 }
 0x367   : > { %v1831_v52 = vsub.f32 %v6645_v19, %v1795_v11 }
 0x369   : > { %v6698_v50 = vpop.eup %5817  ;;  %v1852_v13 = vmul.f32 1.442695, %v1831_v52  ;;  %v1315_v52 = vperm.slane %v1309_v38, %v6231_v42 }
 0x36a   : > { %v1901_v15 = vsel %vm8775_vm2, %v6698_v50, 0.0  ;;  %v6703_v37 = vpop.eup %5819 }
 0x36b   : > { %5821 = vpow2.f32 %v1852_v13  ;;  %1902 = vadd.xlane.f32.xlu0 %v1901_v15  ;;  %v1907_v1 = vsel %vm8775_vm2, %v6703_v37, 0.0  ;;  %v1346_v13 = vrot.slane %v1303_v9, 4 }
 0x36c   : > { %5823 = vpow2.f32 %v1844_v14 }
 0x36d   : > { %v1347_v63 = vsel %vm580_vm0, %v1315_v52, %v1346_v13 }
 0x36e   : > { %v1822_v20 = vpop.xlane.xlu2 %1821  ;;  %v1355_v8 = vperm.slane %v1347_v63, %v6242_v58 }
 0x36f   : > { %v1840_v27 = vsub.f32 %v6649_v21, %v1822_v20  ;;  %v1356_v21 = vrot.slane %v1319_v12, 4 }
 0x371   : > { %v6705_v5 = vpop.eup %5821  ;;  %v1870_v15 = vmul.f32 1.442695, %v1840_v27  ;;  %v1357_v20 = vsel %vm580_vm0, %v1356_v21, %v1307_v35  ;;  %v1398_v27 = vrot.slane %v1355_v8, 4 }
 0x372   : > { %v1889_v19 = vsel %vm8775_vm2, %v6705_v5, 0.0  ;;  %v6711_v30 = vpop.eup %5823  ;;  %v1363_v47 = vperm.slane %v1357_v20, %v6242_v58 }
 0x373   : > { %1890 = vadd.xlane.f32.xlu2 %v1889_v19  ;;  %1908 = vadd.xlane.f32.xlu0 %v1907_v1  ;;  %v1877_v46 = vsel %vm8775_vm2, %v6711_v30, 0.0  ;;  %v1344_v19 = vrot.slane %v1315_v52, 4  ;;  %v1359_v1 = vsel %vm580_vm0, %v1319_v12, %v1358_v44 }
 0x374   : > { %v1367_v51 = vperm.slane %v1359_v1, %v6242_v58  ;;  %v1402_v38 = vrot.slane %v1363_v47, 4 }
 0x376   : > { %v1816_v36 = vpop.xlane.xlu2 %1815  ;;  %v1406_v12 = vrot.slane %v1367_v51, 4 }
 0x377   : > { %v1838_v24 = vsub.f32 %v6653_v22, %v1816_v36 }
 0x379   : > { %v1866_v43 = vmul.f32 1.442695, %v1838_v24  ;;  %v1334_v24 = vrot.slane %v6665_v53, 4 }
 0x37b   : > { %5825 = vpow2.f32 %v1866_v43  ;;  %1878 = vadd.xlane.f32.xlu2 %v1877_v46  ;;  %v1345_v46 = vsel %vm580_vm0, %v1344_v19, %v1303_v9 }
 0x37c   : > { %5827 = vpow2.f32 %v1854_v49  ;;  %v1351_v60 = vperm.slane %v1345_v46, %v6242_v58 }
 0x37d   : > { %5829 = vpow2.f32 %v1862_v62 }
 0x37e   : > { %v1825_v54 = vpop.xlane.xlu2 %1824  ;;  %5831 = vpow2.f32 %v1858_v31  ;;  %v1394_v21 = vrot.slane %v1351_v60, 4 }
 0x37f   : > { %v1841_v10 = vsub.f32 %v6657_v26, %v1825_v54  ;;  %5833 = vpow2.f32 %v1856_v45 }
 0x381   : > { %v6722_v22 = vpop.eup %5825  ;;  %v1872_v26 = vmul.f32 1.442695, %v1841_v10 }
 0x382   : > { %v1910_v61 = vsel %vm8775_vm2, %v6722_v22, 0.0  ;;  %v6740_v4 = vpop.eup %5827 }
 0x383   : > { %1911 = vadd.xlane.f32.xlu1 %v1910_v61  ;;  %v1892_v59 = vsel %vm8775_vm2, %v6740_v4, 0.0  ;;  %v6755_v36 = vpop.eup %5829 }
 0x384   : > { %v6759_v43 = vpop.eup %5831  ;;  %v1904_v61 = vsel %vm8775_vm2, %v6755_v36, 0.0 }
 0x385   : > { %v6765_v48 = vpop.eup %5833  ;;  %v1898_v3 = vsel %vm8775_vm2, %v6759_v43, 0.0 }
 0x386   : > { %v1819_v2 = vpop.xlane.xlu2 %1818  ;;  %v1895_v9 = vsel %vm8775_vm2, %v6765_v48, 0.0 }
 0x387   : > { %v1839_v11 = vsub.f32 %v6661_v28, %v1819_v2  ;;  %v1327_v28 = vperm.slane %v1321_v34, %v6231_v42 }
 0x389   : > { %v1868_v14 = vmul.f32 1.442695, %v1839_v11  ;;  %v1370_v25 = vrot.slane %v1327_v28, 4 }
 0x38b   : > { %5835 = vpow2.f32 %v1868_v14  ;;  %1893 = vadd.xlane.f32.xlu1 %v1892_v59 }
 0x38c   : > { %5837 = vpow2.f32 %v1870_v15 }
 0x38d   : > { %5839 = vpow2.f32 %v1872_v26 }
 0x38e   : > { %v1294_v49 = vpop.permute.xlu2 %1293 }
 0x38f   : > { %v1332_v6 = vrot.slane %v1294_v49, 4  ;;  %v1335_v54 = vsel %vm580_vm0, %v1294_v49, %v1334_v24 }
 0x390   : > { %v1343_v23 = vperm.slane %v1335_v54, %v6231_v42 }
 0x391   : > { %v6769_v56 = vpop.eup %5835  ;;  %v1333_v32 = vsel %vm580_vm0, %v1332_v6, %v6665_v53 }
 0x392   : > { %v1339_v62 = vperm.slane %v1333_v32, %v6231_v42  ;;  %v1380_v41 = vrot.slane %v1343_v23, 4  ;;  %v1383_v39 = vsel %vm580_vm0, %v1343_v23, %v1382_v29  ;;  %v1913_v31 = vsel %vm8775_vm2, %v6769_v56, 0.0  ;;  %v6782_v35 = vpop.eup %5837 }
 0x393   : > { %v1391_v53 = vperm.slane %v1383_v39, %v6242_v58  ;;  %1914 = vadd.xlane.f32.xlu2 %v1913_v31  ;;  %1899 = vadd.xlane.f32.xlu1 %v1898_v3  ;;  %v6789_v10 = vpop.eup %5839  ;;  %v1916_v14 = vsel %vm8775_vm2, %v6782_v35, 0.0 }
 0x394   : > { %v1368_v45 = vrot.slane %v1339_v62, 4  ;;  %v1371_v2 = vsel %vm580_vm0, %v1339_v62, %v1370_v25  ;;  %v1381_v7 = vsel %vm580_vm0, %v1380_v41, %v1331_v33  ;;  %v1919_v63 = vsel %vm8775_vm2, %v6789_v10, 0.0 }
 0x395   : > { %v1379_v11 = vperm.slane %v1371_v2, %v6242_v58  ;;  %v1387_v34 = vperm.slane %v1381_v7, %v6242_v58  ;;  %v1404_v52 = vrot.slane %v1391_v53, 4  ;;  %v1407_v44 = vsel %vm580_vm0, %v1391_v53, %v1406_v12 }
 0x396   : > { %v1369_v13 = vsel %vm580_vm0, %v1368_v45, %v1327_v28  ;;  %v1444_v15 = vrot.slane %v1407_v44, 4 }
 0x397   : > { %v1375_v59 = vperm.slane %v1369_v13, %v6242_v58  ;;  %v1396_v20 = vrot.slane %v1379_v11, 4  ;;  %v1399_v26 = vsel %vm580_vm0, %v1379_v11, %v1398_v27  ;;  %v1400_v33 = vrot.slane %v1387_v34, 4 }
 0x398   : > { %v1403_v19 = vsel %vm580_vm0, %v1387_v34, %v1402_v38  ;;  %v1405_v1 = vsel %vm580_vm0, %v1404_v52, %v1367_v51  ;;  %v1420_v24 = vrot.slane %v1399_v26, 4 }
 0x399   : > { %v1392_v46 = vrot.slane %v1375_v59, 4  ;;  %v1397_v28 = vsel %vm580_vm0, %v1396_v20, %v1355_v8  ;;  %v1401_v49 = vsel %vm580_vm0, %v1400_v33, %v1363_v47  ;;  %v1432_v6 = vrot.slane %v1405_v1, 4 }
 0x39a   : > { %v1434_v54 = vrot.slane %v1401_v49, 4  ;;  %v1445_v25 = vsel %vm580_vm0, %v1444_v15, %v1403_v19  ;;  %v1446_v29 = vrot.slane %v1403_v19, 4  ;;  %v1395_v23 = vsel %vm580_vm0, %v1375_v59, %v1394_v21 }
 0x39b   : > { %1896 = vadd.xlane.f32.xlu2 %v1895_v9  ;;  %1905 = vadd.xlane.f32.xlu1 %v1904_v61  ;;  %v1393_v51 = vsel %vm580_vm0, %v1392_v46, %v1351_v60  ;;  %v1408_v32 = vrot.slane %v1397_v28, 4  ;;  %v1421_v3 = vsel %vm580_vm0, %v1420_v24, %v1395_v23  ;;  %v1422_v62 = vrot.slane %v1395_v23, 4 }
 0x39c   : > { %v1447_v41 = vsel %vm580_vm0, %v1407_v44, %v1446_v29  ;;  %v1410_v8 = vrot.slane %v1393_v51, 4  ;;  %v1427_v47 = vperm.slane %v1421_v3, %v6231_v42  ;;  %v1433_v39 = vsel %vm580_vm0, %v1432_v6, %v1401_v49 }
 0x39d   : > { %v1455_v31 = vperm.slane %v1447_v41, %v6231_v42  ;;  %v1409_v38 = vsel %vm580_vm0, %v1408_v32, %v1393_v51  ;;  %v1439_v12 = vperm.slane %v1433_v39, %v6231_v42  ;;  %v1451_v61 = vperm.slane %v1445_v25, %v6231_v42 }
 0x39e   : > { %v1415_v60 = vperm.slane %v1409_v38, %v6231_v42  ;;  %v1456_v53 = vrot.slane %v1427_v47, 4  ;;  %v1411_v9 = vsel %vm580_vm0, %v1397_v28, %v1410_v8  ;;  %v1423_v27 = vsel %vm580_vm0, %v1399_v26, %v1422_v62 }
 0x39f   : > { %v1480_v45 = vrot.slane %v1451_v61, 4  ;;  %v1482_v2 = vrot.slane %v1439_v12, 4  ;;  %v1419_v7 = vperm.slane %v1411_v9, %v6231_v42  ;;  %v1431_v11 = vperm.slane %v1423_v27, %v6231_v42 }
 0x3a0   : > { %v1457_v34 = vsel %vm580_vm0, %v1456_v53, %v1415_v60  ;;  %v1458_v52 = vrot.slane %v1415_v60, 4  ;;  %v1435_v44 = vsel %vm580_vm0, %v1405_v1, %v1434_v54  ;;  %v1492_v21 = vrot.slane %v1455_v31, 4 }
 0x3a1   : > { %v1463_v13 = vperm.slane %v1457_v34, %v6242_v58  ;;  %v1481_v15 = vsel %vm580_vm0, %v1480_v45, %v1439_v12  ;;  %v1483_v59 = vsel %vm580_vm0, %v1451_v61, %v1482_v2  ;;  %v1443_v20 = vperm.slane %v1435_v44, %v6231_v42 }
 0x3a2   : > { %v1487_v26 = vperm.slane %v1481_v15, %v6242_v58  ;;  %v1459_v33 = vsel %vm580_vm0, %v1427_v47, %v1458_v52  ;;  %v1491_v19 = vperm.slane %v1483_v59, %v6242_v58  ;;  %v1468_v24 = vrot.slane %v1431_v11, 4 }
 0x3a3   : > { %1917 = vadd.xlane.f32.xlu2 %v1916_v14  ;;  %1920 = vadd.xlane.f32.xlu1 %v1919_v63  ;;  %v1506_v46 = vrot.slane %v1463_v13, 4  ;;  %v1467_v1 = vperm.slane %v1459_v33, %v6242_v58  ;;  %v1493_v28 = vsel %vm580_vm0, %v1492_v21, %v1443_v20  ;;  %v1470_v49 = vrot.slane %v1419_v7, 4 }
 0x3a4   : > { %v1504_v6 = vrot.slane %v1487_v26, 4  ;;  %v1508_v54 = vrot.slane %v1491_v19, 4  ;;  %v1469_v25 = vsel %vm580_vm0, %v1468_v24, %v1419_v7  ;;  %v1499_v29 = vperm.slane %v1493_v28, %v6242_v58 }
 0x3a5   : > { %v1507_v23 = vsel %vm580_vm0, %v1487_v26, %v1506_v46  ;;  %v1475_v51 = vperm.slane %v1469_v25, %v6242_v58  ;;  %v1510_v32 = vrot.slane %v1467_v1, 4  ;;  %v1471_v14 = vsel %vm580_vm0, %v1431_v11, %v1470_v49 }
 0x3a6   : > { %v1505_v63 = vsel %vm580_vm0, %v1504_v6, %v1463_v13  ;;  %2212 = vmatpush.msrb.mxu0 %v1507_v23  ;;  %v1509_v3 = vsel %vm580_vm0, %v1508_v54, %v1467_v1  ;;  %v1512_v62 = vrot.slane %v1499_v29, 4  ;;  %v1479_v41 = vperm.slane %v1471_v14, %v6242_v58 }
 0x3a7   : > { %2183 = vmatpush.msrb.mxu2 %v1505_v63  ;;  %2241 = vmatpush.msrb.mxu3 %v1509_v3  ;;  %v1511_v8 = vsel %vm580_vm0, %v1491_v19, %v1510_v32  ;;  %v1514_v47 = vrot.slane %v1475_v51, 4  ;;  %v1494_v39 = vrot.slane %v1443_v20, 4 }
 0x3a8   : > { %v1513_v38 = vsel %vm580_vm0, %v1512_v62, %v1475_v51  ;;  %2270 = vmatpush.msra.mxu1 %v1511_v8  ;;  %v1518_v12 = vrot.slane %v1479_v41, 4 }
 0x3a9   : > { %2299 = vmatpush.msra.mxu2 %v1513_v38  ;;  %v1515_v61 = vsel %vm580_vm0, %v1499_v29, %v1514_v47  ;;  %v1495_v60 = vsel %vm580_vm0, %v1455_v31, %v1494_v39 }
 0x3aa   : > { %2328 = vmatpush.msra.mxu0 %v1515_v61  ;;  %v1503_v53 = vperm.slane %v1495_v60, %v6242_v58 }
 0x3ac   : > { %v1516_v9 = vrot.slane %v1503_v53, 4  ;;  %v1519_v27 = vsel %vm580_vm0, %v1503_v53, %v1518_v12 }
 0x3ad   : > { %2386 = vmatpush.msrb.mxu1 %v1519_v27 }
 0x3ae   : > { %v1517_v45 = vsel %vm580_vm0, %v1516_v9, %v1479_v41  ;;  %v1876_v2 = vpop.xlane.xlu0 %1875 }
 0x3af   : > { %2357 = vmatpush.msra.mxu3 %v1517_v45  ;;  %5841 = vrcp.f32 %v1876_v2  ;;  %v1933_v44 = vand.u32 2147483648, %v1876_v2  ;;  %v1931_v31 = vand.u32 2147483647, %v1876_v2  ;;  %vm1927_vm4 = vweird.f32 %v1876_v2 }
 0x3b1   : > { %v1934_v59 = vor.u32 1.1754944e-38, %v1933_v44  ;;  %vm1932_vm6 = vcmp.eq.f32.partialorder %v1931_v31, 8.507059e+37  ;;  %v5644_v31 = vld [vmem:[%s8771_s4 + $0xf0] sm:$0xff] }
 0x3b5   : > { %v5842_v7 = vpop.eup %5841 }
 0x3b6   : > { %v1923_v11 = vmul.f32 %v5842_v7, %v1876_v2  ;;  %v1882_v34 = vpop.xlane.xlu0 %1881  ;;  %vm1928_vm3 = vweird.f32 %v5842_v7 }
 0x3b7   : > { %5843 = vrcp.f32 %v1882_v34  ;;  %vm1929_vm5 = vmor %vm1927_vm4, %vm1928_vm3  ;;  %v1963_v1 = vand.u32 2147483648, %v1882_v34  ;;  %v1961_v49 = vand.u32 2147483647, %v1882_v34  ;;  %vm1957_vm8 = vweird.f32 %v1882_v34 }
 0x3b8   : > { %v1924_v52 = vsub.f32 1.0, %v1923_v11 }
 0x3b9   : > { %v1964_v25 = vor.u32 1.1754944e-38, %v1963_v1  ;;  %vm1962_vm10 = vcmp.eq.f32.partialorder %v1961_v49, 8.507059e+37 }
 0x3ba   : > { %v1925_v21 = vmul.f32 %v5842_v7, %v1924_v52 }
 0x3bc   : > { %v1926_v13 = vadd.f32 %v5842_v7, %v1925_v21  ;;  %v5645_v21 = vld [vmem:[%s8771_s4 + $0xf8] sm:$0xff] }
 0x3bd   : > { %v5844_v15 = vpop.eup %5843 }
 0x3be   : > { %v1930_v20 = vsel %vm1929_vm5, %v5842_v7, %v1926_v13  ;;  %v1953_v26 = vmul.f32 %v5844_v15, %v1882_v34  ;;  %v1885_v33 = vpop.xlane.xlu0 %1884  ;;  %vm1958_vm7 = vweird.f32 %v5844_v15 }
 0x3bf   : > { %v1935_v19 = vsel %vm1932_vm6, %v1934_v59, %v1930_v20  ;;  %5845 = vrcp.f32 %v1885_v33  ;;  %vm1959_vm9 = vmor %vm1957_vm8, %vm1958_vm7  ;;  %v1976_v3 = vand.u32 2147483647, %v1885_v33  ;;  %vm1972_vm12 = vweird.f32 %v1885_v33 }
 0x3c0   : > { %v1954_v24 = vsub.f32 1.0, %v1953_v26  ;;  %v1936_v46 = vmul.f32 %v6675_v55, %v1935_v19  ;;  %v1978_v55 = vand.u32 2147483648, %v1885_v33 }
 0x3c1   : > { %vm1977_vm14 = vcmp.eq.f32.partialorder %v1976_v3, 8.507059e+37 }
 0x3c2   : > { %v1955_v28 = vmul.f32 %v5844_v15, %v1954_v24  ;;  %5595 = vmatmul.msk.f32.vlgmr.msrb.gmra.mxu2 %vm8775_vm2, %v1936_v46  ;;  %v1979_v41 = vor.u32 1.1754944e-38, %v1978_v55 }
 0x3c4   : > { %v1956_v6 = vadd.f32 %v5844_v15, %v1955_v28 }
 0x3c5   : > { %v5846_v54 = vpop.eup %5845 }
 0x3c6   : > { %v1960_v29 = vsel %vm1959_vm9, %v5844_v15, %v1956_v6  ;;  %v1968_v23 = vmul.f32 %v5846_v54, %v1885_v33  ;;  %vm1973_vm11 = vweird.f32 %v5846_v54  ;;  %v5643_v6 = vld [vmem:[%s8771_s4 + $0xe8] sm:$0xff] }
 0x3c7   : > { %v1965_v51 = vsel %vm1962_vm10, %v1964_v25, %v1960_v29  ;;  %vm1974_vm13 = vmor %vm1972_vm12, %vm1973_vm11  ;;  %v5642_v25 = vld [vmem:[%s8771_s4 + $0xe0] sm:$0xff] }
 0x3c8   : > { %v1969_v32 = vsub.f32 1.0, %v1968_v23  ;;  %v1966_v14 = vmul.f32 %v6680_v0, %v1965_v51 }
 0x3ca   : > { %v1970_v63 = vmul.f32 %v5846_v54, %v1969_v32  ;;  %5597 = vmatmul.msk.f32.vlgmr.msrb.gmra.mxu0 %vm8775_vm2, %v1966_v14  ;;  %v5641_v32 = vld [vmem:[%s8771_s4 + $0xd8] sm:$0xff] }
 0x3cc   : > { %v1971_v62 = vadd.f32 %v5846_v54, %v1970_v63 }
 0x3ce   : > { %v1888_v8 = vpop.xlane.xlu1 %1887  ;;  %v1975_v47 = vsel %vm1974_vm13, %v5846_v54, %v1971_v62 }
 0x3cf   : > { %5847 = vrcp.f32 %v1888_v8  ;;  %v1980_v39 = vsel %vm1977_vm14, %v1979_v41, %v1975_v47  ;;  %v1993_v60 = vand.u32 2147483648, %v1888_v8  ;;  %v1991_v9 = vand.u32 2147483647, %v1888_v8 }
 0x3d0   : > { %v1981_v38 = vmul.f32 %v6686_v57, %v1980_v39  ;;  %vm1987_vm3 = vweird.f32 %v1888_v8 }
 0x3d1   : > { %v1994_v45 = vor.u32 1.1754944e-38, %v1993_v60  ;;  %vm1992_vm5 = vcmp.eq.f32.partialorder %v1991_v9, 8.507059e+37  ;;  %v5638_v9 = vld [vmem:[%s8771_s4 + $0xc0] sm:$0xff] }
 0x3d2   : > { %5598 = vmatmul.msk.f32.gmra.mxu0 %vm8775_vm2, %v1981_v38  ;;  %v5639_v38 = vld [vmem:[%s8771_s4 + $0xc8] sm:$0xff] }
 0x3d5   : > { %v5848_v0 = vpop.eup %5847 }
 0x3d6   : > { %v1983_v12 = vmul.f32 %v5848_v0, %v1888_v8  ;;  %vm1988_vm15 = vweird.f32 %v5848_v0 }
 0x3d7   : > { %vm1989_vm4 = vmor %vm1987_vm3, %vm1988_vm15 }
 0x3d8   : > { %v1984_v61 = vsub.f32 1.0, %v1983_v12 }
 0x3da   : > { %v1985_v53 = vmul.f32 %v5848_v0, %v1984_v61 }
 0x3dc   : > { %v1986_v27 = vadd.f32 %v5848_v0, %v1985_v53 }
 0x3de   : > { %v1990_v2 = vsel %vm1989_vm4, %v5848_v0, %v1986_v27  ;;  %v6861_v33 = vpop.xlane.xlu0 %1902  ;;  %v3041_v0 = vld [vmem:[%s8771_s4 + $0x78] sm:$0xff]  ;;  %v3040_v27 = vld [vmem:[%s8771_s4 + $0x70] sm:$0xff] }
 0x3df   : > { %v1995_v7 = vsel %vm1992_vm5, %v1994_v45, %v1990_v2  ;;  %3046 = vmatpush.msrb.mxu0 %v3041_v0 }
 0x3e0   : > { %v1996_v11 = vmul.f32 %v6692_v40, %v1995_v7  ;;  %v5637_v7 = vld [vmem:[%s8771_s4 + $0xb8] sm:$0xff] }
 0x3e1   : > { %3047 = vmatpush.msrb.mxu0 %v3040_v27 }
 0x3e2   : > { %5599 = vmatmul.msk.f32.vlgmr.msrb.gmra.mxu3 %vm8775_vm2, %v1996_v11 }
 0x3e3   : > { %3088 = vmatpush.msrb.mxu3 %v5645_v21 }
 0x3e5   : > { %3089 = vmatpush.msrb.mxu3 %v5644_v31 }
 0x3e6   : > { %v1891_v57 = vpop.xlane.xlu2 %1890  ;;  %v6891_v61 = vpop.xlane.xlu0 %1908 }
 0x3e7   : > { %5849 = vrcp.f32 %v1891_v57  ;;  %v2008_v40 = vand.u32 2147483648, %v1891_v57  ;;  %v2006_v59 = vand.u32 2147483647, %v1891_v57  ;;  %vm2002_vm7 = vweird.f32 %v1891_v57  ;;  %3090 = vmatpush.msrb.mxu3 %v5643_v6 }
 0x3e9   : > { %v2009_v19 = vor.u32 1.1754944e-38, %v2008_v40  ;;  %vm2007_vm9 = vcmp.eq.f32.partialorder %v2006_v59, 8.507059e+37  ;;  %3091 = vmatpush.msrb.mxu3 %v5642_v25  ;;  %v3039_v40 = vld [vmem:[%s8771_s4 + $0x68] sm:$0xff]  ;;  %v3036_v25 = vld [vmem:[%s8771_s4 + $0x50] sm:$0xff] }
 0x3ea   : > { %v5635_v59 = vld [vmem:[%s8771_s4 + $0xa8] sm:$0xff]  ;;  %3048 = vmatpush.msrb.mxu0 %v3039_v40 }
 0x3eb   : > { %3092 = vmatpush.msrb.mxu3 %v5641_v32 }
 0x3ed   : > { %v5850_v34 = vpop.eup %5849 }
 0x3ee   : > { %v1998_v52 = vmul.f32 %v5850_v34, %v1891_v57  ;;  %v1879_v44 = vpop.xlane.xlu2 %1878  ;;  %vm2003_vm6 = vweird.f32 %v5850_v34 }
 0x3ef   : > { %5851 = vrcp.f32 %v1879_v44  ;;  %vm2004_vm8 = vmor %vm2002_vm7, %vm2003_vm6  ;;  %v1948_v23 = vand.u32 2147483648, %v1879_v44  ;;  %v1946_v51 = vand.u32 2147483647, %v1879_v44  ;;  %vm1942_vm11 = vweird.f32 %v1879_v44 }
 0x3f0   : > { %v1999_v13 = vsub.f32 1.0, %v1998_v52  ;;  %v5636_v52 = vld [vmem:[%s8771_s4 + $0xb0] sm:$0xff] }
 0x3f1   : > { %v1949_v3 = vor.u32 1.1754944e-38, %v1948_v23  ;;  %vm1947_vm13 = vcmp.eq.f32.partialorder %v1946_v51, 8.507059e+37 }
 0x3f2   : > { %v2000_v15 = vmul.f32 %v5850_v34, %v1999_v13 }
 0x3f4   : > { %v2001_v20 = vadd.f32 %v5850_v34, %v2000_v15 }
 0x3f5   : > { %v5852_v26 = vpop.eup %5851 }
 0x3f6   : > { %v1938_v24 = vmul.f32 %v5852_v26, %v1879_v44  ;;  %v1912_v46 = vpop.xlane.xlu1 %1911  ;;  %v2005_v1 = vsel %vm2004_vm8, %v5850_v34, %v2001_v20  ;;  %vm1943_vm10 = vweird.f32 %v5852_v26 }
 0x3f7   : > { %5853 = vrcp.f32 %v1912_v46  ;;  %v2010_v49 = vsel %vm2007_vm9, %v2009_v19, %v2005_v1  ;;  %vm1944_vm12 = vmor %vm1942_vm11, %vm1943_vm10  ;;  %v2113_v60 = vand.u32 2147483648, %v1912_v46  ;;  %v2111_v2 = vand.u32 2147483647, %v1912_v46  ;;  %v5634_v1 = vld [vmem:[%s8771_s4 + $0xa0] sm:$0xff] }
 0x3f8   : > { %5855 = vrcp.f32 %v6861_v33  ;;  %v1939_v28 = vsub.f32 1.0, %v1938_v24  ;;  %v2011_v54 = vmul.f32 %v6705_v5, %v2010_v49  ;;  %v5640_v5 = vld [vmem:[%s8771_s4 + $0xd0] sm:$0xff]  ;;  %vm2107_vm15 = vweird.f32 %v1912_v46 }
 0x3f9   : > { %3093 = vmatpush.msrb.mxu3 %v5640_v5  ;;  %v2114_v34 = vor.u32 1.1754944e-38, %v2113_v60  ;;  %vm2112_vm4 = vcmp.eq.f32.partialorder %v2111_v2, 8.507059e+37  ;;  %v5632_v5 = vld [vmem:[%s8771_s4 + $0x90] sm:$0xff]  ;;  %vm2062_vm9 = vweird.f32 %v6861_v33  ;;  %v5631_v60 = vld [vmem:[%s8771_s4 + $0x88] sm:$0xff] }
 0x3fa   : > { %v1940_v29 = vmul.f32 %v5852_v26, %v1939_v28  ;;  %5600 = vmatmul.msk.f32.gmra.mxu3 %vm8775_vm2, %v2011_v54  ;;  %v3037_v28 = vld [vmem:[%s8771_s4 + $0x58] sm:$0xff] }
 0x3fb   : > { %3094 = vmatpush.msrb.mxu3 %v5639_v38 }
 0x3fc   : > { %v1941_v14 = vadd.f32 %v5852_v26, %v1940_v29  ;;  %v2068_v29 = vand.u32 2147483648, %v6861_v33 }
 0x3fd   : > { %v5854_v63 = vpop.eup %5853  ;;  %3095 = vmatpush.msrb.mxu3 %v5638_v9  ;;  %v2066_v9 = vand.u32 2147483647, %v6861_v33 }
 0x3fe   : > { %v6878_v55 = vpop.eup %5855  ;;  %v2103_v62 = vmul.f32 %v5854_v63, %v1912_v46  ;;  %v6880_v41 = vpop.xlane.xlu1 %1893  ;;  %v1945_v8 = vsel %vm1944_vm12, %v5852_v26, %v1941_v14  ;;  %vm2108_vm14 = vweird.f32 %v5854_v63  ;;  %v3038_v26 = vld [vmem:[%s8771_s4 + $0x60] sm:$0xff]  ;;  %v2069_v2 = vor.u32 1.1754944e-38, %v2068_v29 }
 0x3ff   : > { %5857 = vrcp.f32 %v6880_v41  ;;  %v1950_v39 = vsel %vm1947_vm13, %v1949_v3, %v1945_v8  ;;  %v2058_v12 = vmul.f32 %v6878_v55, %v6861_v33  ;;  %vm2109_vm3 = vmor %vm2107_vm15, %vm2108_vm14  ;;  %3096 = vmatpush.msrb.mxu3 %v5637_v7  ;;  %v2023_v24 = vand.u32 2147483648, %v6880_v41  ;;  %3049 = vmatpush.msrb.mxu0 %v3038_v26  ;;  %v3035_v3 = vld [vmem:[%s8771_s4 + $0x48] sm:$0xff]  ;;  %v5661_v26 = vld [vmem:[%s8771_s4 + $0x170] sm:$0xff] }
 0x400   : > { %v2104_v47 = vsub.f32 1.0, %v2103_v62  ;;  %v1951_v53 = vmul.f32 %v6711_v30, %v1950_v39  ;;  %5859 = vrcp.f32 %v6891_v61  ;;  %v2021_v54 = vand.u32 2147483647, %v6880_v41 }
 0x401   : > { %v2059_v57 = vsub.f32 1.0, %v2058_v12  ;;  %3097 = vmatpush.msrb.mxu3 %v5636_v52  ;;  %vm2017_vm6 = vweird.f32 %v6880_v41  ;;  %3050 = vmatpush.msrb.mxu0 %v3037_v28  ;;  %vm2063_vm8 = vweird.f32 %v6878_v55  ;;  %vm2067_vm13 = vcmp.eq.f32.partialorder %v2066_v9, 8.507059e+37 }
 0x402   : > { %v2105_v45 = vmul.f32 %v5854_v63, %v2104_v47  ;;  %5596 = vmatmul.msk.f32.gmra.mxu2 %vm8775_vm2, %v1951_v53  ;;  %vm2022_vm10 = vcmp.eq.f32.partialorder %v2021_v54, 8.507059e+37  ;;  %v3034_v53 = vld [vmem:[%s8771_s4 + $0x40] sm:$0xff]  ;;  %vm6987_vm11 = vmor %vm2062_vm9, %vm2063_vm8 }
 0x403   : > { %v2060_v19 = vmul.f32 %v6878_v55, %v2059_v57  ;;  %3098 = vmatpush.msrb.mxu3 %v5635_v59  ;;  %3051 = vmatpush.msrb.mxu0 %v3036_v25  ;;  %v2098_v59 = vand.u32 2147483648, %v6891_v61 }
 0x404   : > { %v2106_v30 = vadd.f32 %v5854_v63, %v2105_v45  ;;  %v5658_v45 = vld [vmem:[%s8771_s4 + $0x158] sm:$0xff] }
 0x405   : > { %v5858_v11 = vpop.eup %5857  ;;  %3099 = vmatpush.msrb.mxu3 %v5634_v1  ;;  %v2061_v62 = vadd.f32 %v6878_v55, %v2060_v19  ;;  %3052 = vmatpush.msrb.mxu0 %v3035_v3  ;;  %v3032_v19 = vld [vmem:[%s8771_s4 + $0x30] sm:$0xff] }
 0x406   : > { %v2110_v44 = vsel %vm2109_vm3, %v5854_v63, %v2106_v30  ;;  %v2013_v21 = vmul.f32 %v5858_v11, %v6880_v41  ;;  %v6909_v31 = vpop.xlane.xlu2 %1914  ;;  %v6911_v13 = vpop.xlane.xlu1 %1899  ;;  %vm2018_vm5 = vweird.f32 %v5858_v11  ;;  %v2024_v63 = vor.u32 1.1754944e-38, %v2023_v24 }
 0x407   : > { %v2115_v15 = vsel %vm2112_vm4, %v2114_v34, %v2110_v44  ;;  %5861 = vrcp.f32 %v6909_v31  ;;  %v6933_v49 = vpop.eup %5859  ;;  %vm6949_vm7 = vmor %vm2017_vm6, %vm2018_vm5  ;;  %v2065_v57 = vsel %vm6987_vm11, %v6878_v55, %v2061_v62  ;;  %v2128_v52 = vand.u32 2147483648, %v6909_v31  ;;  %3053 = vmatpush.msrb.mxu0 %v3034_v53 }
 0x408   : > { %v2014_v20 = vsub.f32 1.0, %v2013_v21  ;;  %5863 = vrcp.f32 %v6911_v13  ;;  %v2116_v46 = vmul.f32 %v6722_v22, %v2115_v15  ;;  %v5633_v22 = vld [vmem:[%s8771_s4 + $0x98] sm:$0xff]  ;;  %v2088_v32 = vmul.f32 %v6933_v49, %v6891_v61 }
 0x409   : > { %3100 = vmatpush.msrb.mxu3 %v5633_v22  ;;  %v2053_v33 = vand.u32 2147483648, %v6911_v13  ;;  %v5662_v21 = vld [vmem:[%s8771_s4 + $0x178] sm:$0xff]  ;;  %v2051_v40 = vand.u32 2147483647, %v6911_v13  ;;  %vm2047_vm15 = vweird.f32 %v6911_v13  ;;  %v7026_v28 = vsel %vm2067_vm13, %v2069_v2, %v2065_v57 }
 0x40a   : > { %v2015_v6 = vmul.f32 %v5858_v11, %v2014_v20  ;;  %5607 = vmatmul.msk.f32.vlgmr.msra.gmra.mxu3 %vm8775_vm2, %v2116_v46  ;;  %v2089_v7 = vsub.f32 1.0, %v2088_v32  ;;  %v3033_v15 = vld [vmem:[%s8771_s4 + $0x38] sm:$0xff]  ;;  %v2126_v20 = vand.u32 2147483647, %v6909_v31  ;;  %vm2122_vm3 = vweird.f32 %v6909_v31  ;;  %v5660_v32 = vld [vmem:[%s8771_s4 + $0x168] sm:$0xff] }
 0x40b   : > { %3101 = vmatpush.msrb.mxu3 %v5632_v5  ;;  %3054 = vmatpush.msrb.mxu0 %v3033_v15  ;;  %v2129_v54 = vor.u32 1.1754944e-38, %v2128_v52  ;;  %v2054_v25 = vor.u32 1.1754944e-38, %v2053_v33  ;;  %vm2092_vm5 = vweird.f32 %v6891_v61  ;;  %vm2052_vm6 = vcmp.eq.f32.partialorder %v2051_v40, 8.507059e+37  ;;  %v3029_v2 = vld [vmem:[%s8771_s4 + $0x18] sm:$0xff]  ;;  %v3028_v52 = vld [vmem:[%s8771_s4 + $0x10] sm:$0xff] }
 0x40c   : > { %v2016_v23 = vadd.f32 %v5858_v11, %v2015_v6  ;;  %v2090_v46 = vmul.f32 %v6933_v49, %v2089_v7  ;;  %vm7065_vm8 = vcmp.eq.f32.partialorder %v2126_v20, 8.507059e+37  ;;  %v3027_v20 = vld [vmem:[%s8771_s4 + $0x8] sm:$0xff] }
 0x40d   : > { %v6945_v51 = vpop.eup %5861  ;;  %3102 = vmatpush.msrb.mxu3 %v5631_v60  ;;  %3055 = vmatpush.msrb.mxu0 %v3032_v19 }
 0x40e   : > { %v6961_v41 = vpop.eup %5863  ;;  %v2020_v8 = vsel %vm6949_vm7, %v5858_v11, %v2016_v23  ;;  %v2118_v47 = vmul.f32 %v6945_v51, %v6909_v31  ;;  %v6968_v39 = vpop.xlane.xlu2 %1896  ;;  %v5630_v11 = vld [vmem:[%s8771_s4 + $0x80] sm:$0xff]  ;;  %vm2123_vm14 = vweird.f32 %v6945_v51  ;;  %v3031_v31 = vld [vmem:[%s8771_s4 + $0x28] sm:$0xff] }
 0x40f   : > { %v6970_v38 = vpop.xlane.xlu1 %1905  ;;  %v2025_v0 = vsel %vm2022_vm10, %v2024_v63, %v2020_v8  ;;  %v2043_v12 = vmul.f32 %v6961_v41, %v6911_v13  ;;  %5865 = vrcp.f32 %v6968_v39  ;;  %vm2048_vm12 = vweird.f32 %v6961_v41  ;;  %3103 = vmatpush.msrb.mxu3 %v5630_v11  ;;  %vm7058_vm7 = vmor %vm2122_vm3, %vm2123_vm14  ;;  %3056 = vmatpush.msrb.mxu0 %v3031_v31 }
 0x410   : > { %v2119_v27 = vsub.f32 1.0, %v2118_v47  ;;  %5867 = vrcp.f32 %v6970_v38  ;;  %v2026_v44 = vmul.f32 %v6740_v4, %v2025_v0  ;;  %vm7033_vm4 = vmor %vm2047_vm15, %vm2048_vm12  ;;  %v5659_v47 = vld [vmem:[%s8771_s4 + $0x160] sm:$0xff]  ;;  %v2083_v53 = vand.u32 2147483648, %v6970_v38 }
 0x411   : > { %v2044_v30 = vsub.f32 1.0, %v2043_v12  ;;  %v3030_v0 = vld [vmem:[%s8771_s4 + $0x20] sm:$0xff]  ;;  %v2038_v12 = vand.u32 2147483648, %v6968_v39  ;;  %vm2032_vm11 = vweird.f32 %v6968_v39  ;;  %vm2093_vm12 = vweird.f32 %v6933_v49 }
 0x412   : > { %v2120_v34 = vmul.f32 %v6945_v51, %v2119_v27  ;;  %5601 = vmatmul.msk.f32.vlgmr.msra.gmra.mxu1 %vm8775_vm2, %v2026_v44  ;;  %v2036_v27 = vand.u32 2147483647, %v6968_v39  ;;  %3057 = vmatpush.msrb.mxu0 %v3030_v0  ;;  %vm2077_vm13 = vweird.f32 %v6970_v38  ;;  %v2071_v31 = vmul.f32 %v6698_v50, %v7026_v28  ;;  %v5654_v50 = vld [vmem:[%s8771_s4 + $0x138] sm:$0xff] }
 0x413   : > { %v2045_v55 = vmul.f32 %v6961_v41, %v2044_v30  ;;  %3133 = vmatpush.msra.mxu1 %v5662_v21  ;;  %v2081_v30 = vand.u32 2147483647, %v6970_v38  ;;  %v2039_v44 = vor.u32 1.1754944e-38, %v2038_v12  ;;  %v2091_v21 = vadd.f32 %v6933_v49, %v2090_v46 }
 0x414   : > { %v2121_v4 = vadd.f32 %v6945_v51, %v2120_v34  ;;  %v5657_v34 = vld [vmem:[%s8771_s4 + $0x150] sm:$0xff]  ;;  %3058 = vmatpush.msrb.mxu0 %v3029_v2  ;;  %vm2037_vm3 = vcmp.eq.f32.partialorder %v2036_v27, 8.507059e+37 }
 0x415   : > { %v7021_v24 = vpop.eup %5865  ;;  %v2046_v1 = vadd.f32 %v6961_v41, %v2045_v55  ;;  %3134 = vmatpush.msra.mxu1 %v5661_v26  ;;  %v2084_v55 = vor.u32 1.1754944e-38, %v2083_v53  ;;  %v5651_v53 = vld [vmem:[%s8771_s4 + $0x120] sm:$0xff] }
 0x416   : > { %v7028_v6 = vpop.eup %5867  ;;  %v2028_v29 = vmul.f32 %v7021_v24, %v6968_v39  ;;  %v7039_v13 = vpop.xlane.xlu2 %1917  ;;  %vm2033_vm9 = vweird.f32 %v7021_v24  ;;  %3059 = vmatpush.msrb.mxu0 %v3028_v52 }
 0x417   : > { %v7041_v23 = vpop.xlane.xlu1 %1920  ;;  %v2050_v14 = vsel %vm7033_vm4, %v6961_v41, %v2046_v1  ;;  %v2073_v63 = vmul.f32 %v7028_v6, %v6970_v38  ;;  %5869 = vrcp.f32 %v7039_v13  ;;  %v2125_v41 = vsel %vm7058_vm7, %v6945_v51, %v2121_v4  ;;  %3135 = vmatpush.msra.mxu1 %v5660_v32  ;;  %vm7110_vm14 = vmor %vm2032_vm11, %vm2033_vm9  ;;  %v5656_v4 = vld [vmem:[%s8771_s4 + $0x148] sm:$0xff] }
 0x418   : > { %v2055_v3 = vsel %vm2052_vm6, %v2054_v25, %v2050_v14  ;;  %v2029_v62 = vsub.f32 1.0, %v2028_v29  ;;  %5871 = vrcp.f32 %v7041_v23  ;;  %vm2078_vm10 = vweird.f32 %v7028_v6  ;;  %v5655_v29 = vld [vmem:[%s8771_s4 + $0x140] sm:$0xff]  ;;  %vm7149_vm6 = vmor %vm2092_vm5, %vm2093_vm12  ;;  %3060 = vmatpush.msrb.mxu0 %v3027_v20 }
 0x419   : > { %v2074_v60 = vsub.f32 1.0, %v2073_v63  ;;  %v2056_v9 = vmul.f32 %v6759_v43, %v2055_v3  ;;  %v2130_v43 = vsel %vm7065_vm8, %v2129_v54, %v2125_v41  ;;  %3136 = vmatpush.msra.mxu1 %v5659_v47  ;;  %vm7117_vm15 = vmor %vm2077_vm13, %vm2078_vm10  ;;  %vm2082_vm4 = vcmp.eq.f32.partialorder %v2081_v30, 8.507059e+37  ;;  %v3026_v63 = vld [vmem:[%s8771_s4] sm:$0xff]  ;;  %v5653_v41 = vld [vmem:[%s8771_s4 + $0x130] sm:$0xff] }
 0x41a   : > { %v2030_v51 = vmul.f32 %v7021_v24, %v2029_v62  ;;  %v2131_v11 = vmul.f32 %v6769_v56, %v2130_v43  ;;  %v2143_v32 = vand.u32 2147483648, %v7039_v13  ;;  %v2141_v3 = vand.u32 2147483647, %v7039_v13  ;;  %3061 = vmatpush.msrb.mxu0 %v3026_v63  ;;  %v5647_v30 = vld [vmem:[%s8771_s4 + $0x100] sm:$0xff] }
 0x41b   : > { %v2075_v7 = vmul.f32 %v7028_v6, %v2074_v60  ;;  %5603 = vmatmul.msk.f32.vlgmr.msra.gmra.mxu2 %vm8775_vm2, %v2056_v9  ;;  %3137 = vmatpush.msra.mxu1 %v5658_v45  ;;  %vm2137_vm7 = vweird.f32 %v7039_v13  ;;  %v2158_v12 = vand.u32 2147483648, %v7041_v23  ;;  %vm2152_vm12 = vweird.f32 %v7041_v23  ;;  %v5650_v45 = vld [vmem:[%s8771_s4 + $0x118] sm:$0xff] }
 0x41c   : > { %v2031_v57 = vadd.f32 %v7021_v24, %v2030_v51  ;;  %5608 = vmatmul.msk.f32.gmra.mxu3 %vm8775_vm2, %v2131_v11  ;;  %vm2142_vm10 = vcmp.eq.f32.partialorder %v2141_v3, 8.507059e+37  ;;  %v2156_v51 = vand.u32 2147483647, %v7041_v23 }
 0x41d   : > { %v7104_v33 = vpop.eup %5869  ;;  %v2076_v39 = vadd.f32 %v7028_v6, %v2075_v7  ;;  %3138 = vmatpush.msra.mxu1 %v5657_v34  ;;  %v2159_v2 = vor.u32 1.1754944e-38, %v2158_v12 }
 0x41e   : > { %v2133_v38 = vmul.f32 %v7104_v33, %v7039_v13  ;;  %v2035_v40 = vsel %vm7110_vm14, %v7021_v24, %v2031_v57  ;;  %v7133_v26 = vpop.eup %5871  ;;  %v2096_v24 = vand.u32 2147483647, %v6891_v61  ;;  %vm2138_vm5 = vweird.f32 %v7104_v33  ;;  %v5652_v13 = vld [vmem:[%s8771_s4 + $0x128] sm:$0xff] }
 0x41f   : > { %v2080_v19 = vsel %vm7117_vm15, %v7028_v6, %v2076_v39  ;;  %v2040_v46 = vsel %vm2037_vm3, %v2039_v44, %v2035_v40  ;;  %v2148_v22 = vmul.f32 %v7133_v26, %v7041_v23  ;;  %3139 = vmatpush.msra.mxu1 %v5656_v4  ;;  %vm2139_vm9 = vmor %vm2137_vm7, %vm2138_vm5  ;;  %v2144_v61 = vor.u32 1.1754944e-38, %v2143_v32  ;;  %v5648_v23 = vld [vmem:[%s8771_s4 + $0x108] sm:$0xff] }
 0x420   : > { %v2085_v1 = vsel %vm2082_vm4, %v2084_v55, %v2080_v19  ;;  %v2134_v54 = vsub.f32 1.0, %v2133_v38  ;;  %v2041_v25 = vmul.f32 %v6765_v48, %v2040_v46  ;;  %v2095_v48 = vsel %vm7149_vm6, %v6933_v49, %v2091_v21 }
 0x421   : > { %v2086_v14 = vmul.f32 %v6755_v36, %v2085_v1  ;;  %v2149_v62 = vsub.f32 1.0, %v2148_v22  ;;  %v2099_v36 = vor.u32 1.1754944e-38, %v2098_v59  ;;  %3140 = vmatpush.msra.mxu1 %v5655_v29  ;;  %vm2097_vm8 = vcmp.eq.f32.partialorder %v2096_v24, 8.507059e+37 }
 0x422   : > { %v2135_v5 = vmul.f32 %v7104_v33, %v2134_v54  ;;  %5602 = vmatmul.msk.f32.gmra.mxu1 %vm8775_vm2, %v2041_v25  ;;  %vm2153_vm11 = vweird.f32 %v7133_v26  ;;  %vm2157_vm14 = vcmp.eq.f32.partialorder %v2156_v51, 8.507059e+37  ;;  %vm2900_vm15 = vcmask 261120  }
 0x423   : > { %5605 = vmatmul.msk.f32.vlgmr.msra.gmra.mxu0 %vm8775_vm2, %v2086_v14  ;;  %v2150_v28 = vmul.f32 %v7133_v26, %v2149_v62  ;;  %5604 = vmatmul.msk.f32.gmra.mxu2 %vm8775_vm2, %v2071_v31  ;;  %v2100_v59 = vsel %vm2097_vm8, %v2099_v36, %v2095_v48  ;;  %vm2154_vm13 = vmor %vm2152_vm12, %vm2153_vm11  ;;  %vm2903_vm3 = vcmask 392192   ;;  %vm2906_vm4 = vcmask 523264  }
 0x424   : > { %v2136_v49 = vadd.f32 %v7104_v33, %v2135_v5  ;;  %3141 = vmatpush.msra.mxu1 %v5654_v50  ;;  %3104 = vmatmul.f32.vlgmr.msrb.gmra.mxu3 %v6171_v17  ;;  %v2101_v9 = vmul.f32 %v6703_v37, %v2100_v59  ;;  %vm2909_vm6 = vcmask 654336   ;;  %vm2912_vm5 = vcmask 785408  }
 0x425   : > { %v2151_v47 = vadd.f32 %v7133_v26, %v2150_v28  ;;  %vm2915_vm7 = vcmask 916480  }
 0x426   : > { %v2140_v8 = vsel %vm2139_vm9, %v7104_v33, %v2136_v49  ;;  %3142 = vmatpush.msra.mxu1 %v5653_v41 }
 0x427   : > { %v2145_v0 = vsel %vm2142_vm10, %v2144_v61, %v2140_v8  ;;  %v2155_v27 = vsel %vm2154_vm13, %v7133_v26, %v2151_v47 }
 0x428   : > { %v2146_v60 = vmul.f32 %v6782_v35, %v2145_v0  ;;  %3143 = vmatpush.msra.mxu1 %v5652_v13  ;;  %v5649_v35 = vld [vmem:[%s8771_s4 + $0x110] sm:$0xff]  ;;  %v2160_v37 = vsel %vm2157_vm14, %v2159_v2, %v2155_v27 }
 0x429   : > { %v2161_v7 = vmul.f32 %v6789_v10, %v2160_v37 }
 0x42a   : > { %5609 = vmatmul.msk.f32.vlgmr.msrb.gmra.mxu1 %vm8775_vm2, %v2146_v60 }
 0x42b   : > { %5606 = vmatmul.msk.f32.gmra.mxu0 %vm8775_vm2, %v2101_v9  ;;  %3144 = vmatpush.msra.mxu1 %v5651_v53 }
 0x42c   : > { %3107 = vmatmul.f32.gmra.mxu3 %v6176_v18 }
 0x42d   : > { %3145 = vmatpush.msra.mxu1 %v5650_v45 }
 0x42f   : > { %3146 = vmatpush.msra.mxu1 %v5649_v35 }
 0x431   : > { %3147 = vmatpush.msra.mxu1 %v5648_v23 }
 0x432   : > { %5610 = vmatmul.msk.f32.gmra.mxu1 %vm8775_vm2, %v2161_v7 }
 0x433   : > { %3062 = vmatmul.f32.vlgmr.msrb.gmra.mxu0 %v6169_v16  ;;  %3148 = vmatpush.msra.mxu1 %v5647_v30 }
 0x43a   : > { %3149 = vmatmul.f32.vlgmr.msra.gmra.mxu1 %v6171_v17 }
 0x442   : > { %3152 = vmatmul.f32.gmra.mxu1 %v6176_v18 }
 0x445   : > { %v2185_v11 = vpop.f32.mrf.mxu2 }
 0x446   : > { %v2396_v56 = vrot.slane %v2185_v11, 4 }
 0x447   : > { %v2214_v43 = vpop.f32.mrf.mxu0 }
 0x448   : > { %v2408_v55 = vrot.slane %v2214_v43, 4 }
 0x44f   : > { %v2217_v10 = vpop.f32.mrf.mxu0 }
 0x450   : > { %v2520_v50 = vrot.slane %v2217_v10, 4 }
 0x465   : > { %v2243_v57 = vpop.f32.mrf.mxu3 }
 0x466   : > { %v2394_v38 = vrot.slane %v2243_v57, 4  ;;  %v2397_v40 = vsel %vm580_vm0, %v2243_v57, %v2396_v56 }
 0x467   : > { %v2405_v20 = vperm.slane %v2397_v40, %v6231_v42 }
 0x468   : > { %v2395_v19 = vsel %vm580_vm0, %v2394_v38, %v2185_v11 }
 0x469   : > { %v2401_v6 = vperm.slane %v2395_v19, %v6231_v42  ;;  %v2456_v32 = vrot.slane %v2405_v20, 4 }
 0x46b   : > { %v2444_v28 = vrot.slane %v2401_v6, 4 }
 0x47d   : > { %v2246_v33 = vpop.f32.mrf.mxu3 }
 0x47e   : > { %v2506_v46 = vrot.slane %v2246_v33, 4 }
 0x485   : > { %v2188_v34 = vpop.f32.mrf.mxu2 }
 0x486   : > { %v2508_v24 = vrot.slane %v2188_v34, 4  ;;  %v2507_v22 = vsel %vm580_vm0, %v2506_v46, %v2188_v34 }
 0x487   : > { %v7229_v5 = vperm.slane %v2507_v22, %v6231_v42 }
 0x488   : > { %v2509_v48 = vsel %vm580_vm0, %v2246_v33, %v2508_v24  ;;  %v5801_v33 = vld [vmem:[%s8772_s5] ss:$0 sm:$0xff] }
 0x489   : > { %v2517_v41 = vperm.slane %v2509_v48, %v6231_v42  ;;  %v2556_v60 = vrot.slane %v7229_v5, 4 }
 0x48d   : > { %v2359_v1 = vpop.f32.mrf.mxu3 }
 0x48e   : > { %v2418_v61 = vrot.slane %v2359_v1, 4 }
 0x48f   : > { %v2272_v52 = vpop.f32.mrf.mxu1 }
 0x490   : > { %v2406_v15 = vrot.slane %v2272_v52, 4  ;;  %v2409_v4 = vsel %vm580_vm0, %v2272_v52, %v2408_v55 }
 0x491   : > { %v2417_v54 = vperm.slane %v2409_v4, %v6231_v42 }
 0x492   : > { %v2407_v26 = vsel %vm580_vm0, %v2406_v15, %v2214_v43  ;;  %v2568_v43 = vrot.slane %v2517_v41, 4 }
 0x493   : > { %v2413_v25 = vperm.slane %v2407_v26, %v6231_v42  ;;  %v2454_v3 = vrot.slane %v2417_v54, 4  ;;  %v2457_v62 = vsel %vm580_vm0, %v2417_v54, %v2456_v32 }
 0x494   : > { %v7234_v8 = vperm.slane %v2457_v62, %v6242_v58 }
 0x495   : > { %v2442_v36 = vrot.slane %v2413_v25, 4  ;;  %v2445_v53 = vsel %vm580_vm0, %v2413_v25, %v2444_v28  ;;  %v2455_v51 = vsel %vm580_vm0, %v2454_v3, %v2405_v20 }
 0x496   : > { %v7249_v11 = vperm.slane %v2445_v53, %v6242_v58  ;;  %v7252_v57 = vperm.slane %v2455_v51, %v6242_v58  ;;  %v2504_v34 = vrot.slane %v7234_v8, 4 }
 0x497   : > { %v2443_v27 = vsel %vm580_vm0, %v2442_v36, %v2401_v6 }
 0x498   : > { %v7263_v55 = vperm.slane %v2443_v27, %v6242_v58 }
 0x49e   : > { %v2301_v44 = vpop.f32.mrf.mxu2 }
 0x49f   : > { %v2275_v39 = vpop.f32.mrf.mxu1  ;;  %v2420_v63 = vrot.slane %v2301_v44, 4  ;;  %v2362_v47 = vpop.f32.mrf.mxu3  ;;  %v2419_v45 = vsel %vm580_vm0, %v2418_v61, %v2301_v44 }
 0x4a0   : > { %v2330_v21 = vpop.f32.mrf.mxu0  ;;  %v2518_v59 = vrot.slane %v2275_v39, 4  ;;  %v2521_v0 = vsel %vm580_vm0, %v2275_v39, %v2520_v50  ;;  %v2530_v23 = vrot.slane %v2362_v47, 4  ;;  %v2425_v38 = vperm.slane %v2419_v45, %v6231_v42 }
 0x4a1   : > { %v2421_v13 = vsel %vm580_vm0, %v2359_v1, %v2420_v63  ;;  %v2432_v12 = vrot.slane %v2330_v21, 4  ;;  %v2529_v30 = vperm.slane %v2521_v0, %v6231_v42 }
 0x4a2   : > { %v2429_v37 = vperm.slane %v2421_v13, %v6231_v42  ;;  %v2519_v7 = vsel %vm580_vm0, %v2518_v59, %v2217_v10  ;;  %v2468_v32 = vrot.slane %v2425_v38, 4  ;;  %v2496_v59 = vrot.slane %v7249_v11, 4 }
 0x4a3   : > { %v2525_v40 = vperm.slane %v2519_v7, %v6231_v42  ;;  %v2566_v26 = vrot.slane %v2529_v30, 4  ;;  %v2569_v19 = vsel %vm580_vm0, %v2529_v30, %v2568_v43  ;;  %v2500_v13 = vrot.slane %v7252_v57, 4 }
 0x4a4   : > { %v2480_v20 = vrot.slane %v2429_v37, 4  ;;  %v2577_v36 = vperm.slane %v2569_v19, %v6242_v58 }
 0x4a5   : > { %v2557_v3 = vsel %vm580_vm0, %v2525_v40, %v2556_v60  ;;  %v2567_v62 = vsel %vm580_vm0, %v2566_v26, %v2517_v41 }
 0x4a6   : > { %v2304_v31 = vpop.f32.mrf.mxu2  ;;  %v2565_v51 = vperm.slane %v2557_v3, %v6242_v58 }
 0x4a7   : > { %v2388_v29 = vpop.f32.mrf.mxu1  ;;  %v2532_v49 = vrot.slane %v2304_v31, 4  ;;  %v2531_v44 = vsel %vm580_vm0, %v2530_v23, %v2304_v31  ;;  %v2554_v31 = vrot.slane %v2525_v40, 4  ;;  %v3105_v40 = vpop.f32.mrf.mxu3 }
 0x4a8   : > { %v2333_v14 = vpop.f32.mrf.mxu0  ;;  %v2430_v9 = vrot.slane %v2388_v29, 4  ;;  %v2433_v35 = vsel %vm580_vm0, %v2388_v29, %v2432_v12  ;;  %v2537_v24 = vperm.slane %v2531_v44, %v6231_v42 }
 0x4a9   : > { %v2533_v2 = vsel %vm580_vm0, %v2362_v47, %v2532_v49  ;;  %v2441_v56 = vperm.slane %v2433_v35, %v6231_v42  ;;  %v2544_v4 = vrot.slane %v2333_v14, 4  ;;  %v2555_v0 = vsel %vm580_vm0, %v2554_v31, %v7229_v5 }
 0x4aa   : > { %v2541_v10 = vperm.slane %v2533_v2, %v6231_v42  ;;  %v2431_v39 = vsel %vm580_vm0, %v2430_v9, %v2330_v21  ;;  %v2580_v49 = vrot.slane %v2537_v24, 4  ;;  %v2573_v9 = vperm.slane %v2567_v62, %v6242_v58 }
 0x4ab   : > { %v2437_v21 = vperm.slane %v2431_v39, %v6231_v42  ;;  %v2478_v25 = vrot.slane %v2441_v56, 4  ;;  %v2481_v48 = vsel %vm580_vm0, %v2441_v56, %v2480_v20  ;;  %v2492_v2 = vrot.slane %v7263_v55, 4 }
 0x4ac   : > { %v2592_v22 = vrot.slane %v2541_v10, 4  ;;  %v2489_v41 = vperm.slane %v2481_v48, %v6242_v58  ;;  %v2616_v35 = vrot.slane %v2577_v36, 4  ;;  %v2561_v23 = vperm.slane %v2555_v0, %v6242_v58 }
 0x4ad   : > { %v2466_v28 = vrot.slane %v2437_v21, 4  ;;  %v2469_v61 = vsel %vm580_vm0, %v2437_v21, %v2468_v32  ;;  %v2479_v47 = vsel %vm580_vm0, %v2478_v25, %v2429_v37  ;;  %v2608_v39 = vrot.slane %v2565_v51, 4 }
 0x4ae   : > { %v2477_v27 = vperm.slane %v2469_v61, %v6242_v58  ;;  %v2485_v5 = vperm.slane %v2479_v47, %v6242_v58  ;;  %v2502_v7 = vrot.slane %v2489_v41, 4  ;;  %v7305_v30 = vsel %vm580_vm0, %v2489_v41, %v2504_v34  ;;  %v7320_v34 = vld [vmem:[%s8772_s5 + $0x1] ss:$0 sm:$0xff] }
 0x4af   : > { %v2391_v52 = vpop.f32.mrf.mxu1  ;;  %v2467_v37 = vsel %vm580_vm0, %v2466_v28, %v2425_v38  ;;  %v2612_v56 = vrot.slane %v2573_v9, 4  ;;  %v2654_v19 = vrot.slane %v7305_v30, 4  ;;  %v2604_v32 = vrot.slane %v2561_v23, 4 }
 0x4b0   : > { %v3063_v15 = vpop.f32.mrf.mxu0  ;;  %v2542_v46 = vrot.slane %v2391_v52, 4  ;;  %v2545_v1 = vsel %vm580_vm0, %v2391_v52, %v2544_v4  ;;  %v2494_v38 = vrot.slane %v2477_v27, 4  ;;  %v7326_v4 = vsel %vm580_vm0, %v2477_v27, %v2496_v59 }
 0x4b1   : > { %v7271_v54 = vadd.f32 %v5801_v33, %v3063_v15  ;;  %v2553_v6 = vperm.slane %v2545_v1, %v6231_v42  ;;  %v2473_v15 = vperm.slane %v2467_v37, %v6242_v58  ;;  %v2498_v20 = vrot.slane %v2485_v5, 4 }
 0x4b2   : > { %v2543_v29 = vsel %vm580_vm0, %v2542_v46, %v2333_v14  ;;  %v7329_v26 = vsel %vm580_vm0, %v2485_v5, %v2500_v13  ;;  %v7334_v46 = vsel %vm580_vm0, %v2502_v7, %v7234_v8  ;;  %v7344_v31 = vadd.f32 %v7320_v34, %v3105_v40  ;;  %v3108_v40 = vpop.f32.mrf.mxu3 }
 0x4b3   : > { %v2549_v63 = vperm.slane %v2543_v29, %v6231_v42  ;;  %3172 = vrot.lane.b32.xlu0 %v7271_v54, %s5923_s15  ;;  %3163 = vrot.lane.b32.xlu1 %v7271_v54, %s5924_s18  ;;  %v2590_v50 = vrot.slane %v2553_v6, 4  ;;  %v2593_v14 = vsel %vm580_vm0, %v2553_v6, %v2592_v22  ;;  %v2490_v48 = vrot.slane %v2473_v15, 4 }
 0x4b4   : > { %3160 = vrot.lane.b32.xlu2 %v7271_v54, %s5921_s13  ;;  %v2601_v53 = vperm.slane %v2593_v14, %v6242_v58  ;;  %v2630_v8 = vrot.slane %v7326_v4, 4  ;;  %v7352_v3 = vsel %vm580_vm0, %v2494_v38, %v7249_v11  ;;  %v2642_v62 = vrot.slane %v7334_v46, 4 }
 0x4b5   : > { %v2578_v12 = vrot.slane %v2549_v63, 4  ;;  %v2581_v60 = vsel %vm580_vm0, %v2549_v63, %v2580_v49  ;;  %v2591_v45 = vsel %vm580_vm0, %v2590_v50, %v2541_v10  ;;  %v7348_v63 = vsel %vm580_vm0, %v2473_v15, %v2492_v2 }
 0x4b6   : > { %v2589_v43 = vperm.slane %v2581_v60, %v6242_v58  ;;  %v2597_v33 = vperm.slane %v2591_v45, %v6242_v58  ;;  %v2614_v44 = vrot.slane %v2601_v53, 4  ;;  %v7311_v10 = vsel %vm580_vm0, %v2601_v53, %v2616_v35 }
 0x4b7   : > { %v2579_v52 = vsel %vm580_vm0, %v2578_v12, %v2537_v24  ;;  %v2766_v1 = vrot.slane %v7311_v10, 4  ;;  %v2655_v50 = vsel %vm580_vm0, %v2654_v19, %v7329_v26  ;;  %v7359_v14 = vsel %vm580_vm0, %v2498_v20, %v7252_v57 }
 0x4b8   : > { %v2585_v24 = vperm.slane %v2579_v52, %v6242_v58  ;;  %v2606_v21 = vrot.slane %v2589_v43, 4  ;;  %v7339_v22 = vsel %vm580_vm0, %v2589_v43, %v2608_v39  ;;  %v2610_v25 = vrot.slane %v2597_v33, 4 }
 0x4b9   : > { %v2613_v29 = vsel %vm580_vm0, %v2597_v33, %v2612_v56  ;;  %v2615_v6 = vsel %vm580_vm0, %v2614_v44, %v2577_v36  ;;  %v2742_v36 = vrot.slane %v7339_v22, 4  ;;  %v7375_v57 = vperm.slane %v2655_v50, %v6231_v42 }
 0x4ba   : > { %v2754_v49 = vrot.slane %v2615_v6, 4  ;;  %v2767_v28 = vsel %vm580_vm0, %v2766_v1, %v2613_v29  ;;  %v2602_v61 = vrot.slane %v2585_v24, 4  ;;  %v2605_v59 = vsel %vm580_vm0, %v2585_v24, %v2604_v32 }
 0x4bb   : > { %3175 = vrot.lane.b32.xlu0 %v7271_v54, %s5927_s21  ;;  %3166 = vrot.lane.b32.xlu1 %v7271_v54, %s5925_s19  ;;  %v7365_v11 = vsel %vm580_vm0, %v2606_v21, %v2565_v51  ;;  %v2611_v13 = vsel %vm580_vm0, %v2610_v25, %v2573_v9  ;;  %v2618_v47 = vrot.slane %v7352_v3, 4  ;;  %v2631_v41 = vsel %vm580_vm0, %v2630_v8, %v7348_v63 }
 0x4bc   : > { %3157 = vrot.lane.b32.xlu2 %v7271_v54, %s5922_s14  ;;  %v2643_v0 = vsel %vm580_vm0, %v2642_v62, %v7359_v14  ;;  %v7383_v12 = vperm.slane %v2767_v28, %v6231_v42  ;;  %v2730_v60 = vrot.slane %v7365_v11, 4  ;;  %v2491_v53 = vsel %vm580_vm0, %v2490_v48, %v7263_v55 }
 0x4bd   : > { %v2743_v51 = vsel %vm580_vm0, %v2742_v36, %v2605_v59  ;;  %v2755_v9 = vsel %vm580_vm0, %v2754_v49, %v2611_v13  ;;  %v2603_v27 = vsel %vm580_vm0, %v2602_v61, %v2561_v23  ;;  %v7392_v45 = vperm.slane %v2631_v41, %v6231_v42 }
 0x4be   : > { %v7395_v2 = vperm.slane %v2643_v0, %v6231_v42  ;;  %v2690_v35 = vrot.slane %v7375_v57, 4  ;;  %v2619_v37 = vsel %vm580_vm0, %v2618_v47, %v2491_v53  ;;  %v2749_v5 = vperm.slane %v2743_v51, %v6231_v42 }
 0x4bf   : > { %v7401_v55 = vperm.slane %v2755_v9, %v6231_v42  ;;  %v2802_v7 = vrot.slane %v7383_v12, 4  ;;  %v2731_v43 = vsel %vm580_vm0, %v2730_v60, %v2603_v27  ;;  %v2768_v23 = vrot.slane %v2613_v29, 4 }
 0x4c0   : > { %v2625_v52 = vperm.slane %v2619_v37, %v6231_v42  ;;  %v2666_v33 = vrot.slane %v7392_v45, 4  ;;  %v2691_v44 = vsel %vm580_vm0, %v2690_v35, %v7395_v2  ;;  %v2737_v39 = vperm.slane %v2731_v43, %v6231_v42 }
 0x4c1   : > { %v2778_v56 = vrot.slane %v2749_v5, 4  ;;  %v2803_v15 = vsel %vm580_vm0, %v2802_v7, %v7401_v55  ;;  %v2656_v38 = vrot.slane %v7329_v26, 4  ;;  %v2756_v20 = vrot.slane %v2611_v13, 4 }
 0x4c2   : > { %v2697_v19 = vperm.slane %v2691_v44, %v6242_v58  ;;  %v2744_v24 = vrot.slane %v2605_v59, 4  ;;  %v2769_v21 = vsel %vm580_vm0, %v7311_v10, %v2768_v23  ;;  %v2667_v1 = vsel %vm580_vm0, %v2666_v33, %v2625_v52 }
 0x4c3   : > { %3169 = vrot.lane.b32.xlu0 %v7271_v54, %s5926_s20  ;;  %3404 = vrot.lane.b32.xlu1 %v7344_v31, %s5922_s14  ;;  %v2809_v25 = vperm.slane %v2803_v15, %v6242_v58  ;;  %v7425_v29 = vadd.f32 %v7320_v34, %v3108_v40  ;;  %v2779_v32 = vsel %vm580_vm0, %v2778_v56, %v2737_v39  ;;  %v2632_v48 = vrot.slane %v7348_v63, 4 }
 0x4c4   : > { %3410 = vrot.lane.b32.xlu2 %v7344_v31, %s5921_s13  ;;  %v2644_v26 = vrot.slane %v7359_v14, 4  ;;  %v2657_v8 = vsel %vm580_vm0, %v7305_v30, %v2656_v38  ;;  %v2757_v62 = vsel %vm580_vm0, %v2615_v6, %v2756_v20  ;;  %v7434_v10 = vperm.slane %v2769_v21, %v6231_v42 }
 0x4c5   : > { %v2673_v34 = vperm.slane %v2667_v1, %v6242_v58  ;;  %v2714_v50 = vrot.slane %v2697_v19, 4  ;;  %v2785_v63 = vperm.slane %v2779_v32, %v6242_v58  ;;  %v2826_v30 = vrot.slane %v2809_v25, 4 }
 0x4c6   : > { %v2732_v14 = vrot.slane %v2603_v27, 4  ;;  %v2745_v6 = vsel %vm580_vm0, %v7339_v22, %v2744_v24  ;;  %v2665_v36 = vperm.slane %v2657_v8, %v6231_v42  ;;  %v2645_v49 = vsel %vm580_vm0, %v7334_v46, %v2644_v26 }
 0x4c7   : > { %v2620_v28 = vrot.slane %v2491_v53, 4  ;;  %v2633_v61 = vsel %vm580_vm0, %v7326_v4, %v2632_v48  ;;  %v7452_v59 = vperm.slane %v2745_v6, %v6231_v42  ;;  %v7455_v13 = vperm.slane %v2757_v62, %v6231_v42 }
 0x4c8   : > { %v2814_v47 = vrot.slane %v7434_v10, 4  ;;  %v2733_v22 = vsel %vm580_vm0, %v7365_v11, %v2732_v14  ;;  %v2780_v41 = vrot.slane %v2737_v39, 4  ;;  %v7461_v0 = vsel %vm580_vm0, %v2714_v50, %v2673_v34 }
 0x4c9   : > { %v7464_v46 = vsel %vm580_vm0, %v2826_v30, %v2785_v63  ;;  %v2641_v4 = vperm.slane %v2633_v61, %v6231_v42  ;;  %v2653_v60 = vperm.slane %v2645_v49, %v6231_v42  ;;  %v2702_v53 = vrot.slane %v2665_v36, 4 }
 0x4ca   : > { %v2621_v51 = vsel %vm580_vm0, %v7352_v3, %v2620_v28  ;;  %v2668_v9 = vrot.slane %v2625_v52, 4  ;;  %v2828_v11 = vrot.slane %v2785_v63, 4  ;;  %v7475_v27 = vperm.slane %v2733_v22, %v6231_v42 }
 0x4cb   : > { %3434 = vrot.lane.b32.xlu0 %v7344_v31, %s5923_s15  ;;  %3428 = vrot.lane.b32.xlu1 %v7344_v31, %s5926_s20  ;;  %v2790_v35 = vrot.slane %v7452_v59, 4  ;;  %v2815_v37 = vsel %vm580_vm0, %v2814_v47, %v7455_v13  ;;  %v2781_v3 = vsel %vm580_vm0, %v2749_v5, %v2780_v41  ;;  %v2716_v7 = vrot.slane %v2673_v34, 4 }
 0x4cc   : > { %3416 = vrot.lane.b32.xlu2 %v7344_v31, %s5924_s18  ;;  %v2629_v43 = vperm.slane %v2621_v51, %v6231_v42  ;;  %v2678_v23 = vrot.slane %v2641_v4, 4  ;;  %v2703_v52 = vsel %vm580_vm0, %v2702_v53, %v2653_v60  ;;  %v7486_v33 = vperm.slane %v2815_v37, %v6242_v58 }
 0x4cd   : > { %v2669_v44 = vsel %vm580_vm0, %v7392_v45, %v2668_v9  ;;  %v2804_v39 = vrot.slane %v7401_v55, 4  ;;  %v2829_v56 = vsel %vm580_vm0, %v2809_v25, %v2828_v11  ;;  %v2791_v15 = vsel %vm580_vm0, %v2790_v35, %v7475_v27  ;;  %v3150_v35 = vpop.f32.mrf.mxu1 }
 0x4ce   : > { %v2789_v5 = vperm.slane %v2781_v3, %v6242_v58  ;;  %v2709_v38 = vperm.slane %v2703_v52, %v6242_v58  ;;  %v2692_v40 = vrot.slane %v7395_v2, 4  ;;  %v2717_v20 = vsel %vm580_vm0, %v2697_v19, %v2716_v7 }
 0x4cf   : > { %v2679_v24 = vsel %vm580_vm0, %v2678_v23, %v2629_v43  ;;  %v2677_v21 = vperm.slane %v2669_v44, %v6242_v58  ;;  %v5747_v45 = vpack.i.bf16 %v2829_v56, %v2717_v20  ;;  %v2797_v55 = vperm.slane %v2791_v15, %v6242_v58  ;;  %v5802_v15 = vld [vmem:[%s8772_s5 + $0x2] ss:$0 sm:$0xff] }
 0x4d0   : > { %v2834_v1 = vrot.slane %v7486_v33, 4  ;;  %v2805_v25 = vsel %vm580_vm0, %v7383_v12, %v2804_v39  ;;  %v2832_v2 = vrot.slane %v2789_v5, 4  ;;  %v2704_v19 = vrot.slane %v2653_v60, 4 }
 0x4d1   : > { %v2685_v32 = vperm.slane %v2679_v24, %v6242_v58  ;;  %v2722_v48 = vrot.slane %v2709_v38, 4  ;;  %v2693_v26 = vsel %vm580_vm0, %v7375_v57, %v2692_v40  ;;  %v2720_v8 = vrot.slane %v2677_v21, 4 }
 0x4d2   : > { %v2813_v62 = vperm.slane %v2805_v25, %v6242_v58  ;;  %v2835_v12 = vsel %vm580_vm0, %v2834_v1, %v2797_v55  ;;  %v2701_v34 = vperm.slane %v2693_v26, %v6242_v58  ;;  %v2680_v63 = vrot.slane %v2629_v43, 4 }
 0x4d3   : > { %3422 = vrot.lane.b32.xlu0 %v7344_v31, %s5925_s19  ;;  %3436 = vrot.lane.b32.xlu1 %v7425_v29, %s5923_s15  ;;  %v2705_v30 = vsel %vm580_vm0, %v2665_v36, %v2704_v19  ;;  %v2723_v14 = vsel %vm580_vm0, %v2722_v48, %v2685_v32  ;;  %v2816_v22 = vrot.slane %v7455_v13, 4  ;;  %v2724_v51 = vrot.slane %v2685_v32, 4 }
 0x4d4   : > { %3440 = vrot.lane.b32.xlu2 %v7344_v31, %s5927_s21  ;;  %v2833_v50 = vsel %vm580_vm0, %v2813_v62, %v2832_v2  ;;  %v5742_v6 = vpack.i.bf16 %v2835_v12, %v2723_v14  ;;  %v2721_v49 = vsel %vm580_vm0, %v2701_v34, %v2720_v8  ;;  %v2713_v57 = vperm.slane %v2705_v30, %v6242_v58 }
 0x4d5   : > { %v5757_v28 = vpack.i.bf16 %v2833_v50, %v2721_v49  ;;  %v2830_v61 = vrot.slane %v2813_v62, 4  ;;  %v2681_v47 = vsel %vm580_vm0, %v2641_v4, %v2680_v63  ;;  %v2718_v36 = vrot.slane %v2701_v34, 4  ;;  %v3153_v44 = vpop.f32.mrf.mxu1 }
 0x4d6   : > { %v2689_v41 = vperm.slane %v2681_v47, %v6242_v58  ;;  %v2726_v60 = vrot.slane %v2713_v57, 4  ;;  %v2792_v9 = vrot.slane %v7475_v27, 4  ;;  %v2817_v11 = vsel %vm580_vm0, %v7434_v10, %v2816_v22 }
 0x4d7   : > { %v2831_v53 = vsel %vm580_vm0, %v2830_v61, %v2789_v5  ;;  %v2719_v37 = vsel %vm580_vm0, %v2718_v36, %v2677_v21  ;;  %v2825_v3 = vperm.slane %v2817_v11, %v6242_v58  ;;  %v2725_v7 = vsel %vm580_vm0, %v2709_v38, %v2724_v51 }
 0x4d8   : > { %v5752_v4 = vpack.i.bf16 %v2831_v53, %v2719_v37  ;;  %v2727_v13 = vsel %vm580_vm0, %v2726_v60, %v2689_v41  ;;  %v2793_v27 = vsel %vm580_vm0, %v7452_v59, %v2792_v9  ;;  %v2728_v23 = vrot.slane %v2689_v41, 4 }
 0x4d9   : > { %v2801_v10 = vperm.slane %v2793_v27, %v6242_v58  ;;  %v2838_v43 = vrot.slane %v2825_v3, 4  ;;  %v2836_v52 = vrot.slane %v2797_v55, 4  ;;  %v7551_v5 = vadd.f32 %v5802_v15, %v3153_v44 }
 0x4da   : > { %v2729_v56 = vsel %vm580_vm0, %v2713_v57, %v2728_v23  ;;  %v7553_v40 = vadd.f32 %v5802_v15, %v3150_v35  ;;  %v3180_v55 = vrot.slane %v7271_v54, 4 }
 0x4db   : > { %3418 = vrot.lane.b32.xlu0 %v7425_v29, %s5924_s18  ;;  %3424 = vrot.lane.b32.xlu1 %v7425_v29, %s5925_s19  ;;  %v2839_v39 = vsel %vm580_vm0, %v2838_v43, %v2801_v10  ;;  %v2837_v59 = vsel %vm580_vm0, %v7486_v33, %v2836_v52  ;;  %v2840_v38 = vrot.slane %v2801_v10, 4 }
 0x4dc   : > { %3412 = vrot.lane.b32.xlu2 %v7425_v29, %s5921_s13  ;;  %v7557_v20 = vpack.i.bf16 %v7553_v40, %v7551_v5 }
 0x4dd   : > { %v2841_v24 = vsel %vm580_vm0, %v2825_v3, %v2840_v38  ;;  %v3448_v3 = vrot.slane %v7344_v31, 4 }
 0x4e3   : > { %3406 = vrot.lane.b32.xlu0 %v7425_v29, %s5922_s14  ;;  %3430 = vrot.lane.b32.xlu1 %v7425_v29, %s5926_s20 }
 0x4e4   : > { %5748 = vrot.lane.b32.xlu2 %v5747_v45, %s5927_s21 }
 0x4eb   : > { %3442 = vrot.lane.b32.xlu0 %v7425_v29, %s5927_s21  ;;  %5743 = vrot.lane.b32.xlu1 %v5742_v6, %s5925_s19 }
 0x4ec   : > { %5758 = vrot.lane.b32.xlu2 %v5757_v28, %s5926_s20 }
 0x4f3   : > { %2884 = vrot.lane.b32.xlu1 %v2727_v13, %s5921_s13  ;;  %5753 = vrot.lane.b32.xlu0 %v5752_v4, %s5923_s15 }
 0x4f4   : > { %2876 = vrot.lane.b32.xlu2 %v2725_v7, %s5924_s18 }
 0x4fb   : > { %2886 = vrot.lane.b32.xlu1 %v2839_v39, %s5921_s13  ;;  %2892 = vrot.lane.b32.xlu0 %v2729_v56, %s5922_s14 }
 0x4fc   : > { %2878 = vrot.lane.b32.xlu2 %v2837_v59, %s5924_s18 }
 0x503   : > { %5773 = vrot.lane.b32.xlu1 %v7557_v20, %s5925_s19  ;;  %2894 = vrot.lane.b32.xlu0 %v2841_v24, %s5922_s14 }
 0x504   : > { %5763 = vrot.lane.b32.xlu2 %v7557_v20, %s5922_s14 }
 0x50b   : > { %5768 = vrot.lane.b32.xlu0 %v7557_v20, %s5921_s13 }
 0x50e   : > { %v3161_v33 = vpop.permute.xlu2 %3160 }
 0x50f   : > { %v3178_v45 = vrot.slane %v3161_v33, 4  ;;  %v3181_v25 = vsel %vm580_vm0, %v3161_v33, %v3180_v55 }
 0x510   : > { %v3189_v19 = vperm.slane %v3181_v25, %v6231_v42 }
 0x511   : > { %v3179_v2 = vsel %vm580_vm0, %v3178_v45, %v7271_v54  ;;  %v5625_v45 = vld [vmem:[%s8769_s2 + $0x1f0] sm:$0xff] }
 0x512   : > { %v3185_v48 = vperm.slane %v3179_v2, %v6231_v42  ;;  %v3240_v34 = vrot.slane %v3189_v19, 4 }
 0x513   : > { %5778 = vrot.lane.b32.xlu0 %v7557_v20, %s5923_s15 }
 0x514   : > { %v3228_v14 = vrot.slane %v3185_v48, 4 }
 0x516   : > { %v3158_v21 = vpop.permute.xlu2 %3157 }
 0x517   : > { %v3192_v32 = vrot.slane %v3158_v21, 4 }
 0x51e   : > { %v3411_v1 = vpop.permute.xlu2 %3410 }
 0x51f   : > { %v3446_v53 = vrot.slane %v3411_v1, 4  ;;  %v3449_v39 = vsel %vm580_vm0, %v3411_v1, %v3448_v3 }
 0x521   : > { %v3447_v37 = vsel %vm580_vm0, %v3446_v53, %v7344_v31 }
 0x522   : > { %v7600_v56 = vperm.slane %v3447_v37, %v6231_v42 }
 0x525   : > { %v3173_v26 = vpop.permute.xlu0 %3172  ;;  %v3164_v8 = vpop.permute.xlu1 %3163 }
 0x526   : > { %v3190_v62 = vrot.slane %v3164_v8, 4  ;;  %v3193_v12 = vsel %vm580_vm0, %v3164_v8, %v3192_v32  ;;  %v7578_v30 = vpop.permute.xlu2 %3416  ;;  %v3202_v41 = vrot.slane %v3173_v26, 4  ;;  %v5624_v8 = vld [vmem:[%s8769_s2 + $0x1e8] sm:$0xff] }
 0x527   : > { %v3201_v50 = vperm.slane %v3193_v12, %v6231_v42  ;;  %v3458_v38 = vrot.slane %v7578_v30, 4 }
 0x528   : > { %v3191_v63 = vsel %vm580_vm0, %v3190_v62, %v3158_v21  ;;  %v5626_v21 = vld [vmem:[%s8769_s2 + $0x1f8] sm:$0xff] }
 0x529   : > { %v3197_v54 = vperm.slane %v3191_v63, %v6231_v42  ;;  %v3238_v6 = vrot.slane %v3201_v50, 4  ;;  %v3241_v49 = vsel %vm580_vm0, %v3201_v50, %v3240_v34  ;;  %2940 = vmatpush.msrb.mxu2 %v5626_v21 }
 0x52a   : > { %v3249_v7 = vperm.slane %v3241_v49, %v6242_v58 }
 0x52b   : > { %v3226_v28 = vrot.slane %v3197_v54, 4  ;;  %v3229_v57 = vsel %vm580_vm0, %v3197_v54, %v3228_v14  ;;  %v3239_v61 = vsel %vm580_vm0, %v3238_v6, %v3189_v19  ;;  %2941 = vmatpush.msrb.mxu2 %v5625_v45 }
 0x52c   : > { %v3237_v23 = vperm.slane %v3229_v57, %v6242_v58  ;;  %v7604_v31 = vperm.slane %v3239_v61, %v6242_v58 }
 0x52d   : > { %v3227_v47 = vsel %vm580_vm0, %v3226_v28, %v3185_v48  ;;  %v3176_v22 = vpop.permute.xlu0 %3175  ;;  %v3167_v36 = vpop.permute.xlu1 %3166  ;;  %v3288_v48 = vrot.slane %v3249_v7, 4  ;;  %2942 = vmatpush.msrb.mxu2 %v5624_v8 }
 0x52e   : > { %v3204_v60 = vrot.slane %v3167_v36, 4  ;;  %v3203_v51 = vsel %vm580_vm0, %v3202_v41, %v3167_v36  ;;  %v7587_v11 = vpop.permute.xlu2 %3440  ;;  %v3214_v4 = vrot.slane %v3176_v22, 4  ;;  %v3233_v43 = vperm.slane %v3227_v47, %v6242_v58 }
 0x52f   : > { %v3209_v35 = vperm.slane %v3203_v51, %v6231_v42  ;;  %v3280_v32 = vrot.slane %v3237_v23, 4  ;;  %v3284_v28 = vrot.slane %v7604_v31, 4  ;;  %v3482_v21 = vrot.slane %v7587_v11, 4 }
 0x530   : > { %v3205_v9 = vsel %vm580_vm0, %v3173_v26, %v3204_v60  ;;  %v3276_v19 = vrot.slane %v3233_v43, 4 }
 0x531   : > { %v3213_v13 = vperm.slane %v3205_v9, %v6231_v42  ;;  %v3252_v15 = vrot.slane %v3209_v35, 4 }
 0x533   : > { %v3264_v24 = vrot.slane %v3213_v13, 4 }
 0x535   : > { %v3170_v27 = vpop.permute.xlu0 %3169  ;;  %v3405_v10 = vpop.permute.xlu1 %3404 }
 0x536   : > { %v3215_v52 = vsel %vm580_vm0, %v3214_v4, %v3170_v27  ;;  %v3216_v44 = vrot.slane %v3170_v27, 4  ;;  %v3460_v2 = vrot.slane %v3405_v10, 4  ;;  %v3459_v50 = vsel %vm580_vm0, %v3458_v38, %v3405_v10  ;;  %v3413_v49 = vpop.permute.xlu2 %3412  ;;  %v5623_v10 = vld [vmem:[%s8769_s2 + $0x1e0] sm:$0xff] }
 0x537   : > { %v3221_v59 = vperm.slane %v3215_v52, %v6231_v42  ;;  %v3560_v27 = vrot.slane %v7425_v29, 4  ;;  %v3457_v52 = vperm.slane %v3449_v39, %v6231_v42  ;;  %2943 = vmatpush.msrb.mxu2 %v5623_v10 }
 0x538   : > { %v3217_v33 = vsel %vm580_vm0, %v3176_v22, %v3216_v44  ;;  %v3461_v47 = vsel %vm580_vm0, %v7578_v30, %v3460_v2  ;;  %v3465_v30 = vperm.slane %v3459_v50, %v6231_v42 }
 0x539   : > { %v3225_v55 = vperm.slane %v3217_v33, %v6231_v42  ;;  %v3250_v1 = vrot.slane %v3221_v59, 4  ;;  %v3253_v25 = vsel %vm580_vm0, %v3221_v59, %v3252_v15  ;;  %v3469_v15 = vperm.slane %v3461_v47, %v6231_v42  ;;  %v5621_v33 = vld [vmem:[%s8769_s2 + $0x1d0] sm:$0xff] }
 0x53a   : > { %v3261_v26 = vperm.slane %v3253_v25, %v6242_v58  ;;  %v3496_v59 = vrot.slane %v7600_v56, 4  ;;  %v3494_v39 = vrot.slane %v3465_v30, 4  ;;  %v3561_v45 = vsel %vm580_vm0, %v3413_v49, %v3560_v27 }
 0x53b   : > { %v3251_v62 = vsel %vm580_vm0, %v3250_v1, %v3209_v35  ;;  %v3262_v12 = vrot.slane %v3225_v55, 4  ;;  %v3265_v34 = vsel %vm580_vm0, %v3225_v55, %v3264_v24  ;;  %v3558_v24 = vrot.slane %v3413_v49, 4  ;;  %v5620_v1 = vld [vmem:[%s8769_s2 + $0x1c8] sm:$0xff] }
 0x53c   : > { %v3257_v63 = vperm.slane %v3251_v62, %v6242_v58  ;;  %v3273_v14 = vperm.slane %v3265_v34, %v6242_v58  ;;  %v3278_v54 = vrot.slane %v3261_v26, 4  ;;  %v3281_v6 = vsel %vm580_vm0, %v3261_v26, %v3280_v32 }
 0x53d   : > { %v3263_v57 = vsel %vm580_vm0, %v3262_v12, %v3213_v13  ;;  %v3302_v61 = vrot.slane %v3281_v6, 4  ;;  %v3435_v22 = vpop.permute.xlu0 %3434  ;;  %v3429_v36 = vpop.permute.xlu1 %3428  ;;  %v3497_v55 = vsel %vm580_vm0, %v3465_v30, %v3496_v59  ;;  %v3508_v25 = vrot.slane %v3457_v52, 4 }
 0x53e   : > { %v7631_v41 = vperm.slane %v3263_v57, %v6242_v58  ;;  %v3274_v60 = vrot.slane %v3257_v63, 4  ;;  %v3277_v53 = vsel %vm580_vm0, %v3257_v63, %v3276_v19  ;;  %v7635_v51 = vsel %vm580_vm0, %v3278_v54, %v3237_v23  ;;  %v5622_v23 = vld [vmem:[%s8769_s2 + $0x1d8] sm:$0xff]  ;;  %v5749_v50 = vpop.permute.xlu2 %5748 }
 0x53f   : > { %v3286_v9 = vrot.slane %v3273_v14, 4  ;;  %v7638_v35 = vsel %vm580_vm0, %v3273_v14, %v3288_v48  ;;  %v7641_v37 = vsel %vm580_vm0, %v3302_v61, %v3277_v53  ;;  %v3304_v3 = vrot.slane %v3277_v53, 4  ;;  %2944 = vmatpush.msrb.mxu2 %v5622_v23 }
 0x540   : > { %v7645_v4 = vsel %vm580_vm0, %v3274_v60, %v3233_v43  ;;  %v7649_v13 = vsel %vm580_vm0, %v7631_v41, %v3284_v28  ;;  %v3506_v2 = vrot.slane %v3469_v15, 4  ;;  %v3470_v19 = vrot.slane %v3435_v22, 4 }
 0x541   : > { %v7660_v43 = vsel %vm580_vm0, %v3286_v9, %v3249_v7  ;;  %v3328_v44 = vrot.slane %v7649_v13, 4  ;;  %v3305_v38 = vsel %vm580_vm0, %v3281_v6, %v3304_v3  ;;  %v3483_v32 = vsel %vm580_vm0, %v3482_v21, %v3429_v36  ;;  %2945 = vmatpush.msrb.mxu2 %v5621_v33 }
 0x542   : > { %v3559_v8 = vsel %vm580_vm0, %v3558_v24, %v7425_v29  ;;  %v7685_v62 = vperm.slane %v3561_v45, %v6231_v42  ;;  %v3484_v12 = vrot.slane %v3429_v36, 4  ;;  %v3489_v34 = vperm.slane %v3483_v32, %v6231_v42  ;;  %v5619_v45 = vld [vmem:[%s8769_s2 + $0x1c0] sm:$0xff] }
 0x543   : > { %v7672_v7 = vsel %vm580_vm0, %v7638_v35, %v3328_v44  ;;  %v3495_v63 = vsel %vm580_vm0, %v3494_v39, %v7600_v56  ;;  %v7691_v14 = vperm.slane %v3497_v55, %v6242_v58  ;;  %2946 = vmatpush.msrb.mxu2 %v5620_v1  ;;  %v3290_v49 = vrot.slane %v7635_v51, 4  ;;  %v5618_v55 = vld [vmem:[%s8769_s2 + $0x1b8] sm:$0xff] }
 0x544   : > { %v3485_v29 = vsel %vm580_vm0, %v7587_v11, %v3484_v12  ;;  %v3518_v28 = vrot.slane %v3489_v34, 4  ;;  %v3507_v61 = vsel %vm580_vm0, %v3506_v2, %v3457_v52  ;;  %v3509_v47 = vsel %vm580_vm0, %v3469_v15, %v3508_v25 }
 0x545   : > { %v3423_v48 = vpop.permute.xlu0 %3422  ;;  %v7680_v26 = vpop.permute.xlu1 %3436  ;;  %v3493_v56 = vperm.slane %v3485_v29, %v6231_v42  ;;  %v3282_v60 = vrot.slane %v7631_v41, 4  ;;  %v3501_v3 = vperm.slane %v3495_v63, %v6242_v58  ;;  %v7709_v23 = vperm.slane %v3507_v61, %v6242_v58  ;;  %2947 = vmatpush.msrb.mxu2 %v5619_v45 }
 0x546   : > { %v3471_v54 = vsel %vm580_vm0, %v3470_v19, %v3423_v48  ;;  %v3472_v6 = vrot.slane %v3423_v48, 4  ;;  %v7712_v52 = vperm.slane %v3509_v47, %v6242_v58  ;;  %v3326_v15 = vrot.slane %v7638_v35, 4  ;;  %v7742_v29 = vpop.permute.xlu2 %5758  ;;  %v5616_v47 = vld [vmem:[%s8769_s2 + $0x1a8] sm:$0xff] }
 0x547   : > { %v3477_v57 = vperm.slane %v3471_v54, %v6231_v42  ;;  %v3530_v27 = vrot.slane %v3493_v56, 4  ;;  %v7717_v59 = vperm.slane %v3559_v8, %v6231_v42  ;;  %v5750_v24 = vunpack.i.l.bf16 %v5749_v50  ;;  %2948 = vmatpush.msrb.mxu2 %v5618_v55 }
 0x548   : > { %v3473_v36 = vsel %vm580_vm0, %v3435_v22, %v3472_v6  ;;  %v7727_v1 = vperm.slane %v3305_v38, %v6231_v42  ;;  %v3314_v25 = vrot.slane %v7660_v43, 4  ;;  %v3544_v32 = vrot.slane %v3501_v3, 4 }
 0x549   : > { %v3481_v53 = vperm.slane %v3473_v36, %v6231_v42  ;;  %v3519_v9 = vsel %vm580_vm0, %v3518_v28, %v3477_v57  ;;  %v3520_v30 = vrot.slane %v3477_v57, 4  ;;  %v3548_v48 = vrot.slane %v7691_v14, 4 }
 0x54a   : > { %v3525_v10 = vperm.slane %v3519_v9, %v6242_v58  ;;  %v5751_v8 = vunpack.i.h.bf16 %v5749_v50  ;;  %v3552_v63 = vrot.slane %v7709_v23, 4  ;;  %v3556_v38 = vrot.slane %v7712_v52, 4 }
 0x54b   : > { %v3521_v22 = vsel %vm580_vm0, %v3489_v34, %v3520_v30  ;;  %v3532_v44 = vrot.slane %v3481_v53, 4  ;;  %v3531_v33 = vsel %vm580_vm0, %v3530_v27, %v3481_v53  ;;  %v5617_v34 = vld [vmem:[%s8769_s2 + $0x1b0] sm:$0xff]  ;;  %v3620_v54 = vrot.slane %v7685_v62, 4 }
 0x54c   : > { %v3529_v2 = vperm.slane %v3521_v22, %v6242_v58  ;;  %v3542_v19 = vrot.slane %v3525_v10, 4  ;;  %v7740_v6 = vperm.slane %v3531_v33, %v6242_v58  ;;  %v3608_v50 = vrot.slane %v7717_v59, 4  ;;  %2949 = vmatpush.msrb.mxu2 %v5617_v34  ;;  %v5615_v22 = vld [vmem:[%s8769_s2 + $0x1a0] sm:$0xff] }
 0x54d   : > { %v3419_v21 = vpop.permute.xlu0 %3418  ;;  %v3425_v39 = vpop.permute.xlu1 %3424  ;;  %v3533_v12 = vsel %vm580_vm0, %v3493_v56, %v3532_v44  ;;  %v7747_v28 = vsel %vm1520_vm1, %v7461_v0, %v5750_v24  ;;  %v7750_v57 = vsel %vm580_vm0, %v3525_v10, %v3544_v32  ;;  %v3582_v61 = vrot.slane %v7680_v26, 4  ;;  %v5614_v32 = vld [vmem:[%s8769_s2 + $0x198] sm:$0xff] }
 0x54e   : > { %v3541_v56 = vperm.slane %v3533_v12, %v6242_v58  ;;  %v7758_v36 = vsel %vm580_vm0, %v3542_v19, %v3501_v3  ;;  %v3546_v53 = vrot.slane %v3529_v2, 4  ;;  %v7761_v9 = vsel %vm580_vm0, %v3529_v2, %v3548_v48  ;;  %2950 = vmatpush.msrb.mxu2 %v5616_v47 }
 0x54f   : > { %v7765_v0 = vsel %vm1520_vm1, %v7464_v46, %v5751_v8  ;;  %v3584_v10 = vrot.slane %v3425_v39, 4  ;;  %v3550_v3 = vrot.slane %v7740_v6, 4  ;;  %v7775_v44 = vsel %vm580_vm0, %v7740_v6, %v3552_v63 }
 0x550   : > { %v3570_v33 = vrot.slane %v3419_v21, 4  ;;  %v3682_v45 = vrot.slane %v7761_v9, 4  ;;  %v3583_v55 = vsel %vm580_vm0, %v3582_v61, %v3425_v39  ;;  %v7788_v48 = vsel %vm580_vm0, %v3282_v60, %v7604_v31  ;;  %2951 = vmatpush.msrb.mxu2 %v5615_v22  ;;  %v5613_v31 = vld [vmem:[%s8769_s2 + $0x190] sm:$0xff] }
 0x551   : > { %v7792_v8 = vsel %vm580_vm0, %v3546_v53, %v7691_v14  ;;  %v7795_v12 = vsel %vm580_vm0, %v3541_v56, %v3556_v38  ;;  %v3585_v63 = vsel %vm580_vm0, %v7680_v26, %v3584_v10  ;;  %v3291_v41 = vsel %vm580_vm0, %v3290_v49, %v7645_v4  ;;  %v5612_v49 = vld [vmem:[%s8769_s2 + $0x188] sm:$0xff] }
 0x552   : > { %v3315_v14 = vsel %vm580_vm0, %v3314_v25, %v7788_v48  ;;  %v3554_v60 = vrot.slane %v3541_v56, 4  ;;  %v3589_v61 = vperm.slane %v3583_v55, %v6231_v42  ;;  %2952 = vmatpush.msrb.mxu2 %v5614_v32  ;;  %v3670_v47 = vrot.slane %v7792_v8, 4  ;;  %v5611_v32 = vld [vmem:[%s8769_s2 + $0x180] sm:$0xff] }
 0x553   : > { %v3683_v25 = vsel %vm580_vm0, %v3682_v45, %v7750_v57  ;;  %v3706_v56 = vrot.slane %v7795_v12, 4 }
 0x554   : > { %2953 = vmatpush.msrb.mxu2 %v5613_v31  ;;  %v3632_v35 = vrot.slane %v3589_v61, 4 }
 0x555   : > { %v3407_v2 = vpop.permute.xlu0 %3406  ;;  %v3431_v19 = vpop.permute.xlu1 %3430 }
 0x556   : > { %v3571_v39 = vsel %vm580_vm0, %v3570_v33, %v3407_v2  ;;  %v3572_v34 = vrot.slane %v3407_v2, 4  ;;  %v3593_v33 = vperm.slane %v3585_v63, %v6231_v42  ;;  %2954 = vmatpush.msrb.mxu2 %v5612_v49 }
 0x557   : > { %v3577_v6 = vperm.slane %v3571_v39, %v6231_v42  ;;  %v7840_v39 = vsel %vm580_vm0, %v3554_v60, %v7712_v52  ;;  %v3671_v52 = vsel %vm580_vm0, %v3670_v47, %v7758_v36  ;;  %v7855_v60 = vperm.slane %v3291_v41, %v6231_v42 }
 0x558   : > { %v3573_v26 = vsel %vm580_vm0, %v3419_v21, %v3572_v34  ;;  %v7827_v21 = vsel %vm580_vm0, %v3326_v15, %v7649_v13  ;;  %v3596_v13 = vrot.slane %v3431_v19, 4  ;;  %v7844_v15 = vperm.slane %v7641_v37, %v6231_v42  ;;  %2955 = vmatpush.msrb.mxu2 %v5611_v32 }
 0x559   : > { %v3581_v53 = vperm.slane %v3573_v26, %v6231_v42  ;;  %v3606_v10 = vrot.slane %v3577_v6, 4  ;;  %v3609_v22 = vsel %vm580_vm0, %v3577_v6, %v3608_v50  ;;  %v3644_v6 = vrot.slane %v3593_v33, 4 }
 0x55a   : > { %v7832_v55 = vperm.slane %v3609_v22, %v6242_v58  ;;  %v7858_v37 = vperm.slane %v3315_v14, %v6231_v42  ;;  %v7867_v47 = vsel %vm580_vm0, %v3550_v3, %v7709_v23  ;;  %v7872_v49 = vperm.slane %v3671_v52, %v6231_v42  ;;  %v2877_v3 = vpop.permute.xlu2 %2876 }
 0x55b   : > { %v3607_v50 = vsel %vm580_vm0, %v3606_v10, %v7717_v59  ;;  %v3618_v2 = vrot.slane %v3581_v53, 4  ;;  %v3621_v45 = vsel %vm580_vm0, %v3581_v53, %v3620_v54  ;;  %v3694_v14 = vrot.slane %v7840_v39, 4 }
 0x55c   : > { %v7847_v59 = vperm.slane %v3607_v50, %v6242_v58  ;;  %v3629_v34 = vperm.slane %v3621_v45, %v6242_v58  ;;  %v3660_v53 = vrot.slane %v7832_v55, 4  ;;  %v7878_v32 = vperm.slane %v3683_v25, %v6231_v42 }
 0x55d   : > { %v3619_v54 = vsel %vm580_vm0, %v3618_v2, %v7685_v62  ;;  %v3443_v63 = vpop.permute.xlu0 %3442  ;;  %v7863_v10 = vpop.permute.xlu1 %5743 }
 0x55e   : > { %v3594_v31 = vrot.slane %v3443_v63, 4  ;;  %v3625_v26 = vperm.slane %v3619_v54, %v6242_v58  ;;  %v3597_v62 = vsel %vm580_vm0, %v3443_v63, %v3596_v13  ;;  %v3656_v50 = vrot.slane %v7847_v59, 4 }
 0x55f   : > { %v3605_v41 = vperm.slane %v3597_v62, %v6231_v42  ;;  %v3668_v2 = vrot.slane %v3629_v34, 4 }
 0x560   : > { %v3595_v22 = vsel %vm580_vm0, %v3594_v31, %v3431_v19  ;;  %v5745_v19 = vunpack.i.l.bf16 %v7863_v10  ;;  %v3664_v54 = vrot.slane %v3625_v26, 4 }
 0x561   : > { %v3601_v45 = vperm.slane %v3595_v22, %v6231_v42  ;;  %v3642_v13 = vrot.slane %v3605_v41, 4  ;;  %v3645_v23 = vsel %vm580_vm0, %v3605_v41, %v3644_v6  ;;  %v3695_v6 = vsel %vm580_vm0, %v3694_v14, %v7867_v47 }
 0x562   : > { %v3653_v31 = vperm.slane %v3645_v23, %v6242_v58  ;;  %v3707_v22 = vsel %vm580_vm0, %v3706_v56, %v7775_v44 }
 0x563   : > { %v3630_v63 = vrot.slane %v3601_v45, 4  ;;  %v3633_v52 = vsel %vm580_vm0, %v3601_v45, %v3632_v35  ;;  %v3643_v25 = vsel %vm580_vm0, %v3642_v13, %v3593_v33 }
 0x564   : > { %v3641_v62 = vperm.slane %v3633_v52, %v6242_v58  ;;  %v3649_v11 = vperm.slane %v3643_v25, %v6242_v58  ;;  %v3666_v38 = vrot.slane %v3653_v31, 4  ;;  %v3669_v35 = vsel %vm580_vm0, %v3653_v31, %v3668_v2 }
 0x565   : > { %v3631_v41 = vsel %vm580_vm0, %v3630_v63, %v3589_v61  ;;  %v5754_v45 = vpop.permute.xlu0 %5753  ;;  %v3818_v13 = vrot.slane %v3669_v35, 4 }
 0x566   : > { %v3637_v23 = vperm.slane %v3631_v41, %v6242_v58  ;;  %v3658_v52 = vrot.slane %v3641_v62, 4  ;;  %v3661_v33 = vsel %vm580_vm0, %v3641_v62, %v3660_v53  ;;  %v3662_v14 = vrot.slane %v3649_v11, 4 }
 0x567   : > { %v3665_v24 = vsel %vm580_vm0, %v3649_v11, %v3664_v54  ;;  %v3667_v56 = vsel %vm580_vm0, %v3666_v38, %v3629_v34  ;;  %v3794_v61 = vrot.slane %v3661_v33, 4  ;;  %v7904_v62 = vperm.slane %v3695_v6, %v6231_v42 }
 0x568   : > { %v3654_v63 = vrot.slane %v3637_v23, 4  ;;  %v3657_v25 = vsel %vm580_vm0, %v3637_v23, %v3656_v50  ;;  %v3659_v2 = vsel %vm580_vm0, %v3658_v52, %v7832_v55  ;;  %v3806_v31 = vrot.slane %v3667_v56, 4  ;;  %v2885_v55 = vpop.permute.xlu1 %2884 }
 0x569   : > { %v3663_v41 = vsel %vm580_vm0, %v3662_v14, %v3625_v26  ;;  %v3782_v46 = vrot.slane %v3659_v2, 4  ;;  %v3819_v53 = vsel %vm580_vm0, %v3818_v13, %v3665_v24  ;;  %v3820_v54 = vrot.slane %v3665_v24, 4 }
 0x56a   : > { %v3808_v11 = vrot.slane %v3663_v41, 4  ;;  %v5756_v38 = vunpack.i.h.bf16 %v5754_v45  ;;  %v7907_v34 = vperm.slane %v3707_v22, %v6231_v42  ;;  %v7910_v50 = vperm.slane %v3819_v53, %v6231_v42 }
 0x56b   : > { %v5755_v23 = vunpack.i.l.bf16 %v5754_v45  ;;  %v3655_v26 = vsel %vm580_vm0, %v3654_v63, %v7847_v59  ;;  %v3795_v52 = vsel %vm580_vm0, %v3794_v61, %v3657_v25  ;;  %v3821_v6 = vsel %vm580_vm0, %v3669_v35, %v3820_v54 }
 0x56c   : > { %v3783_v13 = vsel %vm580_vm0, %v3782_v46, %v3655_v26  ;;  %v3807_v24 = vsel %vm580_vm0, %v3806_v31, %v3663_v41  ;;  %v3718_v22 = vrot.slane %v7878_v32, 4  ;;  %v3796_v14 = vrot.slane %v3657_v25, 4 }
 0x56d   : > { %v2901_v53 = vsel %vm2900_vm15, %v7747_v28, %v5755_v23  ;;  %v2902_v45 = vsel %vm2900_vm15, %v7765_v0, %v5756_v38  ;;  %v2893_v30 = vpop.permute.xlu0 %2892  ;;  %v3784_v27 = vrot.slane %v3655_v26, 4  ;;  %v3809_v59 = vsel %vm580_vm0, %v3667_v56, %v3808_v11 }
 0x56e   : > { %v8792_v61 = vunpack.i.l.bf16 %v7742_v29  ;;  %v7928_v46 = vperm.slane %v3783_v13, %v6231_v42  ;;  %v7931_v63 = vperm.slane %v3795_v52, %v6231_v42  ;;  %v3829_v25 = vperm.slane %v3821_v6, %v6231_v42 }
 0x56f   : > { %v7936_v0 = vperm.slane %v3807_v24, %v6231_v42  ;;  %v3854_v31 = vrot.slane %v7910_v50, 4  ;;  %v8793_v56 = vunpack.i.h.bf16 %v7742_v29  ;;  %v3785_v38 = vsel %vm580_vm0, %v3659_v2, %v3784_v27 }
 0x570   : > { %v2904_v35 = vsel %vm2903_vm3, %v2901_v53, %v8792_v61  ;;  %v3830_v54 = vrot.slane %v7931_v63, 4  ;;  %v3793_v26 = vperm.slane %v3785_v38, %v6231_v42  ;;  %v3797_v52 = vsel %vm580_vm0, %v3661_v33, %v3796_v14  ;;  %v2879_v61 = vpop.permute.xlu2 %2878 }
 0x571   : > { %v2907_v28 = vsel %vm2906_vm4, %v2904_v35, %v5745_v19  ;;  %v2905_v41 = vsel %vm2903_vm3, %v2902_v45, %v8793_v56  ;;  %v3855_v19 = vsel %vm580_vm0, %v3854_v31, %v7936_v0  ;;  %v3805_v13 = vperm.slane %v3797_v52, %v6231_v42  ;;  %v2887_v35 = vpop.permute.xlu1 %2886 }
 0x572   : > { %v2910_v11 = vsel %vm2909_vm6, %v2907_v28, %v2877_v3  ;;  %v3831_v29 = vsel %vm580_vm0, %v3830_v54, %v7928_v46  ;;  %v3861_v3 = vperm.slane %v3855_v19, %v6242_v58  ;;  %v8794_v27 = vunpack.i.h.bf16 %v7863_v10 }
 0x573   : > { %v2913_v23 = vsel %vm2912_vm5, %v2910_v11, %v2885_v55  ;;  %v3837_v55 = vperm.slane %v3831_v29, %v6242_v58  ;;  %v3817_v24 = vperm.slane %v3809_v59, %v6231_v42  ;;  %v3866_v53 = vrot.slane %v3829_v25, 4 }
 0x574   : > { %v2916_v6 = vsel %vm2915_vm7, %v2913_v23, %v2893_v30  ;;  %v2908_v2 = vsel %vm2906_vm4, %v2905_v41, %v8794_v27  ;;  %v3878_v33 = vrot.slane %v3861_v3, 4  ;;  %v3842_v14 = vrot.slane %v3805_v13, 4 }
 0x575   : > { %2956 = vmatmul.f32.vlgmr.msrb.gmra.mxu2 %v2916_v6  ;;  %v3719_v30 = vsel %vm580_vm0, %v3718_v22, %v7872_v49  ;;  %v3742_v45 = vrot.slane %v7907_v34, 4  ;;  %v3880_v28 = vrot.slane %v3837_v55, 4  ;;  %v3867_v10 = vsel %vm580_vm0, %v3866_v53, %v3817_v24  ;;  %v2895_v38 = vpop.permute.xlu0 %2894 }
 0x576   : > { %v3844_v31 = vrot.slane %v3793_v26, 4  ;;  %v3868_v56 = vrot.slane %v3817_v24, 4  ;;  %v2911_v41 = vsel %vm2909_vm6, %v2908_v2, %v2879_v61  ;;  %v3879_v11 = vsel %vm580_vm0, %v3878_v33, %v3837_v55 }
 0x577   : > { %v3843_v59 = vsel %vm580_vm0, %v3842_v14, %v3793_v26  ;;  %v7968_v54 = vperm.slane %v3867_v10, %v6242_v58  ;;  %5664 = vmatpush.xpose.msk.msra.mxu0 %vm1520_vm1, %v3879_v11  ;;  %v3881_v22 = vsel %vm580_vm0, %v3861_v3, %v3880_v28  ;;  %v3725_v19 = vperm.slane %v3719_v30, %v6242_v58 }
 0x578   : > { %v7973_v23 = vperm.slane %v3843_v59, %v6242_v58  ;;  %v3743_v52 = vsel %vm580_vm0, %v3742_v45, %v7904_v62  ;;  %v2914_v6 = vsel %vm2912_vm5, %v2911_v41, %v2887_v35  ;;  %5667 = vmatpush.xpose.msk.msra.mxu2 %vm1520_vm1, %v3881_v22  ;;  %v3845_v27 = vsel %vm580_vm0, %v3805_v13, %v3844_v31 }
 0x579   : > { %v3886_v26 = vrot.slane %v7968_v54, 4  ;;  %v3749_v29 = vperm.slane %v3743_v52, %v6242_v58  ;;  %v3696_v3 = vrot.slane %v7867_v47, 4  ;;  %v7985_v2 = vperm.slane %v3845_v27, %v6242_v58 }
 0x57a   : > { %v3869_v55 = vsel %vm580_vm0, %v3829_v25, %v3868_v56  ;;  %v2917_v24 = vsel %vm2915_vm7, %v2914_v6, %v2895_v38  ;;  %v3832_v30 = vrot.slane %v7928_v46, 4  ;;  %v3856_v47 = vrot.slane %v7936_v0, 4 }
 0x57b   : > { %v3887_v53 = vsel %vm580_vm0, %v3886_v26, %v7973_v23  ;;  %v3766_v33 = vrot.slane %v3749_v29, 4  ;;  %v7992_v14 = vperm.slane %v3869_v55, %v6242_v58  ;;  %v3768_v13 = vrot.slane %v3725_v19, 4 }
 0x57c   : > { %5676 = vmatpush.xpose.msk.msra.mxu3 %vm1520_vm1, %v3887_v53  ;;  %v8795_v45 = vrot.slane %v7758_v36, 4  ;;  %v8796_v61 = vrot.slane %v7750_v57, 4  ;;  %v3833_v10 = vsel %vm580_vm0, %v7931_v63, %v3832_v30  ;;  %v3697_v63 = vsel %vm580_vm0, %v7840_v39, %v3696_v3 }
 0x57d   : > { %2959 = vmatmul.f32.gmra.mxu2 %v2917_v24  ;;  %v3767_v28 = vsel %vm580_vm0, %v3766_v33, %v3725_v19  ;;  %v3890_v46 = vrot.slane %v7992_v14, 4  ;;  %v3841_v36 = vperm.slane %v3833_v10, %v6242_v58  ;;  %v3769_v57 = vsel %vm580_vm0, %v3749_v29, %v3768_v13 }
 0x57e   : > { %v3673_v25 = vsel %vm580_vm0, %v7792_v8, %v8795_v45  ;;  %v3685_v35 = vsel %vm580_vm0, %v7761_v9, %v8796_v61  ;;  %5665 = vmatpush.xpose.msk.msra.mxu0 %vm1520_vm1, %v3767_v28  ;;  %v3857_v8 = vsel %vm580_vm0, %v7910_v50, %v3856_v47  ;;  %5668 = vmatpush.xpose.msk.msra.mxu2 %vm1520_vm1, %v3769_v57  ;;  %v8797_v41 = vrot.slane %v7775_v44, 4 }
 0x57f   : > { %v3681_v0 = vperm.slane %v3673_v25, %v6231_v42  ;;  %v3693_v9 = vperm.slane %v3685_v35, %v6231_v42  ;;  %v3891_v31 = vsel %vm580_vm0, %v3890_v46, %v7985_v2  ;;  %v3865_v56 = vperm.slane %v3857_v8, %v6242_v58 }
 0x580   : > { %v3709_v11 = vsel %vm580_vm0, %v7795_v12, %v8797_v41  ;;  %5682 = vmatpush.xpose.msk.msrb.mxu1 %vm1520_vm1, %v3891_v31  ;;  %v3705_v50 = vperm.slane %v3697_v63, %v6231_v42  ;;  %v8031_v22 = vperm.slane %v7827_v21, %v6231_v42  ;;  %v3338_v52 = vrot.slane %v7844_v15, 4 }
 0x581   : > { %v3717_v59 = vperm.slane %v3709_v11, %v6231_v42  ;;  %v3730_v38 = vrot.slane %v3693_v9, 4  ;;  %v3882_v19 = vrot.slane %v3865_v56, 4  ;;  %v3884_v39 = vrot.slane %v3841_v36, 4 }
 0x582   : > { %v3732_v6 = vrot.slane %v3681_v0, 4  ;;  %v3362_v12 = vrot.slane %v8031_v22, 4  ;;  %v3756_v29 = vrot.slane %v3705_v50, 4  ;;  %v3316_v3 = vrot.slane %v7788_v48, 4 }
 0x583   : > { %v3731_v44 = vsel %vm580_vm0, %v3730_v38, %v3681_v0  ;;  %v3754_v26 = vrot.slane %v3717_v59, 4  ;;  %v3883_v27 = vsel %vm580_vm0, %v3882_v19, %v3841_v36  ;;  %v3339_v55 = vsel %vm580_vm0, %v3338_v52, %v7855_v60 }
 0x584   : > { %v3885_v21 = vsel %vm580_vm0, %v3865_v56, %v3884_v39  ;;  %5670 = vmatpush.xpose.msk.msrb.mxu0 %vm1520_vm1, %v3883_v27  ;;  %v8043_v24 = vperm.slane %v3731_v44, %v6242_v58  ;;  %v3363_v33 = vsel %vm580_vm0, %v3362_v12, %v7858_v37  ;;  %v3720_v30 = vrot.slane %v7872_v49, 4 }
 0x585   : > { %v3755_v53 = vsel %vm580_vm0, %v3754_v26, %v3705_v50  ;;  %5673 = vmatpush.xpose.msk.msrb.mxu2 %vm1520_vm1, %v3885_v21  ;;  %v3369_v47 = vperm.slane %v3363_v33, %v6242_v58  ;;  %v3733_v13 = vsel %vm580_vm0, %v3693_v9, %v3732_v6  ;;  %v3757_v45 = vsel %vm580_vm0, %v3717_v59, %v3756_v29 }
 0x586   : > { %v3761_v48 = vperm.slane %v3755_v53, %v6242_v58  ;;  %v3345_v25 = vperm.slane %v3339_v55, %v6242_v58  ;;  %v8056_v61 = vperm.slane %v3733_v13, %v6242_v58  ;;  %v8059_v35 = vperm.slane %v3757_v45, %v6242_v58 }
 0x587   : > { %v3744_v28 = vrot.slane %v7904_v62, 4  ;;  %v3386_v49 = vrot.slane %v3369_v47, 4  ;;  %v3721_v10 = vsel %vm580_vm0, %v7878_v32, %v3720_v30  ;;  %v8798_v0 = vrot.slane %v7645_v4, 4 }
 0x588   : > { %v3774_v46 = vrot.slane %v3761_v48, 4  ;;  %v3778_v8 = vrot.slane %v8059_v35, 4  ;;  %v3317_v62 = vsel %vm580_vm0, %v7660_v43, %v3316_v3  ;;  %v3350_v43 = vrot.slane %v7727_v1, 4 }
 0x589   : > { %v3293_v36 = vsel %vm580_vm0, %v7635_v51, %v8798_v0  ;;  %v3745_v57 = vsel %vm580_vm0, %v7907_v34, %v3744_v28  ;;  %v3387_v32 = vsel %vm580_vm0, %v3386_v49, %v3345_v25  ;;  %v3325_v56 = vperm.slane %v3317_v62, %v6231_v42 }
 0x58a   : > { %v3301_v9 = vperm.slane %v3293_v36, %v6231_v42  ;;  %v3775_v31 = vsel %vm580_vm0, %v3774_v46, %v8043_v24  ;;  %v3753_v4 = vperm.slane %v3745_v57, %v6242_v58  ;;  %5666 = vmatmul.msk.f32.vlgmr.msra.gmra.mxu0 %vm1520_vm1, %v3387_v32  ;;  %v3779_v51 = vsel %vm580_vm0, %v3778_v8, %v8056_v61 }
 0x58b   : > { %5677 = vmatpush.xpose.msk.msra.mxu3 %vm1520_vm1, %v3775_v31  ;;  %v3337_v34 = vperm.slane %v7672_v7, %v6231_v42  ;;  %v3888_v63 = vrot.slane %v7973_v23, 4  ;;  %5683 = vmatpush.xpose.msk.msrb.mxu1 %vm1520_vm1, %v3779_v51  ;;  %v3729_v41 = vperm.slane %v3721_v10, %v6242_v58  ;;  %v3376_v59 = vrot.slane %v3325_v56, 4 }
 0x58c   : > { %v3770_v11 = vrot.slane %v3753_v4, 4  ;;  %v3352_v50 = vrot.slane %v3301_v9, 4  ;;  %v3351_v38 = vsel %vm580_vm0, %v3350_v43, %v3301_v9  ;;  %v3388_v53 = vrot.slane %v3345_v25, 4 }
 0x58d   : > { %v3374_v19 = vrot.slane %v3337_v34, 4  ;;  %v3377_v7 = vsel %vm580_vm0, %v3337_v34, %v3376_v59  ;;  %v3889_v6 = vsel %vm580_vm0, %v7968_v54, %v3888_v63  ;;  %v3772_v3 = vrot.slane %v3729_v41, 4 }
 0x58e   : > { %v3771_v52 = vsel %vm580_vm0, %v3770_v11, %v3729_v41  ;;  %v3353_v39 = vsel %vm580_vm0, %v7727_v1, %v3352_v50  ;;  %v3385_v44 = vperm.slane %v3377_v7, %v6242_v58  ;;  %v3357_v1 = vperm.slane %v3351_v38, %v6242_v58 }
 0x58f   : > { %5671 = vmatpush.xpose.msk.msrb.mxu0 %vm1520_vm1, %v3771_v52  ;;  %v3375_v23 = vsel %vm580_vm0, %v3374_v19, %v3325_v56  ;;  %v3361_v12 = vperm.slane %v3353_v39, %v6242_v58  ;;  %v3773_v54 = vsel %vm580_vm0, %v3753_v4, %v3772_v3  ;;  %v3892_v33 = vrot.slane %v7985_v2, 4  ;;  %v8159_v19 = vpop.permute.xlu0 %5768  ;;  %v8161_v52 = vpop.permute.xlu2 %5763 }
 0x590   : > { %v3381_v26 = vperm.slane %v3375_v23, %v6242_v58  ;;  %v3398_v29 = vrot.slane %v3385_v44, 4  ;;  %5674 = vmatpush.xpose.msk.msrb.mxu2 %vm1520_vm1, %v3773_v54  ;;  %v3776_v30 = vrot.slane %v8043_v24, 4  ;;  %v3340_v13 = vrot.slane %v7855_v60, 4 }
 0x591   : > { %v3389_v45 = vsel %vm580_vm0, %v3369_v47, %v3388_v53  ;;  %v3364_v28 = vrot.slane %v7858_v37, 4  ;;  %v3893_v46 = vsel %vm580_vm0, %v7992_v14, %v3892_v33  ;;  %v3780_v2 = vrot.slane %v8056_v61, 4 }
 0x592   : > { %v3394_v27 = vrot.slane %v3381_v26, 4  ;;  %v3399_v55 = vsel %vm580_vm0, %v3398_v29, %v3361_v12  ;;  %5669 = vmatmul.msk.f32.vlgmr.msra.gmra.mxu2 %vm1520_vm1, %v3389_v45  ;;  %v3777_v25 = vsel %vm580_vm0, %v3761_v48, %v3776_v30  ;;  %v3341_v49 = vsel %vm580_vm0, %v7844_v15, %v3340_v13 }
 0x593   : > { %5679 = vmatpush.xpose.msk.msra.mxu0 %vm1520_vm1, %v3889_v6  ;;  %5684 = vmatmul.msk.f32.vlgmr.msrb.gmra.mxu1 %vm1520_vm1, %v3399_v55  ;;  %v3349_v60 = vperm.slane %v3341_v49, %v6242_v58  ;;  %v3365_v37 = vsel %vm580_vm0, %v8031_v22, %v3364_v28  ;;  %v3781_v48 = vsel %vm580_vm0, %v8059_v35, %v3780_v2  ;;  %v3396_v10 = vrot.slane %v3357_v1, 4 }
 0x594   : > { %v3395_v21 = vsel %vm580_vm0, %v3394_v27, %v3357_v1  ;;  %5685 = vmatpush.xpose.msk.msra.mxu2 %vm1520_vm1, %v3893_v46  ;;  %v3373_v24 = vperm.slane %v3365_v37, %v6242_v58  ;;  %v3400_v36 = vrot.slane %v3361_v12, 4 }
 0x595   : > { %5678 = vmatmul.msk.f32.vlgmr.msra.gmra.mxu3 %vm1520_vm1, %v3395_v21  ;;  %v3392_v47 = vrot.slane %v3349_v60, 4  ;;  %v3397_v0 = vsel %vm580_vm0, %v3381_v26, %v3396_v10  ;;  %v8165_v26 = vpop.permute.xlu1 %5773  ;;  %v5770_v10 = vunpack.i.l.bf16 %v8159_v19 }
 0x596   : > { %v3390_v14 = vrot.slane %v3373_v24, 4  ;;  %v3401_v22 = vsel %vm580_vm0, %v3385_v44, %v3400_v36 }
 0x597   : > { %5680 = vmatpush.xpose.msk.msra.mxu0 %vm1520_vm1, %v3777_v25  ;;  %v3393_v15 = vsel %vm580_vm0, %v3373_v24, %v3392_v47  ;;  %v8163_v7 = vpop.permute.xlu0 %5778 }
 0x598   : > { %5686 = vmatpush.xpose.msk.msra.mxu2 %vm1520_vm1, %v3781_v48  ;;  %v3391_v61 = vsel %vm580_vm0, %v3390_v14, %v3349_v60  ;;  %v5771_v60 = vunpack.i.h.bf16 %v8159_v19 }
 0x599   : > { %5672 = vmatmul.msk.f32.vlgmr.msrb.gmra.mxu0 %vm1520_vm1, %v3391_v61 }
 0x59a   : > { %5675 = vmatmul.msk.f32.vlgmr.msrb.gmra.mxu2 %vm1520_vm1, %v3393_v15  ;;  %v3938_v36 = vrot.slane %v5771_v60, 4 }
 0x5a1   : > { %5681 = vmatmul.msk.f32.vlgmr.msra.gmra.mxu0 %vm1520_vm1, %v3397_v0  ;;  %v5766_v0 = vunpack.i.h.bf16 %v8161_v52 }
 0x5a2   : > { %5687 = vmatmul.msk.f32.vlgmr.msra.gmra.mxu2 %vm1520_vm1, %v3401_v22 }
 0x5f8   : > { %v8138_v35 = vpop.f32.mrf.mxu2 }
 0x600   : > { %v8141_v9 = vpop.f32.mrf.mxu2 }
 0x607   : > { %v4412_v8 = vpop.f32.mrf.mxu0 }
 0x608   : > { %v4618_v57 = vsel %vm1520_vm1, %v4412_v8, -inf }
 0x609   : > { %4619 = vmax.xlane.f32.xlu2 %v4618_v57  ;;  %v5776_v57 = vunpack.i.h.bf16 %v8165_v26 }
 0x610   : > { %v4586_v62 = vpop.f32.mrf.mxu1 }
 0x611   : > { %v4636_v31 = vsel %vm1520_vm1, %v4586_v62, -inf }
 0x612   : > { %4637 = vmax.xlane.f32.xlu0 %v4636_v31  ;;  %v5775_v31 = vunpack.i.l.bf16 %v8165_v26 }
 0x615   : > { %v4441_v56 = vpop.f32.mrf.mxu2 }
 0x616   : > { %v4470_v51 = vpop.f32.mrf.mxu0  ;;  %v4621_v34 = vsel %vm1520_vm1, %v4441_v56, -inf }
 0x617   : > { %v4624_v43 = vsel %vm1520_vm1, %v4470_v51, -inf  ;;  %4622 = vmax.xlane.f32.xlu2 %v4621_v34  ;;  %v3952_v34 = vrot.slane %v5766_v0, 4 }
 0x618   : > { %v4528_v32 = vpop.f32.mrf.mxu3 }
 0x619   : > { %v4630_v4 = vsel %vm1520_vm1, %v4528_v32, -inf }
 0x61a   : > { %4631 = vmax.xlane.f32.xlu1 %v4630_v4  ;;  %4625 = vmax.xlane.f32.xlu0 %v4624_v43  ;;  %v4052_v43 = vrot.slane %v7551_v5, 4 }
 0x61d   : > { %v4499_v63 = vpop.f32.mrf.mxu2 }
 0x61e   : > { %v4627_v41 = vsel %vm1520_vm1, %v4499_v63, -inf  ;;  %v8148_v11 = vpop.f32.mrf.mxu0 }
 0x61f   : > { %v4633_v59 = vsel %vm1520_vm1, %v8148_v11, -inf }
 0x622   : > { %4628 = vmax.xlane.f32.xlu1 %v4627_v41 }
 0x625   : > { %v4615_v50 = vpop.f32.mrf.mxu2 }
 0x626   : > { %v4639_v38 = vsel %vm1520_vm1, %v4615_v50, -inf }
 0x627   : > { %4640 = vmax.xlane.f32.xlu2 %v4639_v38  ;;  %v5780_v38 = vunpack.i.l.bf16 %v8163_v7 }
 0x62a   : > { %4634 = vmax.xlane.f32.xlu1 %v4633_v59  ;;  %v5781_v59 = vunpack.i.h.bf16 %v8163_v7 }
 0x62e   : > { %5788 = vrot.lane.b32.xlu0 %v7557_v20, %s5926_s20 }
 0x63f   : > { %5783 = vrot.lane.b32.xlu2 %v7557_v20, %s5924_s18 }
 0x643   : > { %5793 = vrot.lane.b32.xlu1 %v7557_v20, %s5927_s21 }
 0x67c   : > { %v4620_v39 = vpop.xlane.xlu2 %4619 }
 0x67d   : > { %v4642_v23 = vsub.f32 %v4412_v8, %v4620_v39  ;;  %v5765_v8 = vunpack.i.l.bf16 %v8161_v52  ;;  %v4076_v39 = vrot.slane %v5775_v31, 4 }
 0x67f   : > { %v4650_v6 = vmul.f32 1.442695, %v4642_v23  ;;  %v4053_v23 = vsel %vm580_vm0, %v5770_v10, %v4052_v43 }
 0x681   : > { %5873 = vpow2.f32 %v4650_v6 }
 0x685   : > { %v4638_v44 = vpop.xlane.xlu0 %4637 }
 0x686   : > { %v4648_v54 = vsub.f32 %v4586_v62, %v4638_v44 }
 0x687   : > { %v8167_v12 = vpop.eup %5873 }
 0x688   : > { %v4666_v29 = vsel %vm1520_vm1, %v8167_v12, 0.0  ;;  %v4662_v33 = vmul.f32 1.442695, %v4648_v54 }
 0x689   : > { %4667 = vadd.xlane.f32.xlu2 %v4666_v29 }
 0x68a   : > { %v4623_v1 = vpop.xlane.xlu2 %4622 }
 0x68b   : > { %v4643_v3 = vsub.f32 %v4441_v56, %v4623_v1  ;;  %v4050_v56 = vrot.slane %v5770_v10, 4 }
 0x68d   : > { %v4632_v20 = vpop.xlane.xlu1 %4631  ;;  %v4626_v27 = vpop.xlane.xlu0 %4625  ;;  %v4652_v21 = vmul.f32 1.442695, %v4643_v3  ;;  %v4051_v29 = vsel %vm580_vm0, %v4050_v56, %v7551_v5 }
 0x68e   : > { %v4644_v55 = vsub.f32 %v4470_v51, %v4626_v27  ;;  %v4646_v28 = vsub.f32 %v4528_v32, %v4632_v20  ;;  %v3940_v32 = vrot.slane %v7553_v40, 4 }
 0x68f   : > { %5875 = vpow2.f32 %v4652_v21  ;;  %v4074_v21 = vrot.slane %v5780_v38, 4 }
 0x690   : > { %v4654_v53 = vmul.f32 1.442695, %v4644_v55  ;;  %v4658_v37 = vmul.f32 1.442695, %v4646_v28  ;;  %v3941_v41 = vsel %vm580_vm0, %v5771_v60, %v3940_v32  ;;  %v3962_v55 = vrot.slane %v5781_v59, 4 }
 0x691   : > { %v4077_v60 = vsel %vm580_vm0, %v5780_v38, %v4076_v39 }
 0x692   : > { %5877 = vpow2.f32 %v4654_v53  ;;  %v3963_v10 = vsel %vm580_vm0, %v3962_v55, %v5776_v57  ;;  %v8234_v32 = vperm.slane %v4077_v60, %v6231_v42 }
 0x693   : > { %5879 = vpow2.f32 %v4662_v33  ;;  %v4057_v33 = vperm.slane %v4051_v29, %v6231_v42 }
 0x695   : > { %v4629_v30 = vpop.xlane.xlu1 %4628  ;;  %v8171_v45 = vpop.eup %5875 }
 0x696   : > { %v4645_v13 = vsub.f32 %v4499_v63, %v4629_v30  ;;  %v4669_v49 = vsel %vm1520_vm1, %v8171_v45, 0.0  ;;  %v3939_v63 = vsel %vm580_vm0, %v3938_v36, %v7553_v40  ;;  %v3949_v40 = vperm.slane %v3941_v41, %v6231_v42 }
 0x697   : > { %4670 = vadd.xlane.f32.xlu2 %v4669_v49  ;;  %v3945_v26 = vperm.slane %v3939_v63, %v6231_v42  ;;  %v4100_v36 = vrot.slane %v4057_v33, 4 }
 0x698   : > { %v4656_v46 = vmul.f32 1.442695, %v4645_v13  ;;  %v8173_v25 = vpop.eup %5877 }
 0x699   : > { %v4672_v2 = vsel %vm1520_vm1, %v8173_v25, 0.0  ;;  %v8180_v48 = vpop.eup %5879 }
 0x69a   : > { %5881 = vpow2.f32 %v4656_v46  ;;  %4673 = vadd.xlane.f32.xlu1 %v4672_v2  ;;  %v4641_v47 = vpop.xlane.xlu2 %4640  ;;  %v4684_v4 = vsel %vm1520_vm1, %v8180_v48, 0.0 }
 0x69b   : > { %v4649_v14 = vsub.f32 %v4615_v50, %v4641_v47  ;;  %5883 = vpow2.f32 %v4658_v37  ;;  %v3964_v50 = vrot.slane %v5776_v57, 4  ;;  %v4000_v47 = vrot.slane %v3949_v40, 4 }
 0x69d   : > { %v4635_v24 = vpop.xlane.xlu1 %4634  ;;  %v4664_v22 = vmul.f32 1.442695, %v4649_v14  ;;  %v3965_v28 = vsel %vm580_vm0, %v5781_v59, %v3964_v50  ;;  %v4061_v14 = vperm.slane %v4053_v23, %v6231_v42 }
 0x69e   : > { %v4647_v15 = vsub.f32 %v8148_v11, %v4635_v24  ;;  %v4064_v11 = vrot.slane %v5765_v8, 4 }
 0x69f   : > { %5885 = vpow2.f32 %v4664_v22  ;;  %v8231_v22 = vperm.slane %v3965_v28, %v6231_v42  ;;  %v4112_v63 = vrot.slane %v4061_v14, 4 }
 0x6a0   : > { %v8184_v61 = vpop.eup %5881  ;;  %v4660_v51 = vmul.f32 1.442695, %v4647_v15  ;;  %v4075_v15 = vsel %vm580_vm0, %v4074_v21, %v5775_v31 }
 0x6a1   : > { %v4675_v62 = vsel %vm1520_vm1, %v8184_v61, 0.0  ;;  %v8201_v52 = vpop.eup %5883  ;;  %v8241_v57 = vperm.slane %v4075_v15, %v6231_v42  ;;  %v4024_v59 = vrot.slane %v8231_v22, 4 }
 0x6a2   : > { %4676 = vadd.xlane.f32.xlu0 %v4675_v62  ;;  %4685 = vadd.xlane.f32.xlu1 %v4684_v4  ;;  %v5784_v19 = vpop.permute.xlu2 %5783  ;;  %5887 = vpow2.f32 %v4660_v51  ;;  %v4678_v53 = vsel %vm1520_vm1, %v8201_v52, 0.0 }
 0x6a3   : > { %v5786_v6 = vunpack.i.h.bf16 %v5784_v19  ;;  %v5785_v44 = vunpack.i.l.bf16 %v5784_v19 }
 0x6a5   : > { %v3950_v20 = vrot.slane %v5786_v6, 4  ;;  %v3953_v1 = vsel %vm580_vm0, %v5786_v6, %v3952_v34  ;;  %v4062_v7 = vrot.slane %v5785_v44, 4  ;;  %v4065_v27 = vsel %vm580_vm0, %v5785_v44, %v4064_v11  ;;  %v8210_v3 = vpop.eup %5885 }
 0x6a6   : > { %v3961_v54 = vperm.slane %v3953_v1, %v6231_v42  ;;  %v4687_v13 = vsel %vm1520_vm1, %v8210_v3, 0.0  ;;  %v4073_v2 = vperm.slane %v4065_v27, %v6231_v42  ;;  %v8238_v34 = vperm.slane %v3963_v10, %v6231_v42 }
 0x6a7   : > { %v3951_v5 = vsel %vm580_vm0, %v3950_v20, %v5766_v0  ;;  %v4063_v30 = vsel %vm580_vm0, %v4062_v7, %v5765_v8  ;;  %4688 = vadd.xlane.f32.xlu2 %v4687_v13  ;;  %v3988_v0 = vrot.slane %v3945_v26, 4  ;;  %v5789_v8 = vpop.permute.xlu0 %5788  ;;  %v4124_v20 = vrot.slane %v8241_v57, 4 }
 0x6a8   : > { %v3957_v46 = vperm.slane %v3951_v5, %v6231_v42  ;;  %v4069_v49 = vperm.slane %v4063_v30, %v6231_v42  ;;  %v3998_v37 = vrot.slane %v3961_v54, 4  ;;  %v8225_v24 = vpop.eup %5887  ;;  %v4001_v4 = vsel %vm580_vm0, %v3961_v54, %v4000_v47 }
 0x6a9   : > { %v4110_v51 = vrot.slane %v4073_v2, 4  ;;  %v5791_v41 = vunpack.i.h.bf16 %v5789_v8  ;;  %v5790_v11 = vunpack.i.l.bf16 %v5789_v8  ;;  %v4681_v50 = vsel %vm1520_vm1, %v8225_v24, 0.0 }
 0x6aa   : > { %4679 = vadd.xlane.f32.xlu0 %v4678_v53  ;;  %v3986_v62 = vrot.slane %v3957_v46, 4  ;;  %v4098_v56 = vrot.slane %v4069_v49, 4  ;;  %v3989_v31 = vsel %vm580_vm0, %v3957_v46, %v3988_v0  ;;  %v3999_v43 = vsel %vm580_vm0, %v3998_v37, %v3949_v40 }
 0x6ab   : > { %v4009_v19 = vperm.slane %v4001_v4, %v6242_v58  ;;  %v4101_v39 = vsel %vm580_vm0, %v4069_v49, %v4100_v36  ;;  %v8252_v23 = vperm.slane %v3989_v31, %v6242_v58  ;;  %v8255_v6 = vperm.slane %v3999_v43, %v6242_v58 }
 0x6ac   : > { %v3987_v38 = vsel %vm580_vm0, %v3986_v62, %v3945_v26  ;;  %v4099_v44 = vsel %vm580_vm0, %v4098_v56, %v4057_v33  ;;  %v4111_v40 = vsel %vm580_vm0, %v4110_v51, %v4061_v14  ;;  %v4012_v29 = vrot.slane %v8238_v34, 4 }
 0x6ad   : > { %v4136_v26 = vrot.slane %v8234_v32, 4  ;;  %v4113_v1 = vsel %vm580_vm0, %v4073_v2, %v4112_v63  ;;  %v3976_v7 = vrot.slane %v5791_v41, 4  ;;  %v4088_v27 = vrot.slane %v5790_v11, 4 }
 0x6ae   : > { %v8264_v55 = vperm.slane %v3987_v38, %v6242_v58  ;;  %v8267_v21 = vperm.slane %v4101_v39, %v6242_v58  ;;  %v8270_v53 = vperm.slane %v4099_v44, %v6242_v58  ;;  %v8273_v33 = vperm.slane %v4111_v40, %v6242_v58 }
 0x6af   : > { %v4040_v13 = vrot.slane %v8252_v23, 4  ;;  %v4044_v28 = vrot.slane %v8255_v6, 4  ;;  %v4048_v46 = vrot.slane %v4009_v19, 4  ;;  %v4121_v49 = vperm.slane %v4113_v1, %v6242_v58 }
 0x6b0   : > { %v4036_v14 = vrot.slane %v8264_v55, 4  ;;  %v4152_v10 = vrot.slane %v8267_v21, 4  ;;  %v4148_v36 = vrot.slane %v8270_v53, 4  ;;  %v4156_v8 = vrot.slane %v8273_v33, 4 }
 0x6b1   : > { %v4160_v63 = vrot.slane %v4121_v49, 4 }
 0x6b2   : > { %4682 = vadd.xlane.f32.xlu0 %v4681_v50 }
 0x6b5   : > { %v5794_v54 = vpop.permute.xlu1 %5793 }
 0x6b6   : > { %v5796_v5 = vunpack.i.h.bf16 %v5794_v54  ;;  %v5795_v30 = vunpack.i.l.bf16 %v5794_v54 }
 0x6b8   : > { %v3974_v2 = vrot.slane %v5796_v5, 4  ;;  %v3977_v60 = vsel %vm580_vm0, %v5796_v5, %v3976_v7  ;;  %v4086_v37 = vrot.slane %v5795_v30, 4  ;;  %v4089_v47 = vsel %vm580_vm0, %v5795_v30, %v4088_v27 }
 0x6b9   : > { %v3985_v15 = vperm.slane %v3977_v60, %v6231_v42  ;;  %v4097_v0 = vperm.slane %v4089_v47, %v6231_v42 }
 0x6ba   : > { %v3975_v62 = vsel %vm580_vm0, %v3974_v2, %v5791_v41  ;;  %v4087_v4 = vsel %vm580_vm0, %v4086_v37, %v5790_v11 }
 0x6bb   : > { %v3981_v56 = vperm.slane %v3975_v62, %v6231_v42  ;;  %v4022_v51 = vrot.slane %v3985_v15, 4  ;;  %v4025_v31 = vsel %vm580_vm0, %v3985_v15, %v4024_v59  ;;  %v4093_v43 = vperm.slane %v4087_v4, %v6231_v42 }
 0x6bc   : > { %v4033_v50 = vperm.slane %v4025_v31, %v6242_v58  ;;  %v4134_v38 = vrot.slane %v4097_v0, 4  ;;  %v4137_v39 = vsel %vm580_vm0, %v4097_v0, %v4136_v26 }
 0x6bd   : > { %v4010_v44 = vrot.slane %v3981_v56, 4  ;;  %v4013_v40 = vsel %vm580_vm0, %v3981_v56, %v4012_v29  ;;  %v4023_v41 = vsel %vm580_vm0, %v4022_v51, %v8231_v22  ;;  %v4122_v11 = vrot.slane %v4093_v43, 4 }
 0x6be   : > { %v4021_v1 = vperm.slane %v4013_v40, %v6242_v58  ;;  %v4029_v7 = vperm.slane %v4023_v41, %v6242_v58  ;;  %v4046_v59 = vrot.slane %v4033_v50, 4  ;;  %v8299_v27 = vsel %vm580_vm0, %v4033_v50, %v4048_v46 }
 0x6bf   : > { %v4011_v54 = vsel %vm580_vm0, %v4010_v44, %v8238_v34  ;;  %v4123_v26 = vsel %vm580_vm0, %v4122_v11, %v8241_v57  ;;  %v4125_v29 = vsel %vm580_vm0, %v4093_v43, %v4124_v20  ;;  %v4135_v22 = vsel %vm580_vm0, %v4134_v38, %v8234_v32 }
 0x6c0   : > { %v4017_v5 = vperm.slane %v4011_v54, %v6242_v58  ;;  %v4038_v30 = vrot.slane %v4021_v1, 4  ;;  %v4042_v2 = vrot.slane %v4029_v7, 4  ;;  %v8310_v60 = vsel %vm580_vm0, %v4021_v1, %v4040_v13 }
 0x6c1   : > { %v8313_v46 = vsel %vm580_vm0, %v4046_v59, %v4009_v19  ;;  %v4129_v34 = vperm.slane %v4123_v26, %v6242_v58  ;;  %v4133_v37 = vperm.slane %v4125_v29, %v6242_v58  ;;  %v4141_v57 = vperm.slane %v4135_v22, %v6242_v58 }
 0x6c2   : > { %v4034_v20 = vrot.slane %v4017_v5, 4  ;;  %v4145_v47 = vperm.slane %v4137_v39, %v6242_v58  ;;  %v4198_v32 = vrot.slane %v8299_v27, 4  ;;  %v8321_v15 = vsel %vm580_vm0, %v4017_v5, %v4036_v14 }
 0x6c3   : > { %v4146_v0 = vrot.slane %v4129_v34, 4  ;;  %v4150_v13 = vrot.slane %v4133_v37, 4  ;;  %v4153_v62 = vsel %vm580_vm0, %v4133_v37, %v4152_v10  ;;  %v4154_v19 = vrot.slane %v4141_v57, 4 }
 0x6c4   : > { %v8325_v4 = vsel %vm580_vm0, %v4141_v57, %v4156_v8  ;;  %v4158_v56 = vrot.slane %v4145_v47, 4  ;;  %v8328_v51 = vsel %vm580_vm0, %v4145_v47, %v4160_v63  ;;  %v4286_v31 = vrot.slane %v4153_v62, 4 }
 0x6c5   : > { %v4310_v43 = vrot.slane %v8328_v51, 4  ;;  %v4312_v50 = vrot.slane %v8325_v4, 4  ;;  %v4147_v14 = vsel %vm580_vm0, %v4146_v0, %v8270_v53  ;;  %v4149_v38 = vsel %vm580_vm0, %v4129_v34, %v4148_v36 }
 0x6c6   : > { %v8336_v10 = vsel %vm580_vm0, %v4158_v56, %v4121_v49  ;;  %v4151_v8 = vsel %vm580_vm0, %v4150_v13, %v8267_v21  ;;  %v8342_v63 = vsel %vm580_vm0, %v4154_v19, %v8273_v33  ;;  %v4276_v39 = vrot.slane %v4147_v14, 4 }
 0x6c7   : > { %v4298_v44 = vrot.slane %v8336_v10, 4  ;;  %v4274_v40 = vrot.slane %v4151_v8, 4  ;;  %v4287_v41 = vsel %vm580_vm0, %v4286_v31, %v4149_v38  ;;  %v4288_v11 = vrot.slane %v4149_v38, 4 }
 0x6c8   : > { %v4293_v53 = vperm.slane %v4287_v41, %v6231_v42  ;;  %v4300_v36 = vrot.slane %v8342_v63, 4  ;;  %v4311_v49 = vsel %vm580_vm0, %v4310_v43, %v8325_v4  ;;  %v8352_v21 = vsel %vm580_vm0, %v4034_v20, %v8264_v55 }
 0x6c9   : > { %v4275_v33 = vsel %vm580_vm0, %v4274_v40, %v4147_v14  ;;  %v4299_v1 = vsel %vm580_vm0, %v4298_v44, %v8342_v63  ;;  %v4317_v59 = vperm.slane %v4311_v49, %v6231_v42  ;;  %v8360_v54 = vsel %vm580_vm0, %v4038_v30, %v8252_v23 }
 0x6ca   : > { %v4281_v26 = vperm.slane %v4275_v33, %v6231_v42  ;;  %v4305_v29 = vperm.slane %v4299_v1, %v6231_v42  ;;  %v4322_v22 = vrot.slane %v4293_v53, 4  ;;  %v8366_v55 = vsel %vm580_vm0, %v4042_v2, %v8255_v6 }
 0x6cb   : > { %v4346_v5 = vrot.slane %v4317_v59, 4  ;;  %v8371_v34 = vsel %vm580_vm0, %v4029_v7, %v4044_v28  ;;  %v4162_v37 = vrot.slane %v8360_v54, 4  ;;  %v4164_v23 = vrot.slane %v8352_v21, 4 }
 0x6cc   : > { %v4323_v30 = vsel %vm580_vm0, %v4322_v22, %v4281_v26  ;;  %v4174_v57 = vrot.slane %v8310_v60, 4  ;;  %v4176_v20 = vrot.slane %v8321_v15, 4  ;;  %v4186_v47 = vrot.slane %v8313_v46, 4 }
 0x6cd   : > { %v4329_v2 = vperm.slane %v4323_v30, %v6242_v58  ;;  %v4347_v0 = vsel %vm580_vm0, %v4346_v5, %v4305_v29  ;;  %v4163_v6 = vsel %vm580_vm0, %v4162_v37, %v8352_v21  ;;  %v4188_v28 = vrot.slane %v8366_v55, 4 }
 0x6ce   : > { %v4353_v7 = vperm.slane %v4347_v0, %v6242_v58  ;;  %v4169_v13 = vperm.slane %v4163_v6, %v6231_v42  ;;  %v4175_v19 = vsel %vm580_vm0, %v4174_v57, %v8321_v15  ;;  %v4187_v56 = vsel %vm580_vm0, %v4186_v47, %v8366_v55 }
 0x6cf   : > { %v4181_v31 = vperm.slane %v4175_v19, %v6231_v42  ;;  %v4193_v43 = vperm.slane %v4187_v56, %v6231_v42  ;;  %v4199_v14 = vsel %vm580_vm0, %v4198_v32, %v8371_v34  ;;  %v4200_v38 = vrot.slane %v8371_v34, 4 }
 0x6d0   : > { %v4370_v63 = vrot.slane %v4353_v7, 4  ;;  %v4205_v44 = vperm.slane %v4199_v14, %v6231_v42  ;;  %v4372_v40 = vrot.slane %v4329_v2, 4  ;;  %v4324_v41 = vrot.slane %v4281_v26, 4 }
 0x6d1   : > { %v4210_v49 = vrot.slane %v4181_v31, 4  ;;  %v4348_v33 = vrot.slane %v4305_v29, 4  ;;  %v4277_v1 = vsel %vm580_vm0, %v4151_v8, %v4276_v39  ;;  %v4289_v22 = vsel %vm580_vm0, %v4153_v62, %v4288_v11 }
 0x6d2   : > { %v4371_v5 = vsel %vm580_vm0, %v4370_v63, %v4329_v2  ;;  %v4234_v37 = vrot.slane %v4205_v44, 4  ;;  %v4373_v30 = vsel %vm580_vm0, %v4353_v7, %v4372_v40  ;;  %v4325_v32 = vsel %vm580_vm0, %v4293_v53, %v4324_v41 }
 0x6d3   : > { %4827 = vmatpush.msrb.mxu3 %v4371_v5  ;;  %v4211_v34 = vsel %vm580_vm0, %v4210_v49, %v4169_v13  ;;  %4850 = vmatpush.msrb.mxu0 %v4373_v30  ;;  %v4333_v57 = vperm.slane %v4325_v32, %v6242_v58  ;;  %v4349_v26 = vsel %vm580_vm0, %v4317_v59, %v4348_v33  ;;  %v4212_v29 = vrot.slane %v4169_v13, 4 }
 0x6d4   : > { %v4217_v8 = vperm.slane %v4211_v34, %v6242_v58  ;;  %v4235_v62 = vsel %vm580_vm0, %v4234_v37, %v4193_v43  ;;  %v4357_v39 = vperm.slane %v4349_v26, %v6242_v58  ;;  %v4285_v11 = vperm.slane %v4277_v1, %v6231_v42 }
 0x6d5   : > { %v4241_v47 = vperm.slane %v4235_v62, %v6242_v58  ;;  %v4297_v53 = vperm.slane %v4289_v22, %v6231_v42  ;;  %v4301_v2 = vsel %vm580_vm0, %v8336_v10, %v4300_v36  ;;  %v4313_v59 = vsel %vm580_vm0, %v8328_v51, %v4312_v50 }
 0x6d6   : > { %v4374_v0 = vrot.slane %v4357_v39, 4  ;;  %v4309_v6 = vperm.slane %v4301_v2, %v6231_v42  ;;  %v4321_v7 = vperm.slane %v4313_v59, %v6231_v42  ;;  %v4260_v13 = vrot.slane %v4217_v8, 4 }
 0x6d7   : > { %v4258_v19 = vrot.slane %v4241_v47, 4  ;;  %v4334_v56 = vrot.slane %v4297_v53, 4  ;;  %v4213_v14 = vsel %vm580_vm0, %v4181_v31, %v4212_v29  ;;  %v4236_v63 = vrot.slane %v4193_v43, 4 }
 0x6d8   : > { %v4375_v40 = vsel %vm580_vm0, %v4374_v0, %v4333_v57  ;;  %v4358_v41 = vrot.slane %v4321_v7, 4  ;;  %v4261_v10 = vsel %vm580_vm0, %v4241_v47, %v4260_v13  ;;  %v4221_v4 = vperm.slane %v4213_v14, %v6242_v58 }
 0x6d9   : > { %v4259_v51 = vsel %vm580_vm0, %v4258_v19, %v4217_v8  ;;  %4873 = vmatpush.msra.mxu1 %v4375_v40  ;;  %v4335_v50 = vsel %vm580_vm0, %v4334_v56, %v4285_v11  ;;  %4851 = vmatpush.msrb.mxu0 %v4261_v10  ;;  %v4237_v36 = vsel %vm580_vm0, %v4205_v44, %v4236_v63  ;;  %v4376_v49 = vrot.slane %v4333_v57, 4 }
 0x6da   : > { %4828 = vmatpush.msrb.mxu3 %v4259_v51  ;;  %v4341_v31 = vperm.slane %v4335_v50, %v6242_v58  ;;  %v4359_v43 = vsel %vm580_vm0, %v4358_v41, %v4309_v6  ;;  %v4245_v33 = vperm.slane %v4237_v36, %v6242_v58  ;;  %v4165_v1 = vsel %vm580_vm0, %v8360_v54, %v4164_v23 }
 0x6db   : > { %v4365_v22 = vperm.slane %v4359_v43, %v6242_v58  ;;  %v4377_v5 = vsel %vm580_vm0, %v4357_v39, %v4376_v49  ;;  %v4173_v37 = vperm.slane %v4165_v1, %v6231_v42  ;;  %v4177_v44 = vsel %vm580_vm0, %v8310_v60, %v4176_v20 }
 0x6dc   : > { %v4262_v30 = vrot.slane %v4245_v33, 4  ;;  %4896 = vmatpush.msrb.mxu2 %v4377_v5  ;;  %v4185_v32 = vperm.slane %v4177_v44, %v6231_v42  ;;  %v4189_v21 = vsel %vm580_vm0, %v8313_v46, %v4188_v28  ;;  %v4201_v54 = vsel %vm580_vm0, %v8299_v27, %v4200_v38 }
 0x6dd   : > { %v4378_v23 = vrot.slane %v4365_v22, 4  ;;  %v4197_v34 = vperm.slane %v4189_v21, %v6231_v42  ;;  %v4209_v15 = vperm.slane %v4201_v54, %v6231_v42  ;;  %v4380_v57 = vrot.slane %v4341_v31, 4 }
 0x6de   : > { %v4263_v60 = vsel %vm580_vm0, %v4262_v30, %v4221_v4  ;;  %v4222_v20 = vrot.slane %v4185_v32, 4  ;;  %v4336_v26 = vrot.slane %v4285_v11, 4  ;;  %v4360_v29 = vrot.slane %v4309_v6, 4 }
 0x6df   : > { %v4379_v8 = vsel %vm580_vm0, %v4378_v23, %v4341_v31  ;;  %4874 = vmatpush.msra.mxu1 %v4263_v60  ;;  %v4246_v55 = vrot.slane %v4209_v15, 4  ;;  %v4381_v46 = vsel %vm580_vm0, %v4365_v22, %v4380_v57  ;;  %v4264_v28 = vrot.slane %v4221_v4, 4 }
 0x6e0   : > { %4919 = vmatpush.msra.mxu3 %v4379_v8  ;;  %v4223_v27 = vsel %vm580_vm0, %v4222_v20, %v4173_v37  ;;  %4942 = vmatpush.msra.mxu0 %v4381_v46  ;;  %v4337_v38 = vsel %vm580_vm0, %v4297_v53, %v4336_v26  ;;  %v4361_v62 = vsel %vm580_vm0, %v4321_v7, %v4360_v29  ;;  %v4224_v39 = vrot.slane %v4173_v37, 4 }
 0x6e1   : > { %v4229_v47 = vperm.slane %v4223_v27, %v6242_v58  ;;  %v4247_v11 = vsel %vm580_vm0, %v4246_v55, %v4197_v34  ;;  %v4345_v2 = vperm.slane %v4337_v38, %v6242_v58  ;;  %v4369_v59 = vperm.slane %v4361_v62, %v6242_v58 }
 0x6e2   : > { %v4253_v0 = vperm.slane %v4247_v11, %v6242_v58  ;;  %v4265_v6 = vsel %vm580_vm0, %v4245_v33, %v4264_v28  ;;  %v4225_v13 = vsel %vm580_vm0, %v4185_v32, %v4224_v39  ;;  %v4248_v19 = vrot.slane %v4197_v34, 4 }
 0x6e3   : > { %v4382_v56 = vrot.slane %v4369_v59, 4  ;;  %4897 = vmatpush.msrb.mxu2 %v4265_v6  ;;  %v4268_v53 = vrot.slane %v4229_v47, 4  ;;  %v4233_v7 = vperm.slane %v4225_v13, %v6242_v58  ;;  %v4384_v14 = vrot.slane %v4345_v2, 4 }
 0x6e4   : > { %v4266_v63 = vrot.slane %v4253_v0, 4  ;;  %v4249_v40 = vsel %vm580_vm0, %v4209_v15, %v4248_v19 }
 0x6e5   : > { %v4383_v41 = vsel %vm580_vm0, %v4382_v56, %v4345_v2  ;;  %v4269_v10 = vsel %vm580_vm0, %v4253_v0, %v4268_v53  ;;  %v4257_v4 = vperm.slane %v4249_v40, %v6242_v58  ;;  %v4385_v51 = vsel %vm580_vm0, %v4369_v59, %v4384_v14 }
 0x6e6   : > { %v4267_v50 = vsel %vm580_vm0, %v4266_v63, %v4229_v47  ;;  %4965 = vmatpush.msrb.mxu1 %v4383_v41  ;;  %4943 = vmatpush.msra.mxu0 %v4269_v10  ;;  %v4272_v36 = vrot.slane %v4233_v7, 4 }
 0x6e7   : > { %4920 = vmatpush.msra.mxu3 %v4267_v50  ;;  %v4270_v49 = vrot.slane %v4257_v4, 4  ;;  %4988 = vmatpush.msra.mxu2 %v4385_v51 }
 0x6e8   : > { %v4273_v31 = vsel %vm580_vm0, %v4257_v4, %v4272_v36 }
 0x6e9   : > { %v4271_v43 = vsel %vm580_vm0, %v4270_v49, %v4233_v7  ;;  %4989 = vmatpush.msra.mxu2 %v4273_v31 }
 0x6ea   : > { %4966 = vmatpush.msrb.mxu1 %v4271_v43 }
 0x6fc   : > { %v4668_v33 = vpop.xlane.xlu2 %4667 }
 0x6fd   : > { %5889 = vrcp.f32 %v4668_v33  ;;  %v4701_v37 = vand.u32 2147483648, %v4668_v33  ;;  %v4699_v30 = vand.u32 2147483647, %v4668_v33  ;;  %vm4695_vm9 = vweird.f32 %v4668_v33 }
 0x6ff   : > { %v4702_v21 = vor.u32 1.1754944e-38, %v4701_v37  ;;  %vm4700_vm11 = vcmp.eq.f32.partialorder %v4699_v30, 8.507059e+37 }
 0x703   : > { %v5890_v1 = vpop.eup %5889 }
 0x704   : > { %v4691_v22 = vmul.f32 %v5890_v1, %v4668_v33  ;;  %vm4696_vm8 = vweird.f32 %v5890_v1 }
 0x705   : > { %vm4697_vm10 = vmor %vm4695_vm9, %vm4696_vm8 }
 0x706   : > { %v4692_v5 = vsub.f32 1.0, %v4691_v22 }
 0x708   : > { %v4693_v44 = vmul.f32 %v5890_v1, %v4692_v5 }
 0x70a   : > { %v4694_v32 = vadd.f32 %v5890_v1, %v4693_v44  ;;  %v4671_v34 = vpop.xlane.xlu2 %4670 }
 0x70b   : > { %5891 = vrcp.f32 %v4671_v34  ;;  %v4714_v39 = vand.u32 2147483647, %v4671_v34  ;;  %vm4710_vm14 = vweird.f32 %v4671_v34 }
 0x70c   : > { %v4698_v54 = vsel %vm4697_vm10, %v5890_v1, %v4694_v32 }
 0x70d   : > { %v4703_v23 = vsel %vm4700_vm11, %v4702_v21, %v4698_v54  ;;  %v4674_v57 = vpop.xlane.xlu1 %4673  ;;  %vm4715_vm11 = vcmp.eq.f32.partialorder %v4714_v39, 8.507059e+37 }
 0x70e   : > { %v4704_v15 = vmul.f32 %v8167_v12, %v4703_v23  ;;  %5893 = vrcp.f32 %v4674_v57  ;;  %v4716_v12 = vand.u32 2147483648, %v4671_v34  ;;  %v4731_v62 = vand.u32 2147483648, %v4674_v57 }
 0x70f   : > { %v4729_v47 = vand.u32 2147483647, %v4674_v57  ;;  %vm4725_vm8 = vweird.f32 %v4674_v57 }
 0x710   : > { %5688 = vmatmul.msk.f32.vlgmr.msrb.gmra.mxu3 %vm1520_vm1, %v4704_v15  ;;  %v4717_v13 = vor.u32 1.1754944e-38, %v4716_v12  ;;  %v4732_v7 = vor.u32 1.1754944e-38, %v4731_v62 }
 0x711   : > { %v5892_v60 = vpop.eup %5891  ;;  %vm4730_vm2 = vcmp.eq.f32.partialorder %v4729_v47, 8.507059e+37 }
 0x712   : > { %v4706_v26 = vmul.f32 %v5892_v60, %v4671_v34  ;;  %vm4711_vm12 = vweird.f32 %v5892_v60 }
 0x713   : > { %vm4712_vm9 = vmor %vm4710_vm14, %vm4711_vm12 }
 0x714   : > { %v5894_v20 = vpop.eup %5893  ;;  %v4707_v46 = vsub.f32 1.0, %v4706_v26 }
 0x715   : > { %v4677_v29 = vpop.xlane.xlu0 %4676  ;;  %v4721_v8 = vmul.f32 %v5894_v20, %v4674_v57  ;;  %v8472_v55 = vpop.xlane.xlu1 %4685  ;;  %vm4726_vm13 = vweird.f32 %v5894_v20 }
 0x716   : > { %5895 = vrcp.f32 %v4677_v29  ;;  %v4708_v27 = vmul.f32 %v5892_v60, %v4707_v46  ;;  %vm4727_vm10 = vmor %vm4725_vm8, %vm4726_vm13  ;;  %v4746_v4 = vand.u32 2147483648, %v4677_v29  ;;  %v4744_v36 = vand.u32 2147483647, %v4677_v29 }
 0x717   : > { %5897 = vrcp.f32 %v8472_v55  ;;  %v4722_v28 = vsub.f32 1.0, %v4721_v8  ;;  %v4791_v49 = vand.u32 2147483648, %v8472_v55  ;;  %v4789_v43 = vand.u32 2147483647, %v8472_v55 }
 0x718   : > { %v4709_v11 = vadd.f32 %v5892_v60, %v4708_v27  ;;  %vm4740_vm14 = vweird.f32 %v4677_v29  ;;  %v4747_v5 = vor.u32 1.1754944e-38, %v4746_v4  ;;  %vm4785_vm8 = vweird.f32 %v8472_v55 }
 0x719   : > { %v4723_v38 = vmul.f32 %v5894_v20, %v4722_v28  ;;  %v4792_v32 = vor.u32 1.1754944e-38, %v4791_v49 }
 0x71a   : > { %v4713_v6 = vsel %vm4712_vm9, %v5892_v60, %v4709_v11  ;;  %v8478_v63 = vpop.xlane.xlu2 %4688  ;;  %vm4745_vm9 = vcmp.eq.f32.partialorder %v4744_v36, 8.507059e+37 }
 0x71b   : > { %v4724_v59 = vadd.f32 %v5894_v20, %v4723_v38  ;;  %v4718_v40 = vsel %vm4715_vm11, %v4717_v13, %v4713_v6  ;;  %vm4790_vm11 = vcmp.eq.f32.partialorder %v4789_v43, 8.507059e+37  ;;  %v4806_v46 = vand.u32 2147483648, %v8478_v63 }
 0x71c   : > { %v5896_v2 = vpop.eup %5895  ;;  %v4719_v33 = vmul.f32 %v8171_v45, %v4718_v40  ;;  %v4804_v27 = vand.u32 2147483647, %v8478_v63 }
 0x71d   : > { %v5898_v0 = vpop.eup %5897  ;;  %v4736_v19 = vmul.f32 %v5896_v2, %v4677_v29  ;;  %v8475_v56 = vpop.xlane.xlu0 %4679  ;;  %v4728_v53 = vsel %vm4727_vm10, %v5894_v20, %v4724_v59  ;;  %vm4741_vm12 = vweird.f32 %v5896_v2  ;;  %v4807_v39 = vor.u32 1.1754944e-38, %v4806_v46 }
 0x71e   : > { %v4781_v14 = vmul.f32 %v5898_v0, %v8472_v55  ;;  %5899 = vrcp.f32 %v8475_v56  ;;  %v4733_v10 = vsel %vm4730_vm2, %v4732_v7, %v4728_v53  ;;  %vm4786_vm13 = vweird.f32 %v5898_v0  ;;  %vm4742_vm2 = vmor %vm4740_vm14, %vm4741_vm12  ;;  %5689 = vmatmul.msk.f32.vlgmr.msrb.gmra.mxu0 %vm1520_vm1, %v4719_v33 }
 0x71f   : > { %v4737_v41 = vsub.f32 1.0, %v4736_v19  ;;  %5901 = vrcp.f32 %v8478_v63  ;;  %v4734_v22 = vmul.f32 %v8173_v25, %v4733_v10  ;;  %vm4787_vm10 = vmor %vm4785_vm8, %vm4786_vm13  ;;  %v4761_v60 = vand.u32 2147483648, %v8475_v56 }
 0x720   : > { %v4782_v51 = vsub.f32 1.0, %v4781_v14  ;;  %v4759_v55 = vand.u32 2147483647, %v8475_v56  ;;  %vm4755_vm14 = vweird.f32 %v8475_v56  ;;  %vm4800_vm8 = vweird.f32 %v8478_v63 }
 0x721   : > { %v4738_v50 = vmul.f32 %v5896_v2, %v4737_v41  ;;  %5690 = vmatmul.msk.f32.vlgmr.msra.gmra.mxu1 %vm1520_vm1, %v4734_v22 }
 0x722   : > { %v4783_v31 = vmul.f32 %v5898_v0, %v4782_v51 }
 0x723   : > { %v4739_v1 = vadd.f32 %v5896_v2, %v4738_v50 }
 0x724   : > { %v4784_v37 = vadd.f32 %v5898_v0, %v4783_v31  ;;  %v5900_v44 = vpop.eup %5899 }
 0x725   : > { %v4743_v30 = vsel %vm4742_vm2, %v5896_v2, %v4739_v1  ;;  %v4683_v21 = vpop.xlane.xlu0 %4682  ;;  %v5902_v45 = vpop.eup %5901  ;;  %v4751_v25 = vmul.f32 %v5900_v44, %v8475_v56  ;;  %vm4756_vm12 = vweird.f32 %v5900_v44 }
 0x726   : > { %v4748_v54 = vsel %vm4745_vm9, %v4747_v5, %v4743_v30  ;;  %v4788_v23 = vsel %vm4787_vm10, %v5898_v0, %v4784_v37  ;;  %v4796_v15 = vmul.f32 %v5902_v45, %v8478_v63  ;;  %5903 = vrcp.f32 %v4683_v21  ;;  %vm4757_vm2 = vmor %vm4755_vm14, %vm4756_vm12 }
 0x727   : > { %v4793_v34 = vsel %vm4790_vm11, %v4792_v32, %v4788_v23  ;;  %v4752_v57 = vsub.f32 1.0, %v4751_v25  ;;  %v4749_v26 = vmul.f32 %v8184_v61, %v4748_v54  ;;  %vm4801_vm13 = vweird.f32 %v5902_v45 }
 0x728   : > { %v4797_v20 = vsub.f32 1.0, %v4796_v15  ;;  %v4794_v29 = vmul.f32 %v8180_v48, %v4793_v34  ;;  %v4762_v61 = vor.u32 1.1754944e-38, %v4761_v60  ;;  %vm4760_vm9 = vcmp.eq.f32.partialorder %v4759_v55, 8.507059e+37  ;;  %vm4802_vm10 = vmor %vm4800_vm8, %vm4801_vm13 }
 0x729   : > { %v4753_v8 = vmul.f32 %v5900_v44, %v4752_v57  ;;  %5691 = vmatmul.msk.f32.vlgmr.msrb.gmra.mxu2 %vm1520_vm1, %v4749_v26  ;;  %vm4805_vm11 = vcmp.eq.f32.partialorder %v4804_v27, 8.507059e+37  ;;  %v4776_v13 = vand.u32 2147483648, %v4683_v21  ;;  %v4774_v53 = vand.u32 2147483647, %v4683_v21 }
 0x72a   : > { %v4798_v28 = vmul.f32 %v5902_v45, %v4797_v20  ;;  %5694 = vmatmul.msk.f32.vlgmr.msrb.gmra.mxu1 %vm1520_vm1, %v4794_v29  ;;  %vm4770_vm13 = vweird.f32 %v4683_v21 }
 0x72b   : > { %v4754_v12 = vadd.f32 %v5900_v44, %v4753_v8  ;;  %v4777_v14 = vor.u32 1.1754944e-38, %v4776_v13 }
 0x72c   : > { %v5904_v38 = vpop.eup %5903  ;;  %v4799_v62 = vadd.f32 %v5902_v45, %v4798_v28 }
 0x72d   : > { %v4758_v48 = vsel %vm4757_vm2, %v5900_v44, %v4754_v12  ;;  %v4766_v47 = vmul.f32 %v5904_v38, %v4683_v21  ;;  %vm4771_vm12 = vweird.f32 %v5904_v38  ;;  %vm4775_vm2 = vcmp.eq.f32.partialorder %v4774_v53, 8.507059e+37 }
 0x72e   : > { %v4763_v11 = vsel %vm4760_vm9, %v4762_v61, %v4758_v48  ;;  %v4803_v2 = vsel %vm4802_vm10, %v5902_v45, %v4799_v62  ;;  %vm4772_vm14 = vmor %vm4770_vm13, %vm4771_vm12 }
 0x72f   : > { %v4808_v59 = vsel %vm4805_vm11, %v4807_v39, %v4803_v2  ;;  %v4767_v0 = vsub.f32 1.0, %v4766_v47  ;;  %v4764_v6 = vmul.f32 %v8201_v52, %v4763_v11  ;;  %vm8799_vm11 = vcmask 64512  }
 0x730   : > { %v4809_v19 = vmul.f32 %v8210_v3, %v4808_v59  ;;  %vm8800_vm12 = vmmov %vm8799_vm11 }
 0x731   : > { %v4768_v56 = vmul.f32 %v5904_v38, %v4767_v0  ;;  %5692 = vmatmul.msk.f32.vlgmr.msra.gmra.mxu3 %vm1520_vm1, %v4764_v6  ;;  %vm8801_vm13 = vmmov %vm8799_vm11 }
 0x732   : > { %5695 = vmatmul.msk.f32.vlgmr.msra.gmra.mxu2 %vm1520_vm1, %v4809_v19 }
 0x733   : > { %v4769_v7 = vadd.f32 %v5904_v38, %v4768_v56 }
 0x735   : > { %v4773_v63 = vsel %vm4772_vm14, %v5904_v38, %v4769_v7  ;;  %vm8802_vm14 = vmmov %vm8799_vm11 }
 0x736   : > { %v4778_v40 = vsel %vm4775_vm2, %v4777_v14, %v4773_v63  ;;  %vm8803_vm2 = vmmov %vm8799_vm11 }
 0x737   : > { %v4779_v41 = vmul.f32 %v8225_v24, %v4778_v40 }
 0x739   : > { %5693 = vmatmul.msk.f32.vlgmr.msra.gmra.mxu0 %vm1520_vm1, %v4779_v41 }
 0x793   : > { %v4830_v3 = vpop.f32.mrf.mxu3 }
 0x794   : > { %v4996_v51 = vrot.slane %v4830_v3, 4 }
 0x79b   : > { %v4853_v10 = vpop.f32.mrf.mxu0 }
 0x79c   : > { %v5008_v50 = vrot.slane %v4853_v10, 4 }
 0x79e   : > { %v4876_v52 = vpop.f32.mrf.mxu1 }
 0x79f   : > { %v4994_v4 = vrot.slane %v4876_v52, 4  ;;  %v4997_v49 = vsel %vm580_vm0, %v4876_v52, %v4996_v51 }
 0x7a0   : > { %v5005_v24 = vperm.slane %v4997_v49, %v6231_v42 }
 0x7a1   : > { %v4995_v36 = vsel %vm580_vm0, %v4994_v4, %v4830_v3 }
 0x7a2   : > { %v5001_v1 = vperm.slane %v4995_v36, %v6231_v42  ;;  %v5056_v45 = vrot.slane %v5005_v24, 4 }
 0x7a4   : > { %v5044_v21 = vrot.slane %v5001_v1, 4 }
 0x7a7   : > { %v4968_v22 = vpop.f32.mrf.mxu1 }
 0x7a8   : > { %v5018_v30 = vrot.slane %v4968_v22, 4 }
 0x7ac   : > { %v4899_v31 = vpop.f32.mrf.mxu2 }
 0x7ad   : > { %v5006_v43 = vrot.slane %v4899_v31, 4  ;;  %v5009_v33 = vsel %vm580_vm0, %v4899_v31, %v5008_v50 }
 0x7ae   : > { %v5017_v37 = vperm.slane %v5009_v33, %v6231_v42 }
 0x7af   : > { %v5007_v5 = vsel %vm580_vm0, %v5006_v43, %v4853_v10 }
 0x7b0   : > { %v5013_v44 = vperm.slane %v5007_v5, %v6231_v42  ;;  %v5054_v54 = vrot.slane %v5017_v37, 4  ;;  %v5057_v60 = vsel %vm580_vm0, %v5017_v37, %v5056_v45 }
 0x7b1   : > { %v5065_v61 = vperm.slane %v5057_v60, %v6242_v58 }
 0x7b2   : > { %v5042_v32 = vrot.slane %v5013_v44, 4  ;;  %v5045_v57 = vsel %vm580_vm0, %v5013_v44, %v5044_v21  ;;  %v5055_v28 = vsel %vm580_vm0, %v5054_v54, %v5005_v24 }
 0x7b3   : > { %v5053_v38 = vperm.slane %v5045_v57, %v6242_v58  ;;  %v5061_v59 = vperm.slane %v5055_v28, %v6242_v58  ;;  %v5104_v63 = vrot.slane %v5065_v61, 4 }
 0x7b4   : > { %v4922_v23 = vpop.f32.mrf.mxu3  ;;  %v5043_v29 = vsel %vm580_vm0, %v5042_v32, %v5001_v1 }
 0x7b5   : > { %v5019_v25 = vsel %vm580_vm0, %v5018_v30, %v4922_v23  ;;  %v5020_v34 = vrot.slane %v4922_v23, 4  ;;  %v4991_v15 = vpop.f32.mrf.mxu2  ;;  %v5049_v39 = vperm.slane %v5043_v29, %v6242_v58  ;;  %v5096_v56 = vrot.slane %v5053_v38, 4 }
 0x7b6   : > { %v5025_v20 = vperm.slane %v5019_v25, %v6231_v42  ;;  %v4945_v26 = vpop.f32.mrf.mxu0  ;;  %v5030_v55 = vrot.slane %v4991_v15, 4  ;;  %v5100_v51 = vrot.slane %v5061_v59, 4 }
 0x7b7   : > { %v5021_v8 = vsel %vm580_vm0, %v4968_v22, %v5020_v34  ;;  %v5032_v46 = vrot.slane %v4945_v26, 4  ;;  %v5092_v14 = vrot.slane %v5049_v39, 4 }
 0x7b8   : > { %v5029_v27 = vperm.slane %v5021_v8, %v6231_v42  ;;  %v5068_v12 = vrot.slane %v5025_v20, 4  ;;  %v5031_v62 = vsel %vm580_vm0, %v5030_v55, %v4945_v26 }
 0x7b9   : > { %v5033_v48 = vsel %vm580_vm0, %v4991_v15, %v5032_v46  ;;  %v5037_v11 = vperm.slane %v5031_v62, %v6231_v42 }
 0x7ba   : > { %v5080_v47 = vrot.slane %v5029_v27, 4  ;;  %v5041_v2 = vperm.slane %v5033_v48, %v6231_v42 }
 0x7bb   : > { %v5066_v0 = vrot.slane %v5037_v11, 4  ;;  %v5069_v6 = vsel %vm580_vm0, %v5037_v11, %v5068_v12 }
 0x7bc   : > { %v5078_v13 = vrot.slane %v5041_v2, 4  ;;  %v5081_v19 = vsel %vm580_vm0, %v5041_v2, %v5080_v47  ;;  %v5077_v53 = vperm.slane %v5069_v6, %v6242_v58 }
 0x7bd   : > { %v5089_v7 = vperm.slane %v5081_v19, %v6242_v58  ;;  %v5067_v40 = vsel %vm580_vm0, %v5066_v0, %v5025_v20 }
 0x7be   : > { %v5079_v41 = vsel %vm580_vm0, %v5078_v13, %v5029_v27  ;;  %v5073_v52 = vperm.slane %v5067_v40, %v6242_v58  ;;  %v5094_v10 = vrot.slane %v5077_v53, 4  ;;  %v5097_v4 = vsel %vm580_vm0, %v5077_v53, %v5096_v56 }
 0x7bf   : > { %v5085_v3 = vperm.slane %v5079_v41, %v6242_v58  ;;  %v5102_v50 = vrot.slane %v5089_v7, 4  ;;  %v5105_v36 = vsel %vm580_vm0, %v5089_v7, %v5104_v63  ;;  %v5118_v49 = vrot.slane %v5097_v4, 4 }
 0x7c0   : > { %v5090_v31 = vrot.slane %v5073_v52, 4  ;;  %v5093_v43 = vsel %vm580_vm0, %v5073_v52, %v5092_v14  ;;  %v5095_v33 = vsel %vm580_vm0, %v5094_v10, %v5053_v38  ;;  %v5142_v32 = vrot.slane %v5105_v36, 4 }
 0x7c1   : > { %v5098_v1 = vrot.slane %v5085_v3, 4  ;;  %v5101_v24 = vsel %vm580_vm0, %v5085_v3, %v5100_v51  ;;  %v5103_v22 = vsel %vm580_vm0, %v5102_v50, %v5065_v61  ;;  %v5106_v5 = vrot.slane %v5095_v33, 4 }
 0x7c2   : > { %v5119_v37 = vsel %vm580_vm0, %v5118_v49, %v5093_v43  ;;  %v5091_v44 = vsel %vm580_vm0, %v5090_v31, %v5049_v39  ;;  %v5120_v30 = vrot.slane %v5093_v43, 4  ;;  %v5144_v21 = vrot.slane %v5101_v24, 4 }
 0x7c3   : > { %v5108_v45 = vrot.slane %v5091_v44, 4  ;;  %v5099_v54 = vsel %vm580_vm0, %v5098_v1, %v5061_v59  ;;  %v5107_v23 = vsel %vm580_vm0, %v5106_v5, %v5091_v44  ;;  %v5125_v25 = vperm.slane %v5119_v37, %v6231_v42 }
 0x7c4   : > { %v5121_v34 = vsel %vm580_vm0, %v5097_v4, %v5120_v30  ;;  %v5145_v15 = vsel %vm580_vm0, %v5105_v36, %v5144_v21  ;;  %v5113_v57 = vperm.slane %v5107_v23, %v6231_v42  ;;  %v5130_v60 = vrot.slane %v5103_v22, 4 }
 0x7c5   : > { %v5132_v20 = vrot.slane %v5099_v54, 4  ;;  %v5143_v26 = vsel %vm580_vm0, %v5142_v32, %v5101_v24  ;;  %v5154_v29 = vrot.slane %v5125_v25, 4  ;;  %v5109_v8 = vsel %vm580_vm0, %v5095_v33, %v5108_v45 }
 0x7c6   : > { %v5131_v55 = vsel %vm580_vm0, %v5130_v60, %v5099_v54  ;;  %v5149_v46 = vperm.slane %v5143_v26, %v6231_v42  ;;  %v5156_v28 = vrot.slane %v5113_v57, 4  ;;  %v5117_v27 = vperm.slane %v5109_v8, %v6231_v42  ;;  %v5705_v60 = vld [vmem:[%s8771_s4 + $0x1c8] sm:$0xff]  ;;  %v5703_v26 = vld [vmem:[%s8771_s4 + $0x1b8] sm:$0xff] }
 0x7c7   : > { %v5137_v12 = vperm.slane %v5131_v55, %v6231_v42  ;;  %v5155_v38 = vsel %vm580_vm0, %v5154_v29, %v5113_v57  ;;  %v5129_v61 = vperm.slane %v5121_v34, %v6231_v42  ;;  %v5133_v62 = vsel %vm580_vm0, %v5103_v22, %v5132_v20  ;;  %v5706_v57 = vld [vmem:[%s8771_s4 + $0x1d0] sm:$0xff]  ;;  %v5704_v20 = vld [vmem:[%s8771_s4 + $0x1c0] sm:$0xff]  ;;  %v5701_v8 = vld [vmem:[%s8771_s4 + $0x1a8] sm:$0xff] }
 0x7c8   : > { %v5161_v48 = vperm.slane %v5155_v38, %v6242_v58  ;;  %v5178_v39 = vrot.slane %v5149_v46, 4  ;;  %v5157_v47 = vsel %vm580_vm0, %v5125_v25, %v5156_v28  ;;  %v5141_v11 = vperm.slane %v5133_v62, %v6231_v42  ;;  %v5702_v29 = vld [vmem:[%s8771_s4 + $0x1b0] sm:$0xff]  ;;  %v5700_v55 = vld [vmem:[%s8771_s4 + $0x1a0] sm:$0xff] }
 0x7c9   : > { %v5165_v2 = vperm.slane %v5157_v47, %v6242_v58  ;;  %v5180_v59 = vrot.slane %v5137_v12, 4  ;;  %v5153_v0 = vperm.slane %v5145_v15, %v6231_v42  ;;  %v5166_v6 = vrot.slane %v5129_v61, 4  ;;  %v5711_v15 = vld [vmem:[%s8771_s4 + $0x1f8] sm:$0xff]  ;;  %v5698_v28 = vld [vmem:[%s8771_s4 + $0x190] sm:$0xff] }
 0x7ca   : > { %v5179_v13 = vsel %vm580_vm0, %v5178_v39, %v5137_v12  ;;  %v5204_v19 = vrot.slane %v5161_v48, 4  ;;  %v5192_v56 = vrot.slane %v5141_v11, 4  ;;  %v5168_v3 = vrot.slane %v5117_v27, 4  ;;  %5275 = vmatpush.msrb.mxu3 %v5711_v15  ;;  %v5696_v12 = vld [vmem:[%s8771_s4 + $0x180] sm:$0xff] }
 0x7cb   : > { %v5185_v53 = vperm.slane %v5179_v13, %v6242_v58  ;;  %v5181_v7 = vsel %vm580_vm0, %v5149_v46, %v5180_v59  ;;  %v5208_v14 = vrot.slane %v5165_v2, 4  ;;  %v5167_v63 = vsel %vm580_vm0, %v5166_v6, %v5117_v27  ;;  %v5699_v46 = vld [vmem:[%s8771_s4 + $0x198] sm:$0xff]  ;;  %v5697_v27 = vld [vmem:[%s8771_s4 + $0x188] sm:$0xff] }
 0x7cc   : > { %v5189_v40 = vperm.slane %v5181_v7, %v6242_v58  ;;  %v5190_v41 = vrot.slane %v5153_v0, 4  ;;  %v5193_v42 = vsel %vm580_vm0, %v5153_v0, %v5192_v56  ;;  %v5173_v51 = vperm.slane %v5167_v63, %v6242_v58 }
 0x7cd   : > { %v5205_v52 = vsel %vm580_vm0, %v5185_v53, %v5204_v19  ;;  %v5201_v31 = vperm.slane %v5193_v42, %v6242_v58  ;;  %v5169_v1 = vsel %vm580_vm0, %v5129_v61, %v5168_v3  ;;  %v5202_v21 = vrot.slane %v5185_v53, 4 }
 0x7ce   : > { %5219 = vrot.lane.b32.xlu2 %v5205_v52, %s5927_s21  ;;  %v5209_v10 = vsel %vm580_vm0, %v5189_v40, %v5208_v14  ;;  %v5206_v4 = vrot.slane %v5189_v40, 4  ;;  %v5191_v50 = vsel %vm580_vm0, %v5190_v41, %v5141_v11  ;;  %v5212_v33 = vrot.slane %v5173_v51, 4 }
 0x7cf   : > { %5227 = vrot.lane.b32.xlu0 %v5209_v10, %s5926_s20  ;;  %v5197_v36 = vperm.slane %v5191_v50, %v6242_v58  ;;  %v5214_v24 = vrot.slane %v5201_v31, 4  ;;  %v5177_v5 = vperm.slane %v5169_v1, %v6242_v58  ;;  %v5203_v45 = vsel %vm580_vm0, %v5202_v21, %v5161_v48  ;;  %v5803_v58 = vld [vmem:[%s8770_s3 + $0x3] ss:$0 sm:$0xff] }
 0x7d0   : > { %v5207_v49 = vsel %vm580_vm0, %v5206_v4, %v5165_v2  ;;  %v2958_v54 = vadd.f32 %v5803_v58, %v8138_v35  ;;  %v2961_v23 = vadd.f32 %v5803_v58, %v8141_v9  ;;  %v5710_v35 = vld [vmem:[%s8771_s4 + $0x1f0] sm:$0xff]  ;;  %v5707_v9 = vld [vmem:[%s8771_s4 + $0x1d8] sm:$0xff]  ;;  %v5930_v53 = vmov 128.0  }
 0x7d1   : > { %5223 = vrot.lane.b32.xlu1 %v5207_v49, %s5923_s15  ;;  %v5210_v43 = vrot.slane %v5197_v36, 4  ;;  %v5213_v37 = vsel %vm580_vm0, %v5197_v36, %v5212_v33  ;;  %v5215_v44 = vsel %vm580_vm0, %v5214_v24, %v5177_v5  ;;  %v5216_v30 = vrot.slane %v5177_v5, 4  ;;  %5276 = vmatpush.msrb.mxu3 %v5710_v35  ;;  %s8685_s15 = scalar_lea.vmem %s8773_s6, %s5979_s26 }
 0x7d2   : > { %v8600_v25 = vadd.f32 %v2958_v54, %v6171_v17  ;;  %v8604_v34 = vadd.f32 %v2961_v23, %v6176_v18  ;;  %v5709_v17 = vld [vmem:[%s8771_s4 + $0x1e8] sm:$0xff]  ;;  %v5708_v18 = vld [vmem:[%s8771_s4 + $0x1e0] sm:$0xff]  ;;  %5905 = vrcp.f32 %v5930_v53 }
 0x7d3   : > { %v5211_v22 = vsel %vm580_vm0, %v5210_v43, %v5173_v51  ;;  %v5217_v32 = vsel %vm580_vm0, %v5201_v31, %v5216_v30  ;;  %5277 = vmatpush.msrb.mxu3 %v5709_v17  ;;  %v5804_v31 = vld [vmem:[%s8772_s5 + $0x3] ss:$0 sm:$0xff]  ;;  %v5805_v17 = vld [vmem:[%s8770_s3 + $0x4] ss:$0 sm:$0xff]  ;;  %v5808_v53 = vld [vmem:[%s8772_s5 + $0x5] ss:$0 sm:$0xff] }
 0x7d5   : > { %5278 = vmatpush.msrb.mxu3 %v5708_v18 }
 0x7d6   : > { %5231 = vrot.lane.b32.xlu2 %v5211_v22, %s5925_s19 }
 0x7d7   : > { %5235 = vrot.lane.b32.xlu0 %v5213_v37, %s5924_s18  ;;  %5279 = vmatpush.msrb.mxu3 %v5707_v9 }
 0x7d8   : > { %v5906_v7 = vpop.eup %5905 }
 0x7d9   : > { %5239 = vrot.lane.b32.xlu1 %v5215_v44, %s5921_s13  ;;  %5280 = vmatpush.msrb.mxu3 %v5706_v57  ;;  %v2970_v14 = vmul.f32 128.0, %v5906_v7  ;;  %vm2974_vm0 = vweird.f32 %v5906_v7 }
 0x7db   : > { %5281 = vmatpush.msrb.mxu3 %v5705_v60  ;;  %v2971_v63 = vsub.f32 1.0, %v2970_v14  ;;  %v5806_v60 = vld [vmem:[%s8770_s3 + $0x5] ss:$0 sm:$0xff] }
 0x7dd   : > { %5282 = vmatpush.msrb.mxu3 %v5704_v20  ;;  %v2972_v40 = vmul.f32 %v5906_v7, %v2971_v63 }
 0x7de   : > { %5243 = vrot.lane.b32.xlu2 %v5217_v32, %s5922_s14 }
 0x7df   : > { %5283 = vmatpush.msrb.mxu3 %v5703_v26  ;;  %v2973_v41 = vadd.f32 %v5906_v7, %v2972_v40 }
 0x7e1   : > { %5284 = vmatpush.msrb.mxu3 %v5702_v29  ;;  %v8662_v52 = vsel %vm2974_vm0, %v5906_v7, %v2973_v41  ;;  %vm8804_vm0 = vmmov %vm8803_vm2 }
 0x7e3   : > { %5285 = vmatpush.msrb.mxu3 %v5701_v8 }
 0x7e5   : > { %5286 = vmatpush.msrb.mxu3 %v5700_v55 }
 0x7e7   : > { %5287 = vmatpush.msrb.mxu3 %v5699_v46 }
 0x7e9   : > { %5288 = vmatpush.msrb.mxu3 %v5698_v28 }
 0x7eb   : > { %5289 = vmatpush.msrb.mxu3 %v5697_v27 }
 0x7ed   : > { %5290 = vmatpush.msrb.mxu3 %v5696_v12 }
 0x801   : > { %2965 = vadd.xlane.f32.xlu0 %v8600_v25 }
 0x803   : > { %2967 = vadd.xlane.f32.xlu1 %v8604_v34 }
 0x828   : > { %v5220_v38 = vpop.permute.xlu2 %5219 }
 0x829   : > { %v5246_v48 = vsel %vm1520_vm1, %v5203_v45, %v5220_v38 }
 0x830   : > { %v5232_v62 = vpop.permute.xlu2 %5231 }
 0x838   : > { %v5244_v13 = vpop.permute.xlu2 %5243 }
 0x841   : > { %v5228_v61 = vpop.permute.xlu0 %5227 }
 0x843   : > { %v5224_v39 = vpop.permute.xlu1 %5223 }
 0x844   : > { %v5247_v47 = vsel %vm2900_vm15, %v5246_v48, %v5224_v39 }
 0x845   : > { %v5248_v11 = vsel %vm2903_vm3, %v5247_v47, %v5228_v61 }
 0x846   : > { %v5249_v59 = vsel %vm2906_vm4, %v5248_v11, %v5232_v62 }
 0x849   : > { %v5236_v2 = vpop.permute.xlu0 %5235 }
 0x84a   : > { %v5250_v0 = vsel %vm2909_vm6, %v5249_v59, %v5236_v2 }
 0x84b   : > { %v5240_v6 = vpop.permute.xlu1 %5239 }
 0x84c   : > { %v5251_v19 = vsel %vm2912_vm5, %v5250_v0, %v5240_v6 }
 0x84d   : > { %v5252_v56 = vsel %vm2915_vm7, %v5251_v19, %v5244_v13  ;;  %v5807_v13 = vld [vmem:[%s8772_s5 + $0x4] ss:$0 sm:$0xff] }
 0x84e   : > { %5291 = vmatmul.f32.vlgmr.msrb.gmra.mxu3 %v5252_v56 }
 0x874   : > { %v2966_v3 = vpop.xlane.xlu0 %2965 }
 0x875   : > { %v2976_v42 = vmul.f32 %v8662_v52, %v2966_v3 }
 0x876   : > { %v2968_v10 = vpop.xlane.xlu1 %2967 }
 0x877   : > { %v2978_v4 = vsub.f32 %v8600_v25, %v2976_v42  ;;  %v2977_v51 = vmul.f32 %v8662_v52, %v2968_v10 }
 0x879   : > { %v2979_v50 = vsub.f32 %v8604_v34, %v2977_v51  ;;  %v2980_v36 = vmul.f32 %v2978_v4, %v2978_v4 }
 0x87b   : > { %2982 = vadd.xlane.f32.xlu0 %v2980_v36  ;;  %v2981_v49 = vmul.f32 %v2979_v50, %v2979_v50 }
 0x87d   : > { %2984 = vadd.xlane.f32.xlu1 %v2981_v49 }
 0x8d1   : > { %v5292_v43 = vpop.f32.mrf.mxu3 }
 0x8d2   : > { %v5293_v33 = vadd.f32 %v5804_v31, %v5292_v43 }
 0x8d4   : > { %v5295_v1 = vadd.f32 %v5293_v33, %v6169_v16 }
 0x8d6   : > { %5296 = vadd.xlane.f32.xlu2 %v5295_v1 }
 0x8ee   : > { %v2983_v24 = vpop.xlane.xlu0 %2982 }
 0x8ef   : > { %v2986_v22 = vmul.f32 %v2983_v24, %v8662_v52 }
 0x8f0   : > { %v2985_v5 = vpop.xlane.xlu1 %2984 }
 0x8f1   : > { %v2988_v37 = vadd.f32 1e-05, %v2986_v22  ;;  %v2987_v44 = vmul.f32 %v2985_v5, %v8662_v52 }
 0x8f3   : > { %5907 = vrsqrt.f32 %v2988_v37  ;;  %v2989_v30 = vadd.f32 1e-05, %v2987_v44  ;;  %vm2996_vm3 = vweird.f32 %v2988_v37 }
 0x8f5   : > { %5909 = vrsqrt.f32 %v2989_v30  ;;  %vm3006_vm5 = vweird.f32 %v2989_v30 }
 0x8f9   : > { %v5908_v32 = vpop.eup %5907 }
 0x8fa   : > { %v2991_v21 = vmul.f32 %v5908_v32, %v2988_v37  ;;  %vm2997_vm15 = vweird.f32 %v5908_v32 }
 0x8fb   : > { %v5910_v45 = vpop.eup %5909  ;;  %vm2998_vm6 = vmor %vm2996_vm3, %vm2997_vm15 }
 0x8fc   : > { %v2992_v58 = vmul.f32 %v5908_v32, %v2991_v21  ;;  %v3001_v54 = vmul.f32 %v5910_v45, %v2989_v30  ;;  %vm3007_vm4 = vweird.f32 %v5910_v45  ;;  %vm8805_vm15 = vmmov %vm8804_vm0 }
 0x8fd   : > { %vm3008_vm7 = vmor %vm3006_vm5, %vm3007_vm4 }
 0x8fe   : > { %v2993_v23 = vmul.f32 0.5, %v2992_v58  ;;  %v3002_v25 = vmul.f32 %v5910_v45, %v3001_v54  ;;  %vm8806_vm3 = vmmov %vm8804_vm0 }
 0x8ff   : > { %vm8807_vm4 = vmmov %vm8804_vm0 }
 0x900   : > { %v2994_v34 = vsub.f32 1.5, %v2993_v23  ;;  %v3003_v16 = vmul.f32 0.5, %v3002_v25  ;;  %vm8809_vm5 = vmmov %vm8804_vm0 }
 0x902   : > { %v2995_v15 = vmul.f32 %v5908_v32, %v2994_v34  ;;  %v3004_v35 = vsub.f32 1.5, %v3003_v16 }
 0x904   : > { %v2999_v18 = vsel %vm2998_vm6, %v5908_v32, %v2995_v15  ;;  %v3005_v9 = vmul.f32 %v5910_v45, %v3004_v35  ;;  %vm8808_vm6 = vmmov %vm8804_vm0 }
 0x905   : > { %v3010_v57 = vmul.f32 %v2999_v18, %v2978_v4 }
 0x906   : > { %v3009_v20 = vsel %vm3008_vm7, %v5910_v45, %v3005_v9  ;;  %vm8810_vm7 = vmmov %vm8804_vm0 }
 0x907   : > { %v3017_v26 = vmul.f32 %v5805_v17, %v3010_v57  ;;  %v3011_v29 = vmul.f32 %v3009_v20, %v2979_v50 }
 0x909   : > { %v3024_v8 = vadd.f32 %v5806_v60, %v3017_v26  ;;  %v3018_v55 = vmul.f32 %v5805_v17, %v3011_v29 }
 0x90b   : > { %5328 = vxpose.xlu0.b32.start [1/2] (short) %v3024_v8, 128  ;;  %v3025_v46 = vadd.f32 %v5806_v60, %v3018_v55 }
 0x913   : > { %5329 = vxpose.xlu0.b32.end [2/2] (short) %v3025_v46, 128 }
 0x949   : > { %v5297_v28 = vpop.xlane.xlu2 %5296 }
 0x94a   : > { %v5298_v27 = vmul.f32 %v5297_v28, %v8662_v52 }
 0x94c   : > { %v5299_v12 = vsub.f32 %v5295_v1, %v5298_v27 }
 0x94e   : > { %v5300_v38 = vmul.f32 %v5299_v12, %v5299_v12 }
 0x950   : > { %5301 = vadd.xlane.f32.xlu2 %v5300_v38 }
 0x9af   : > { %v5344_v61 = vpop.trf.xlu0 }
 0x9b0   : > { %5360 = vst.msk [vmem:[%s8685_s15] sm:$0xff] %vm1520_vm1, %v5344_v61 }
 0x9b7   : > { %v5345_v63 = vpop.trf.xlu0 }
 0x9b8   : > { %5361 = vst.msk [vmem:[%s8685_s15 + $0x8] sm:$0xff] %vm1520_vm1, %v5345_v63 }
 0x9bf   : > { %v5346_v40 = vpop.trf.xlu0 }
 0x9c0   : > { %5362 = vst.msk [vmem:[%s8685_s15 + $0x10] sm:$0xff] %vm1520_vm1, %v5346_v40 }
 0x9c3   : > { %v5302_v62 = vpop.xlane.xlu2 %5301 }
 0x9c4   : > { %v5303_v48 = vmul.f32 %v5302_v62, %v8662_v52 }
 0x9c6   : > { %v5304_v39 = vadd.f32 1e-05, %v5303_v48 }
 0x9c7   : > { %v5347_v41 = vpop.trf.xlu0 }
 0x9c8   : > { %5911 = vrsqrt.f32 %v5304_v39  ;;  %vm5311_vm9 = vweird.f32 %v5304_v39  ;;  %5363 = vst.msk [vmem:[%s8685_s15 + $0x18] sm:$0xff] %vm1520_vm1, %v5347_v41 }
 0x9ce   : > { %v5912_v47 = vpop.eup %5911 }
 0x9cf   : > { %v5306_v11 = vmul.f32 %v5912_v47, %v5304_v39  ;;  %vm5312_vm8 = vweird.f32 %v5912_v47  ;;  %v5348_v52 = vpop.trf.xlu0 }
 0x9d0   : > { %vm5313_vm10 = vmor %vm5311_vm9, %vm5312_vm8  ;;  %5364 = vst.msk [vmem:[%s8685_s15 + $0x20] sm:$0xff] %vm1520_vm1, %v5348_v52 }
 0x9d1   : > { %v5307_v2 = vmul.f32 %v5912_v47, %v5306_v11  ;;  %vm8811_vm8 = vmmov %vm8804_vm0 }
 0x9d2   : > { %vm8812_vm9 = vmmov %vm8804_vm0 }
 0x9d3   : > { %v5308_v59 = vmul.f32 0.5, %v5307_v2 }
 0x9d5   : > { %v5309_v0 = vsub.f32 1.5, %v5308_v59 }
 0x9d7   : > { %v5310_v6 = vmul.f32 %v5912_v47, %v5309_v0  ;;  %v5349_v42 = vpop.trf.xlu0 }
 0x9d8   : > { %5365 = vst.msk [vmem:[%s8685_s15 + $0x28] sm:$0xff] %vm1520_vm1, %v5349_v42 }
 0x9d9   : > { %v5314_v19 = vsel %vm5313_vm10, %v5912_v47, %v5310_v6  ;;  %vm8813_vm10 = vmmov %vm8804_vm0 }
 0x9da   : > { %v5315_v56 = vmul.f32 %v5314_v19, %v5299_v12 }
 0x9dc   : > { %v5321_v7 = vmul.f32 %v5807_v13, %v5315_v56 }
 0x9de   : > { %v5327_v14 = vadd.f32 %v5808_v53, %v5321_v7 }
 0x9df   : > { %v5350_v4 = vpop.trf.xlu0 }
 0x9e0   : > { %5376 = vxpose.xlu1.b32.start.end [1/1] (short) %v5327_v14, 128  ;;  %5366 = vst.msk [vmem:[%s8685_s15 + $0x30] sm:$0xff] %vm1520_vm1, %v5350_v4 }
 0x9e7   : > { %v5351_v50 = vpop.trf.xlu0 }
 0x9e8   : > { %5367 = vst.msk [vmem:[%s8685_s15 + $0x38] sm:$0xff] %vm1520_vm1, %v5351_v50 }
 0x9ef   : > { %v5352_v49 = vpop.trf.xlu0 }
 0x9f0   : > { %5368 = vst.msk [vmem:[%s8685_s15 + $0x40] sm:$0xff] %vm1520_vm1, %v5352_v49 }
 0x9f7   : > { %v5353_v43 = vpop.trf.xlu0 }
 0x9f8   : > { %5369 = vst.msk [vmem:[%s8685_s15 + $0x48] sm:$0xff] %vm1520_vm1, %v5353_v43 }
 0x9ff   : > { %v5354_v1 = vpop.trf.xlu0 }
 0xa00   : > { %5370 = vst.msk [vmem:[%s8685_s15 + $0x50] sm:$0xff] %vm1520_vm1, %v5354_v1 }
 0xa07   : > { %v5355_v22 = vpop.trf.xlu0 }
 0xa08   : > { %5371 = vst.msk [vmem:[%s8685_s15 + $0x58] sm:$0xff] %vm1520_vm1, %v5355_v22 }
 0xa0f   : > { %v5356_v37 = vpop.trf.xlu0 }
 0xa10   : > { %5372 = vst.msk [vmem:[%s8685_s15 + $0x60] sm:$0xff] %vm1520_vm1, %v5356_v37 }
 0xa17   : > { %v5357_v30 = vpop.trf.xlu0 }
 0xa18   : > { %5373 = vst.msk [vmem:[%s8685_s15 + $0x68] sm:$0xff] %vm1520_vm1, %v5357_v30 }
 0xa1f   : > { %v5358_v21 = vpop.trf.xlu0 }
 0xa20   : > { %5374 = vst.msk [vmem:[%s8685_s15 + $0x70] sm:$0xff] %vm1520_vm1, %v5358_v21 }
 0xa27   : > { %v5359_v58 = vpop.trf.xlu0 }
 0xa28   : > { %5375 = vst.msk [vmem:[%s8685_s15 + $0x78] sm:$0xff] %vm1520_vm1, %v5359_v58 }
 0xa84   : > { %v5392_v3 = vpop.trf.xlu1 }
 0xa85   : > { %5408 = vst.msk [vmem:[%s8708_s8] sm:$0xff] %vm8799_vm11, %v5392_v3  ;;  %vm8814_vm11 = vmmov %vm8804_vm0 }
 0xa8c   : > { %v5393_v10 = vpop.trf.xlu1 }
 0xa8d   : > { %5409 = vst.msk [vmem:[%s8708_s8 + $0x8] sm:$0xff] %vm8800_vm12, %v5393_v10 }
 0xa94   : > { %v5394_v51 = vpop.trf.xlu1 }
 0xa95   : > { %5410 = vst.msk [vmem:[%s8708_s8 + $0x10] sm:$0xff] %vm8801_vm13, %v5394_v51 }
 0xa9c   : > { %v5395_v36 = vpop.trf.xlu1 }
 0xa9d   : > { %5411 = vst.msk [vmem:[%s8708_s8 + $0x18] sm:$0xff] %vm8802_vm14, %v5395_v36 }
 0xaa4   : > { %v5396_v31 = vpop.trf.xlu1 }
 0xaa5   : > { %5412 = vst.msk [vmem:[%s8708_s8 + $0x20] sm:$0xff] %vm8803_vm2, %v5396_v31 }
 0xaac   : > { %v5397_v33 = vpop.trf.xlu1 }
 0xaad   : > { %5413 = vst.msk [vmem:[%s8708_s8 + $0x28] sm:$0xff] %vm8804_vm0, %v5397_v33 }
 0xab4   : > { %v5398_v24 = vpop.trf.xlu1 }
 0xab5   : > { %5414 = vst.msk [vmem:[%s8708_s8 + $0x30] sm:$0xff] %vm8805_vm15, %v5398_v24 }
 0xabc   : > { %v5399_v5 = vpop.trf.xlu1 }
 0xabd   : > { %5415 = vst.msk [vmem:[%s8708_s8 + $0x38] sm:$0xff] %vm8806_vm3, %v5399_v5 }
 0xac4   : > { %v5400_v44 = vpop.trf.xlu1 }
 0xac5   : > { %5416 = vst.msk [vmem:[%s8708_s8 + $0x40] sm:$0xff] %vm8807_vm4, %v5400_v44 }
 0xacc   : > { %v5401_v32 = vpop.trf.xlu1 }
 0xacd   : > { %5417 = vst.msk [vmem:[%s8708_s8 + $0x48] sm:$0xff] %vm8808_vm6, %v5401_v32 }
 0xad4   : > { %v5402_v45 = vpop.trf.xlu1 }
 0xad5   : > { %5418 = vst.msk [vmem:[%s8708_s8 + $0x50] sm:$0xff] %vm8809_vm5, %v5402_v45 }
 0xadc   : > { %v5403_v54 = vpop.trf.xlu1 }
 0xadd   : > { %5419 = vst.msk [vmem:[%s8708_s8 + $0x58] sm:$0xff] %vm8810_vm7, %v5403_v54 }
 0xae4   : > { %v5404_v23 = vpop.trf.xlu1 }
 0xae5   : > { %5420 = vst.msk [vmem:[%s8708_s8 + $0x60] sm:$0xff] %vm8811_vm8, %v5404_v23 }
 0xaec   : > { %v5405_v25 = vpop.trf.xlu1 }
 0xaed   : > { %5421 = vst.msk [vmem:[%s8708_s8 + $0x68] sm:$0xff] %vm8812_vm9, %v5405_v25 }
 0xaf4   : > { %v5406_v34 = vpop.trf.xlu1 }
 0xaf5   : > { %5422 = vst.msk [vmem:[%s8708_s8 + $0x70] sm:$0xff] %vm8813_vm10, %v5406_v34 }
 0xafc   : > { %v5407_v16 = vpop.trf.xlu1 }
 0xafd   : > { %5423 = vst.msk [vmem:[%s8708_s8 + $0x78] sm:$0xff] %vm8814_vm11, %v5407_v16 }
 0xafe PF: > { %s18_s24 = sadd.s32 1, %s5919_s24  }
 0xaff   : > { %p15_p4 = scmp.ge.s32.totalorder %s18_s24, 4  }
 0xb01   :  { %17 = sbr.rel (!%p15_p4) target bundleno = 1 (0x1), region = 105 }

</bundles_post_ra>
